<compile_context>
chip_gen: v7x
topology: tpu7x:2x2x1
jax: 0.10.0
libtpu: 0.0.40
codegen_flags: <defaults>
</compile_context>

<pallas_src>
import functools

import jax
import jax.numpy as jnp
from jax.experimental import pallas as pl
from jax.experimental.pallas import tpu as pltpu

_BN_EPS = 1e-5
_LANE = 128


def _compiler_params():
    return pltpu.CompilerParams(
        dimension_semantics=("parallel",),      # batch axis -> shard across TCs (v7x megacore)
        vmem_limit_bytes=32 * 1024 * 1024,      # comfortably inside v7x's 64 MiB / v5e-v6e 128 MiB
    )


# --------------------------------------------------------------------------- #
# Kernels
# --------------------------------------------------------------------------- #
def _conv_body(x_ref, sc_ref, sh_ref, w_ref, b_ref, o_ref, st_ref, col_ref, *, apply_act):
    """One image: [optional fused BN-affine + ReLU on the input] -> 3x3 'same' conv as a
    single im2col MXU matmul (bf16 operands, f32 accumulation) -> bias -> per-image
    BatchNorm partial sums.

    x_ref  : (1, H, W, Ci_stored) f32   input image (channels may be lane-padded)
    sc_ref : (1, Ci_stored) f32 or None folded BN scale of the previous layer
    sh_ref : (1, Ci_stored) f32 or None folded BN shift
    w_ref  : (9*Ci, Co) bf16            conv weight, tap-major (ky, kx, cin) x cout
    b_ref  : (1, Co) f32                conv bias (lane-padded)
    o_ref  : (1, H, W, Co) f32          conv output, Co is a multiple of 128 (lane-dense)
    st_ref : (1, 2, Co) f32             [sum, sum_of_squares] over H*W for this image
    col_ref: (H, W, 9*Ci) f32 scratch   im2col patch matrix
    """
    H, W = x_ref.shape[1], x_ref.shape[2]
    Ci = w_ref.shape[0] // 9            # real input channels of this conv
    Co = w_ref.shape[1]

    x = x_ref[0]                                              # (H, W, Ci_stored)
    if apply_act:
        sc = sc_ref[...].reshape(1, 1, -1)
        sh = sh_ref[...].reshape(1, 1, -1)
        x = jnp.maximum(x * sc + sh, 0.0)                     # fused BN + ReLU (lane-dense)
    x = x[:, :, :Ci]                                          # drop lane-padding channels

    # im2col into VMEM scratch. The zero fill provides the conv's zero padding:
    # border cells that no tap writes stay zero (scratch is small: H*W x 9*Ci).
    col_ref[...] = jnp.zeros_like(col_ref)
    for dy in range(3):
        for dx in range(3):
            oy, ox = dy - 1, dx - 1
            i0, i1 = max(0, -oy), min(H, H - oy)
            j0, j1 = max(0, -ox), min(W, W - ox)
            t = dy * 3 + dx
            col_ref[i0:i1, j0:j1, t * Ci:(t + 1) * Ci] = \
                x[i0 + oy:i1 + oy, j0 + ox:j1 + ox, :]

    # One MXU matmul with K = 9*Ci (instead of 9 matmuls with K = Ci).
    cols = col_ref[...].reshape(H * W, 9 * Ci).astype(jnp.bfloat16)
    acc = jnp.dot(cols, w_ref[...], preferred_element_type=jnp.float32) + b_ref[...]

    # Single-pass BN partials; finished (and folded into scale/shift) in the wrapper.
    st_ref[0, 0:1, :] = jnp.sum(acc, axis=0, keepdims=True)
    st_ref[0, 1:2, :] = jnp.sum(acc * acc, axis=0, keepdims=True)

    o_ref[0] = acc.reshape(H, W, Co)                          # lane-dense (128-wide) store


def _conv_kernel(x_ref, w_ref, b_ref, o_ref, st_ref, col_ref):
    _conv_body(x_ref, None, None, w_ref, b_ref, o_ref, st_ref, col_ref, apply_act=False)


def _conv_bn_kernel(x_ref, sc_ref, sh_ref, w_ref, b_ref, o_ref, st_ref, col_ref):
    _conv_body(x_ref, sc_ref, sh_ref, w_ref, b_ref, o_ref, st_ref, col_ref, apply_act=True)


def _bn_relu_se_kernel(h_ref, sc_ref, sh_ref, se1_ref, se2_ref, o_ref):
    """Fused BN2 (folded affine) + ReLU + Squeeze-Excite for one image (lane-dense)."""
    H, W, C = h_ref.shape[1], h_ref.shape[2], h_ref.shape[3]
    h = jnp.maximum(h_ref[0] * sc_ref[...].reshape(1, 1, C)
                    + sh_ref[...].reshape(1, 1, C), 0.0)               # (H, W, C)
    pooled = jnp.mean(h.reshape(H * W, C), axis=0, keepdims=True)      # AdaptiveAvgPool2d(1)
    y = jnp.maximum(jnp.dot(pooled, se1_ref[...],
                            preferred_element_type=jnp.float32), 0.0)
    y = jax.nn.sigmoid(jnp.dot(y, se2_ref[...],
                               preferred_element_type=jnp.float32))    # (1, C)
    o_ref[0] = h * y.reshape(1, 1, C)


# --------------------------------------------------------------------------- #
# Wrapper
# --------------------------------------------------------------------------- #
def _pad_last(a, axis, target):
    pads = [(0, 0)] * a.ndim
    pads[axis] = (0, target - a.shape[axis])
    return jnp.pad(a, pads)


def _round_up(n, m):
    return ((n + m - 1) // m) * m


def _bn_scale_shift(st, gamma, beta, count):
    """Fold training-mode BatchNorm (batch stats, biased var) into y = x*scale + shift."""
    s = jnp.sum(st[:, 0, :], axis=0)
    ss = jnp.sum(st[:, 1, :], axis=0)
    mean = s / count
    var = ss / count - mean * mean
    scale = gamma * jax.lax.rsqrt(var + _BN_EPS)
    shift = beta - mean * scale
    return scale.reshape(1, -1), shift.reshape(1, -1)


@jax.jit
def vgg_block(x_nchw, params):
    """x_nchw: (N, Cin, H, W) float32 -> (N, Cout, H, W) float32."""
    (w1, b1, g1, be1, w2, b2, g2, be2, se1, se2) = params
    N, Cin, H, W = x_nchw.shape
    Cmid = w1.shape[-1]
    Cout = w2.shape[-1]
    Cr = se1.shape[-1]
    Cmp = _round_up(Cmid, _LANE)            # lane-padded channel counts (dense 128-lane stores)
    Cop = _round_up(Cout, _LANE)
    nhw = float(N * H * W)

    x_nhwc = jnp.transpose(x_nchw, (0, 2, 3, 1)).astype(jnp.float32)

    # Conv weights as (tap*cin, cout_padded) bf16 (MXU-native); biases / BN / SE lane-padded.
    w1m = _pad_last(w1.reshape(9 * Cin, Cmid), 1, Cmp).astype(jnp.bfloat16)
    w2m = _pad_last(w2.reshape(9 * Cmid, Cout), 1, Cop).astype(jnp.bfloat16)
    b1r = _pad_last(b1.reshape(1, Cmid), 1, Cmp).astype(jnp.float32)
    b2r = _pad_last(b2.reshape(1, Cout), 1, Cop).astype(jnp.float32)
    g1p, be1p = _pad_last(g1, 0, Cmp), _pad_last(be1, 0, Cmp)
    g2p, be2p = _pad_last(g2, 0, Cop), _pad_last(be2, 0, Cop)
    se1p = _pad_last(se1, 0, Cop).astype(jnp.float32)        # (Cop, Cr)
    se2p = _pad_last(se2, 1, Cop).astype(jnp.float32)        # (Cr, Cop)

    cparams = _compiler_params()

    # ---- stage 1: conv1 + bias, per-image BN1 partial sums --------------------------------
    h1_pre, st1 = pl.pallas_call(
        _conv_kernel,
        grid=(N,),
        in_specs=[
            pl.BlockSpec((1, H, W, Cin), lambda n: (n, 0, 0, 0)),
            pl.BlockSpec((9 * Cin, Cmp), lambda n: (0, 0)),
            pl.BlockSpec((1, Cmp), lambda n: (0, 0)),
        ],
        out_specs=(
            pl.BlockSpec((1, H, W, Cmp), lambda n: (n, 0, 0, 0)),
            pl.BlockSpec((1, 2, Cmp), lambda n: (n, 0, 0)),
        ),
        out_shape=(
            jax.ShapeDtypeStruct((N, H, W, Cmp), jnp.float32),
            jax.ShapeDtypeStruct((N, 2, Cmp), jnp.float32),
        ),
        scratch_shapes=[pltpu.VMEM((H, W, 9 * Cin), jnp.float32)],
        compiler_params=cparams,
    )(x_nhwc, w1m, b1r)

    sc1, sh1 = _bn_scale_shift(st1, g1p, be1p, nhw)          # tiny glue on (2, Cmp) data

    # ---- stage 2: fused BN1+ReLU, conv2 + bias, per-image BN2 partial sums -----------------
    h2_pre, st2 = pl.pallas_call(
        _conv_bn_kernel,
        grid=(N,),
        in_specs=[
            pl.BlockSpec((1, H, W, Cmp), lambda n: (n, 0, 0, 0)),
            pl.BlockSpec((1, Cmp), lambda n: (0, 0)),
            pl.BlockSpec((1, Cmp), lambda n: (0, 0)),
            pl.BlockSpec((9 * Cmid, Cop), lambda n: (0, 0)),
            pl.BlockSpec((1, Cop), lambda n: (0, 0)),
        ],
        out_specs=(
            pl.BlockSpec((1, H, W, Cop), lambda n: (n, 0, 0, 0)),
            pl.BlockSpec((1, 2, Cop), lambda n: (n, 0, 0)),
        ),
        out_shape=(
            jax.ShapeDtypeStruct((N, H, W, Cop), jnp.float32),
            jax.ShapeDtypeStruct((N, 2, Cop), jnp.float32),
        ),
        scratch_shapes=[pltpu.VMEM((H, W, 9 * Cmid), jnp.float32)],
        compiler_params=cparams,
    )(h1_pre, sc1, sh1, w2m, b2r)

    sc2, sh2 = _bn_scale_shift(st2, g2p, be2p, nhw)

    # ---- stage 3: fused BN2+ReLU + Squeeze-Excite ------------------------------------------
    out_p = pl.pallas_call(
        _bn_relu_se_kernel,
        grid=(N,),
        in_specs=[
            pl.BlockSpec((1, H, W, Cop), lambda n: (n, 0, 0, 0)),
            pl.BlockSpec((1, Cop), lambda n: (0, 0)),
            pl.BlockSpec((1, Cop), lambda n: (0, 0)),
            pl.BlockSpec((Cop, Cr), lambda n: (0, 0)),
            pl.BlockSpec((Cr, Cop), lambda n: (0, 0)),
        ],
        out_specs=pl.BlockSpec((1, H, W, Cop), lambda n: (n, 0, 0, 0)),
        out_shape=jax.ShapeDtypeStruct((N, H, W, Cop), jnp.float32),
        compiler_params=cparams,
    )(h2_pre, sc2, sh2, se1p, se2p)

    out = out_p[..., :Cout]                                  # drop lane-padding channels
    return jnp.transpose(out, (0, 3, 1, 2))


# --------------------------------------------------------------------------- #
# Pure-JAX reference (module semantics) and parameter construction
# --------------------------------------------------------------------------- #
def vgg_block_reference(x_nchw, params):
    (w1, b1, g1, be1, w2, b2, g2, be2, se1, se2) = params
    x = jnp.transpose(x_nchw, (0, 2, 3, 1)).astype(jnp.float32)

    def conv(h, w, b):
        out = jax.lax.conv_general_dilated(
            h, w, window_strides=(1, 1), padding="SAME",
            dimension_numbers=("NHWC", "HWIO", "NHWC"),
            precision=jax.lax.Precision.HIGHEST)
        return out + b

    def bn(h, g, be):
        m = jnp.mean(h, axis=(0, 1, 2), keepdims=True)
        v = jnp.mean((h - m) ** 2, axis=(0, 1, 2), keepdims=True)
        return (h - m) / jnp.sqrt(v + _BN_EPS) * g + be

    h = jax.nn.relu(bn(conv(x, w1, b1), g1, be1))
    h = jax.nn.relu(bn(conv(h, w2, b2), g2, be2))
    p = jnp.mean(h, axis=(1, 2))
    y = jax.nn.sigmoid(jax.nn.relu(p @ se1) @ se2)
    h = h * y[:, None, None, :]
    return jnp.transpose(h, (0, 3, 1, 2))


def make_params(key, in_channels, middle_channels, out_channels, reduction=8):
    ks = jax.random.split(key, 8)
    s = 0.1
    w1 = s * jax.random.normal(ks[0], (3, 3, in_channels, middle_channels), jnp.float32)
    b1 = s * jax.random.normal(ks[1], (middle_channels,), jnp.float32)
    g1 = 1.0 + s * jax.random.normal(ks[2], (middle_channels,), jnp.float32)
    be1 = s * jax.random.normal(ks[3], (middle_channels,), jnp.float32)
    w2 = s * jax.random.normal(ks[4], (3, 3, middle_channels, out_channels), jnp.float32)
    b2 = s * jax.random.normal(ks[5], (out_channels,), jnp.float32)
    g2 = 1.0 + s * jax.random.normal(ks[6], (out_channels,), jnp.float32)
    be2 = s * jax.random.normal(ks[7], (out_channels,), jnp.float32)
    k_se = jax.random.split(jax.random.fold_in(key, 123), 2)
    se1 = s * jax.random.normal(k_se[0], (out_channels, out_channels // reduction), jnp.float32)
    se2 = s * jax.random.normal(k_se[1], (out_channels // reduction, out_channels), jnp.float32)
    return (w1, b1, g1, be1, w2, b2, g2, be2, se1, se2)


if __name__ == "__main__":
    key = jax.random.PRNGKey(0)
    N, Cin, H, W = 2, 4, 16, 16
    Cmid, Cout = 8, 16   # Cout divisible by SE reduction (8)

    kx, kp = jax.random.split(key)
    x = jax.random.normal(kx, (N, Cin, H, W), jnp.float32)
    params = make_params(kp, Cin, Cmid, Cout)

    out = jax.block_until_ready(vgg_block(x, params))
    ref = jax.block_until_ready(vgg_block_reference(x, params))

    assert out.shape == (N, Cout, H, W), out.shape
    # bf16 MXU operands (f32 accumulation) vs. the f32 HIGHEST-precision reference
    # dominate the difference; 3e-2 absolute on O(1) activations is ample margin.
    err = float(jnp.max(jnp.abs(out - ref)))
    assert err < 3e-2, f"max abs err {err}"
    print("KERNEL_OK")
</pallas_src>

<mosaic_0001>
module attributes {stable_mosaic.version = 11 : i64} {
  func.func @_conv_kernel(%arg0: i32, %arg1: memref<1x16x16x4xf32, #tpu.memory_space<vmem>>, %arg2: memref<36x128xbf16, #tpu.memory_space<vmem>>, %arg3: memref<1x128xf32, #tpu.memory_space<vmem>>, %arg4: memref<1x16x16x128xf32, #tpu.memory_space<vmem>>, %arg5: memref<1x2x128xf32, #tpu.memory_space<vmem>>, %arg6: memref<16x16x36xf32, #tpu.memory_space<vmem>>) attributes {dimension_semantics = [#tpu.dimension_semantics<parallel>], iteration_bounds = array<i64: 2>, scalar_prefetch = 0 : i64, scratch_operands = 1 : i64, tpu.core_type = #tpu.core_type<tc>, window_params = [{transform_indices = @transform_0, window_bounds = array<i64: 1, 16, 16, 4>}, {pipeline_mode = #tpu.pipeline_mode<synchronous>, transform_indices = @transform_1, window_bounds = array<i64: 36, 128>}, {pipeline_mode = #tpu.pipeline_mode<synchronous>, transform_indices = @transform_2, window_bounds = array<i64: 1, 128>}, {transform_indices = @transform_3, window_bounds = array<i64: 1, 16, 16, 128>}, {transform_indices = @transform_4, window_bounds = array<i64: 1, 2, 128>}]} {
    %c0 = arith.constant 0 : index
    %c0_0 = arith.constant 0 : index
    %c0_1 = arith.constant 0 : index
    %c0_2 = arith.constant 0 : index
    %0 = vector.load %arg1[%c0, %c0_0, %c0_1, %c0_2] : memref<1x16x16x4xf32, #tpu.memory_space<vmem>>, vector<1x16x16x4xf32>
    %1 = vector.shape_cast %0 : vector<1x16x16x4xf32> to vector<16x16x4xf32>
    %cst = arith.constant 0.000000e+00 : f32
    %2 = vector.broadcast %cst : f32 to vector<16x16x36xf32>
    %c0_3 = arith.constant 0 : index
    %c0_4 = arith.constant 0 : index
    %c0_5 = arith.constant 0 : index
    %3 = vector.load %arg6[%c0_3, %c0_4, %c0_5] : memref<16x16x36xf32, #tpu.memory_space<vmem>>, vector<16x16x36xf32>
    tpu.vector_store %arg6[%c0_3, %c0_4, %c0_5], %2 {strides = array<i32>} : memref<16x16x36xf32, #tpu.memory_space<vmem>>, vector<16x16x36xf32>,
    %4 = vector.extract_strided_slice %1 {offsets = [0, 0, 0], sizes = [15, 15, 4], strides = [1, 1, 1]} : vector<16x16x4xf32> to vector<15x15x4xf32>
    %c1 = arith.constant 1 : index
    %c1_6 = arith.constant 1 : index
    %c0_7 = arith.constant 0 : index
    %5 = vector.load %arg6[%c1, %c1_6, %c0_7] : memref<16x16x36xf32, #tpu.memory_space<vmem>>, vector<15x15x4xf32>
    tpu.vector_store %arg6[%c1, %c1_6, %c0_7], %4 {strides = array<i32>} : memref<16x16x36xf32, #tpu.memory_space<vmem>>, vector<15x15x4xf32>,
    %6 = vector.extract_strided_slice %1 {offsets = [0, 0, 0], sizes = [15, 16, 4], strides = [1, 1, 1]} : vector<16x16x4xf32> to vector<15x16x4xf32>
    %c1_8 = arith.constant 1 : index
    %c0_9 = arith.constant 0 : index
    %c4 = arith.constant 4 : index
    %7 = vector.load %arg6[%c1_8, %c0_9, %c4] : memref<16x16x36xf32, #tpu.memory_space<vmem>>, vector<15x16x4xf32>
    tpu.vector_store %arg6[%c1_8, %c0_9, %c4], %6 {strides = array<i32>} : memref<16x16x36xf32, #tpu.memory_space<vmem>>, vector<15x16x4xf32>,
    %8 = vector.extract_strided_slice %1 {offsets = [0, 1, 0], sizes = [15, 15, 4], strides = [1, 1, 1]} : vector<16x16x4xf32> to vector<15x15x4xf32>
    %c1_10 = arith.constant 1 : index
    %c0_11 = arith.constant 0 : index
    %c8 = arith.constant 8 : index
    %9 = vector.load %arg6[%c1_10, %c0_11, %c8] : memref<16x16x36xf32, #tpu.memory_space<vmem>>, vector<15x15x4xf32>
    tpu.vector_store %arg6[%c1_10, %c0_11, %c8], %8 {strides = array<i32>} : memref<16x16x36xf32, #tpu.memory_space<vmem>>, vector<15x15x4xf32>,
    %10 = vector.extract_strided_slice %1 {offsets = [0, 0, 0], sizes = [16, 15, 4], strides = [1, 1, 1]} : vector<16x16x4xf32> to vector<16x15x4xf32>
    %c0_12 = arith.constant 0 : index
    %c1_13 = arith.constant 1 : index
    %c12 = arith.constant 12 : index
    %11 = vector.load %arg6[%c0_12, %c1_13, %c12] : memref<16x16x36xf32, #tpu.memory_space<vmem>>, vector<16x15x4xf32>
    tpu.vector_store %arg6[%c0_12, %c1_13, %c12], %10 {strides = array<i32>} : memref<16x16x36xf32, #tpu.memory_space<vmem>>, vector<16x15x4xf32>,
    %c0_14 = arith.constant 0 : index
    %c0_15 = arith.constant 0 : index
    %c16 = arith.constant 16 : index
    %12 = vector.load %arg6[%c0_14, %c0_15, %c16] : memref<16x16x36xf32, #tpu.memory_space<vmem>>, vector<16x16x4xf32>
    tpu.vector_store %arg6[%c0_14, %c0_15, %c16], %1 {strides = array<i32>} : memref<16x16x36xf32, #tpu.memory_space<vmem>>, vector<16x16x4xf32>,
    %13 = vector.extract_strided_slice %1 {offsets = [0, 1, 0], sizes = [16, 15, 4], strides = [1, 1, 1]} : vector<16x16x4xf32> to vector<16x15x4xf32>
    %c0_16 = arith.constant 0 : index
    %c0_17 = arith.constant 0 : index
    %c20 = arith.constant 20 : index
    %14 = vector.load %arg6[%c0_16, %c0_17, %c20] : memref<16x16x36xf32, #tpu.memory_space<vmem>>, vector<16x15x4xf32>
    tpu.vector_store %arg6[%c0_16, %c0_17, %c20], %13 {strides = array<i32>} : memref<16x16x36xf32, #tpu.memory_space<vmem>>, vector<16x15x4xf32>,
    %15 = vector.extract_strided_slice %1 {offsets = [1, 0, 0], sizes = [15, 15, 4], strides = [1, 1, 1]} : vector<16x16x4xf32> to vector<15x15x4xf32>
    %c0_18 = arith.constant 0 : index
    %c1_19 = arith.constant 1 : index
    %c24 = arith.constant 24 : index
    %16 = vector.load %arg6[%c0_18, %c1_19, %c24] : memref<16x16x36xf32, #tpu.memory_space<vmem>>, vector<15x15x4xf32>
    tpu.vector_store %arg6[%c0_18, %c1_19, %c24], %15 {strides = array<i32>} : memref<16x16x36xf32, #tpu.memory_space<vmem>>, vector<15x15x4xf32>,
    %17 = vector.extract_strided_slice %1 {offsets = [1, 0, 0], sizes = [15, 16, 4], strides = [1, 1, 1]} : vector<16x16x4xf32> to vector<15x16x4xf32>
    %c0_20 = arith.constant 0 : index
    %c0_21 = arith.constant 0 : index
    %c28 = arith.constant 28 : index
    %18 = vector.load %arg6[%c0_20, %c0_21, %c28] : memref<16x16x36xf32, #tpu.memory_space<vmem>>, vector<15x16x4xf32>
    tpu.vector_store %arg6[%c0_20, %c0_21, %c28], %17 {strides = array<i32>} : memref<16x16x36xf32, #tpu.memory_space<vmem>>, vector<15x16x4xf32>,
    %19 = vector.extract_strided_slice %1 {offsets = [1, 1, 0], sizes = [15, 15, 4], strides = [1, 1, 1]} : vector<16x16x4xf32> to vector<15x15x4xf32>
    %c0_22 = arith.constant 0 : index
    %c0_23 = arith.constant 0 : index
    %c32 = arith.constant 32 : index
    %20 = vector.load %arg6[%c0_22, %c0_23, %c32] : memref<16x16x36xf32, #tpu.memory_space<vmem>>, vector<15x15x4xf32>
    tpu.vector_store %arg6[%c0_22, %c0_23, %c32], %19 {strides = array<i32>} : memref<16x16x36xf32, #tpu.memory_space<vmem>>, vector<15x15x4xf32>,
    %c0_24 = arith.constant 0 : index
    %c0_25 = arith.constant 0 : index
    %c0_26 = arith.constant 0 : index
    %21 = vector.load %arg6[%c0_24, %c0_25, %c0_26] : memref<16x16x36xf32, #tpu.memory_space<vmem>>, vector<16x16x36xf32>
    %22 = vector.shape_cast %21 : vector<16x16x36xf32> to vector<256x36xf32>
    %23 = arith.truncf %22 : vector<256x36xf32> to vector<256x36xbf16>
    %c0_27 = arith.constant 0 : index
    %c0_28 = arith.constant 0 : index
    %24 = vector.load %arg2[%c0_27, %c0_28] : memref<36x128xbf16, #tpu.memory_space<vmem>>, vector<36x128xbf16>
    %cst_29 = arith.constant dense<0.000000e+00> : vector<256x128xf32>
    %25 = tpu.matmul %23, %24, %cst_29 {dimension_numbers = #tpu.dot_dimension_numbers<[1], [0], [0], [1], [0, 0, 1, 1], [], []>} : vector<256x36xbf16>, vector<36x128xbf16>, vector<256x128xf32> -> vector<256x128xf32>
    %c0_30 = arith.constant 0 : index
    %c0_31 = arith.constant 0 : index
    %26 = vector.load %arg3[%c0_30, %c0_31] : memref<1x128xf32, #tpu.memory_space<vmem>>, vector<1x128xf32>
    %27 = vector.broadcast %26 : vector<1x128xf32> to vector<256x128xf32>
    %28 = arith.addf %25, %27 : vector<256x128xf32>
    %cst_32 = arith.constant dense<0.000000e+00> : vector<128xf32>
    %29 = vector.multi_reduction <add>, %28, %cst_32 [0] : vector<256x128xf32> to vector<128xf32>
    %30 = vector.shape_cast %29 : vector<128xf32> to vector<1x128xf32>
    %c0_33 = arith.constant 0 : index
    %c0_34 = arith.constant 0 : index
    %c0_35 = arith.constant 0 : index
    %31 = vector.load %arg5[%c0_33, %c0_34, %c0_35] : memref<1x2x128xf32, #tpu.memory_space<vmem>>, vector<1x1x128xf32>
    %32 = vector.shape_cast %31 : vector<1x1x128xf32> to vector<1x128xf32>
    %33 = vector.shape_cast %30 : vector<1x128xf32> to vector<1x1x128xf32>
    tpu.vector_store %arg5[%c0_33, %c0_34, %c0_35], %33 {strides = array<i32>} : memref<1x2x128xf32, #tpu.memory_space<vmem>>, vector<1x1x128xf32>,
    %34 = arith.mulf %28, %28 : vector<256x128xf32>
    %cst_36 = arith.constant dense<0.000000e+00> : vector<128xf32>
    %35 = vector.multi_reduction <add>, %34, %cst_36 [0] : vector<256x128xf32> to vector<128xf32>
    %36 = vector.shape_cast %35 : vector<128xf32> to vector<1x128xf32>
    %c0_37 = arith.constant 0 : index
    %c1_38 = arith.constant 1 : index
    %c0_39 = arith.constant 0 : index
    %37 = vector.load %arg5[%c0_37, %c1_38, %c0_39] : memref<1x2x128xf32, #tpu.memory_space<vmem>>, vector<1x1x128xf32>
    %38 = vector.shape_cast %37 : vector<1x1x128xf32> to vector<1x128xf32>
    %39 = vector.shape_cast %36 : vector<1x128xf32> to vector<1x1x128xf32>
    tpu.vector_store %arg5[%c0_37, %c1_38, %c0_39], %39 {strides = array<i32>} : memref<1x2x128xf32, #tpu.memory_space<vmem>>, vector<1x1x128xf32>,
    %40 = vector.shape_cast %28 : vector<256x128xf32> to vector<16x16x128xf32>
    %c0_40 = arith.constant 0 : index
    %c0_41 = arith.constant 0 : index
    %c0_42 = arith.constant 0 : index
    %c0_43 = arith.constant 0 : index
    %41 = vector.load %arg4[%c0_40, %c0_41, %c0_42, %c0_43] : memref<1x16x16x128xf32, #tpu.memory_space<vmem>>, vector<1x16x16x128xf32>
    %42 = vector.shape_cast %41 : vector<1x16x16x128xf32> to vector<16x16x128xf32>
    %43 = vector.shape_cast %40 : vector<16x16x128xf32> to vector<1x16x16x128xf32>
    tpu.vector_store %arg4[%c0_40, %c0_41, %c0_42, %c0_43], %43 {strides = array<i32>} : memref<1x16x16x128xf32, #tpu.memory_space<vmem>>, vector<1x16x16x128xf32>,
    return
  }
  func.func @transform_0(%arg0: i32) -> (i32, i32, i32, i32) {
    %c0_i32 = arith.constant 0 : i32
    %c0_i32_0 = arith.constant 0 : i32
    %c0_i32_1 = arith.constant 0 : i32
    %c0_i32_2 = arith.constant 0 : i32
    return %arg0, %c0_i32, %c0_i32_0, %c0_i32_1 : i32, i32, i32, i32
  }
  func.func @transform_1(%arg0: i32) -> (i32, i32) {
    %c0_i32 = arith.constant 0 : i32
    %c0_i32_0 = arith.constant 0 : i32
    %c0_i32_1 = arith.constant 0 : i32
    return %c0_i32, %c0_i32_0 : i32, i32
  }
  func.func @transform_2(%arg0: i32) -> (i32, i32) {
    %c0_i32 = arith.constant 0 : i32
    %c0_i32_0 = arith.constant 0 : i32
    %c0_i32_1 = arith.constant 0 : i32
    return %c0_i32, %c0_i32_0 : i32, i32
  }
  func.func @transform_3(%arg0: i32) -> (i32, i32, i32, i32) {
    %c0_i32 = arith.constant 0 : i32
    %c0_i32_0 = arith.constant 0 : i32
    %c0_i32_1 = arith.constant 0 : i32
    %c0_i32_2 = arith.constant 0 : i32
    return %arg0, %c0_i32, %c0_i32_0, %c0_i32_1 : i32, i32, i32, i32
  }
  func.func @transform_4(%arg0: i32) -> (i32, i32, i32) {
    %c0_i32 = arith.constant 0 : i32
    %c0_i32_0 = arith.constant 0 : i32
    %c0_i32_1 = arith.constant 0 : i32
    return %arg0, %c0_i32, %c0_i32_0 : i32, i32, i32
  }
}

module attributes {stable_mosaic.version = 11 : i64} {
  func.func @_conv_bn_kernel(%arg0: i32, %arg1: memref<1x16x16x128xf32, #tpu.memory_space<vmem>>, %arg2: memref<1x128xf32, #tpu.memory_space<vmem>>, %arg3: memref<1x128xf32, #tpu.memory_space<vmem>>, %arg4: memref<72x128xbf16, #tpu.memory_space<vmem>>, %arg5: memref<1x128xf32, #tpu.memory_space<vmem>>, %arg6: memref<1x16x16x128xf32, #tpu.memory_space<vmem>>, %arg7: memref<1x2x128xf32, #tpu.memory_space<vmem>>, %arg8: memref<16x16x72xf32, #tpu.memory_space<vmem>>) attributes {dimension_semantics = [#tpu.dimension_semantics<parallel>], iteration_bounds = array<i64: 2>, scalar_prefetch = 0 : i64, scratch_operands = 1 : i64, tpu.core_type = #tpu.core_type<tc>, window_params = [{transform_indices = @transform_0, window_bounds = array<i64: 1, 16, 16, 128>}, {pipeline_mode = #tpu.pipeline_mode<synchronous>, transform_indices = @transform_1, window_bounds = array<i64: 1, 128>}, {pipeline_mode = #tpu.pipeline_mode<synchronous>, transform_indices = @transform_2, window_bounds = array<i64: 1, 128>}, {pipeline_mode = #tpu.pipeline_mode<synchronous>, transform_indices = @transform_3, window_bounds = array<i64: 72, 128>}, {pipeline_mode = #tpu.pipeline_mode<synchronous>, transform_indices = @transform_4, window_bounds = array<i64: 1, 128>}, {transform_indices = @transform_5, window_bounds = array<i64: 1, 16, 16, 128>}, {transform_indices = @transform_6, window_bounds = array<i64: 1, 2, 128>}]} {
    %c0 = arith.constant 0 : index
    %c0_0 = arith.constant 0 : index
    %c0_1 = arith.constant 0 : index
    %c0_2 = arith.constant 0 : index
    %0 = vector.load %arg1[%c0, %c0_0, %c0_1, %c0_2] : memref<1x16x16x128xf32, #tpu.memory_space<vmem>>, vector<1x16x16x128xf32>
    %1 = vector.shape_cast %0 : vector<1x16x16x128xf32> to vector<16x16x128xf32>
    %c0_3 = arith.constant 0 : index
    %c0_4 = arith.constant 0 : index
    %2 = vector.load %arg2[%c0_3, %c0_4] : memref<1x128xf32, #tpu.memory_space<vmem>>, vector<1x128xf32>
    %3 = vector.shape_cast %2 : vector<1x128xf32> to vector<1x1x128xf32>
    %c0_5 = arith.constant 0 : index
    %c0_6 = arith.constant 0 : index
    %4 = vector.load %arg3[%c0_5, %c0_6] : memref<1x128xf32, #tpu.memory_space<vmem>>, vector<1x128xf32>
    %5 = vector.shape_cast %4 : vector<1x128xf32> to vector<1x1x128xf32>
    %6 = vector.broadcast %3 : vector<1x1x128xf32> to vector<16x16x128xf32>
    %7 = arith.mulf %1, %6 : vector<16x16x128xf32>
    %8 = vector.broadcast %5 : vector<1x1x128xf32> to vector<16x16x128xf32>
    %9 = arith.addf %7, %8 : vector<16x16x128xf32>
    %cst = arith.constant 0.000000e+00 : f32
    %10 = vector.broadcast %cst : f32 to vector<16x16x128xf32>
    %11 = arith.maximumf %9, %10 : vector<16x16x128xf32>
    %12 = vector.extract_strided_slice %11 {offsets = [0, 0, 0], sizes = [16, 16, 8], strides = [1, 1, 1]} : vector<16x16x128xf32> to vector<16x16x8xf32>
    %cst_7 = arith.constant 0.000000e+00 : f32
    %13 = vector.broadcast %cst_7 : f32 to vector<16x16x72xf32>
    %c0_8 = arith.constant 0 : index
    %c0_9 = arith.constant 0 : index
    %c0_10 = arith.constant 0 : index
    %14 = vector.load %arg8[%c0_8, %c0_9, %c0_10] : memref<16x16x72xf32, #tpu.memory_space<vmem>>, vector<16x16x72xf32>
    tpu.vector_store %arg8[%c0_8, %c0_9, %c0_10], %13 {strides = array<i32>} : memref<16x16x72xf32, #tpu.memory_space<vmem>>, vector<16x16x72xf32>,
    %15 = vector.extract_strided_slice %12 {offsets = [0, 0, 0], sizes = [15, 15, 8], strides = [1, 1, 1]} : vector<16x16x8xf32> to vector<15x15x8xf32>
    %c1 = arith.constant 1 : index
    %c1_11 = arith.constant 1 : index
    %c0_12 = arith.constant 0 : index
    %16 = vector.load %arg8[%c1, %c1_11, %c0_12] : memref<16x16x72xf32, #tpu.memory_space<vmem>>, vector<15x15x8xf32>
    tpu.vector_store %arg8[%c1, %c1_11, %c0_12], %15 {strides = array<i32>} : memref<16x16x72xf32, #tpu.memory_space<vmem>>, vector<15x15x8xf32>,
    %17 = vector.extract_strided_slice %12 {offsets = [0, 0, 0], sizes = [15, 16, 8], strides = [1, 1, 1]} : vector<16x16x8xf32> to vector<15x16x8xf32>
    %c1_13 = arith.constant 1 : index
    %c0_14 = arith.constant 0 : index
    %c8 = arith.constant 8 : index
    %18 = vector.load %arg8[%c1_13, %c0_14, %c8] : memref<16x16x72xf32, #tpu.memory_space<vmem>>, vector<15x16x8xf32>
    tpu.vector_store %arg8[%c1_13, %c0_14, %c8], %17 {strides = array<i32>} : memref<16x16x72xf32, #tpu.memory_space<vmem>>, vector<15x16x8xf32>,
    %19 = vector.extract_strided_slice %12 {offsets = [0, 1, 0], sizes = [15, 15, 8], strides = [1, 1, 1]} : vector<16x16x8xf32> to vector<15x15x8xf32>
    %c1_15 = arith.constant 1 : index
    %c0_16 = arith.constant 0 : index
    %c16 = arith.constant 16 : index
    %20 = vector.load %arg8[%c1_15, %c0_16, %c16] : memref<16x16x72xf32, #tpu.memory_space<vmem>>, vector<15x15x8xf32>
    tpu.vector_store %arg8[%c1_15, %c0_16, %c16], %19 {strides = array<i32>} : memref<16x16x72xf32, #tpu.memory_space<vmem>>, vector<15x15x8xf32>,
    %21 = vector.extract_strided_slice %12 {offsets = [0, 0, 0], sizes = [16, 15, 8], strides = [1, 1, 1]} : vector<16x16x8xf32> to vector<16x15x8xf32>
    %c0_17 = arith.constant 0 : index
    %c1_18 = arith.constant 1 : index
    %c24 = arith.constant 24 : index
    %22 = vector.load %arg8[%c0_17, %c1_18, %c24] : memref<16x16x72xf32, #tpu.memory_space<vmem>>, vector<16x15x8xf32>
    tpu.vector_store %arg8[%c0_17, %c1_18, %c24], %21 {strides = array<i32>} : memref<16x16x72xf32, #tpu.memory_space<vmem>>, vector<16x15x8xf32>,
    %c0_19 = arith.constant 0 : index
    %c0_20 = arith.constant 0 : index
    %c32 = arith.constant 32 : index
    %23 = vector.load %arg8[%c0_19, %c0_20, %c32] : memref<16x16x72xf32, #tpu.memory_space<vmem>>, vector<16x16x8xf32>
    tpu.vector_store %arg8[%c0_19, %c0_20, %c32], %12 {strides = array<i32>} : memref<16x16x72xf32, #tpu.memory_space<vmem>>, vector<16x16x8xf32>,
    %24 = vector.extract_strided_slice %12 {offsets = [0, 1, 0], sizes = [16, 15, 8], strides = [1, 1, 1]} : vector<16x16x8xf32> to vector<16x15x8xf32>
    %c0_21 = arith.constant 0 : index
    %c0_22 = arith.constant 0 : index
    %c40 = arith.constant 40 : index
    %25 = vector.load %arg8[%c0_21, %c0_22, %c40] : memref<16x16x72xf32, #tpu.memory_space<vmem>>, vector<16x15x8xf32>
    tpu.vector_store %arg8[%c0_21, %c0_22, %c40], %24 {strides = array<i32>} : memref<16x16x72xf32, #tpu.memory_space<vmem>>, vector<16x15x8xf32>,
    %26 = vector.extract_strided_slice %12 {offsets = [1, 0, 0], sizes = [15, 15, 8], strides = [1, 1, 1]} : vector<16x16x8xf32> to vector<15x15x8xf32>
    %c0_23 = arith.constant 0 : index
    %c1_24 = arith.constant 1 : index
    %c48 = arith.constant 48 : index
    %27 = vector.load %arg8[%c0_23, %c1_24, %c48] : memref<16x16x72xf32, #tpu.memory_space<vmem>>, vector<15x15x8xf32>
    tpu.vector_store %arg8[%c0_23, %c1_24, %c48], %26 {strides = array<i32>} : memref<16x16x72xf32, #tpu.memory_space<vmem>>, vector<15x15x8xf32>,
    %28 = vector.extract_strided_slice %12 {offsets = [1, 0, 0], sizes = [15, 16, 8], strides = [1, 1, 1]} : vector<16x16x8xf32> to vector<15x16x8xf32>
    %c0_25 = arith.constant 0 : index
    %c0_26 = arith.constant 0 : index
    %c56 = arith.constant 56 : index
    %29 = vector.load %arg8[%c0_25, %c0_26, %c56] : memref<16x16x72xf32, #tpu.memory_space<vmem>>, vector<15x16x8xf32>
    tpu.vector_store %arg8[%c0_25, %c0_26, %c56], %28 {strides = array<i32>} : memref<16x16x72xf32, #tpu.memory_space<vmem>>, vector<15x16x8xf32>,
    %30 = vector.extract_strided_slice %12 {offsets = [1, 1, 0], sizes = [15, 15, 8], strides = [1, 1, 1]} : vector<16x16x8xf32> to vector<15x15x8xf32>
    %c0_27 = arith.constant 0 : index
    %c0_28 = arith.constant 0 : index
    %c64 = arith.constant 64 : index
    %31 = vector.load %arg8[%c0_27, %c0_28, %c64] : memref<16x16x72xf32, #tpu.memory_space<vmem>>, vector<15x15x8xf32>
    tpu.vector_store %arg8[%c0_27, %c0_28, %c64], %30 {strides = array<i32>} : memref<16x16x72xf32, #tpu.memory_space<vmem>>, vector<15x15x8xf32>,
    %c0_29 = arith.constant 0 : index
    %c0_30 = arith.constant 0 : index
    %c0_31 = arith.constant 0 : index
    %32 = vector.load %arg8[%c0_29, %c0_30, %c0_31] : memref<16x16x72xf32, #tpu.memory_space<vmem>>, vector<16x16x72xf32>
    %33 = vector.shape_cast %32 : vector<16x16x72xf32> to vector<256x72xf32>
    %34 = arith.truncf %33 : vector<256x72xf32> to vector<256x72xbf16>
    %c0_32 = arith.constant 0 : index
    %c0_33 = arith.constant 0 : index
    %35 = vector.load %arg4[%c0_32, %c0_33] : memref<72x128xbf16, #tpu.memory_space<vmem>>, vector<72x128xbf16>
    %cst_34 = arith.constant dense<0.000000e+00> : vector<256x128xf32>
    %36 = tpu.matmul %34, %35, %cst_34 {dimension_numbers = #tpu.dot_dimension_numbers<[1], [0], [0], [1], [0, 0, 1, 1], [], []>} : vector<256x72xbf16>, vector<72x128xbf16>, vector<256x128xf32> -> vector<256x128xf32>
    %c0_35 = arith.constant 0 : index
    %c0_36 = arith.constant 0 : index
    %37 = vector.load %arg5[%c0_35, %c0_36] : memref<1x128xf32, #tpu.memory_space<vmem>>, vector<1x128xf32>
    %38 = vector.broadcast %37 : vector<1x128xf32> to vector<256x128xf32>
    %39 = arith.addf %36, %38 : vector<256x128xf32>
    %cst_37 = arith.constant dense<0.000000e+00> : vector<128xf32>
    %40 = vector.multi_reduction <add>, %39, %cst_37 [0] : vector<256x128xf32> to vector<128xf32>
    %41 = vector.shape_cast %40 : vector<128xf32> to vector<1x128xf32>
    %c0_38 = arith.constant 0 : index
    %c0_39 = arith.constant 0 : index
    %c0_40 = arith.constant 0 : index
    %42 = vector.load %arg7[%c0_38, %c0_39, %c0_40] : memref<1x2x128xf32, #tpu.memory_space<vmem>>, vector<1x1x128xf32>
    %43 = vector.shape_cast %42 : vector<1x1x128xf32> to vector<1x128xf32>
    %44 = vector.shape_cast %41 : vector<1x128xf32> to vector<1x1x128xf32>
    tpu.vector_store %arg7[%c0_38, %c0_39, %c0_40], %44 {strides = array<i32>} : memref<1x2x128xf32, #tpu.memory_space<vmem>>, vector<1x1x128xf32>,
    %45 = arith.mulf %39, %39 : vector<256x128xf32>
    %cst_41 = arith.constant dense<0.000000e+00> : vector<128xf32>
    %46 = vector.multi_reduction <add>, %45, %cst_41 [0] : vector<256x128xf32> to vector<128xf32>
    %47 = vector.shape_cast %46 : vector<128xf32> to vector<1x128xf32>
    %c0_42 = arith.constant 0 : index
    %c1_43 = arith.constant 1 : index
    %c0_44 = arith.constant 0 : index
    %48 = vector.load %arg7[%c0_42, %c1_43, %c0_44] : memref<1x2x128xf32, #tpu.memory_space<vmem>>, vector<1x1x128xf32>
    %49 = vector.shape_cast %48 : vector<1x1x128xf32> to vector<1x128xf32>
    %50 = vector.shape_cast %47 : vector<1x128xf32> to vector<1x1x128xf32>
    tpu.vector_store %arg7[%c0_42, %c1_43, %c0_44], %50 {strides = array<i32>} : memref<1x2x128xf32, #tpu.memory_space<vmem>>, vector<1x1x128xf32>,
    %51 = vector.shape_cast %39 : vector<256x128xf32> to vector<16x16x128xf32>
    %c0_45 = arith.constant 0 : index
    %c0_46 = arith.constant 0 : index
    %c0_47 = arith.constant 0 : index
    %c0_48 = arith.constant 0 : index
    %52 = vector.load %arg6[%c0_45, %c0_46, %c0_47, %c0_48] : memref<1x16x16x128xf32, #tpu.memory_space<vmem>>, vector<1x16x16x128xf32>
    %53 = vector.shape_cast %52 : vector<1x16x16x128xf32> to vector<16x16x128xf32>
    %54 = vector.shape_cast %51 : vector<16x16x128xf32> to vector<1x16x16x128xf32>
    tpu.vector_store %arg6[%c0_45, %c0_46, %c0_47, %c0_48], %54 {strides = array<i32>} : memref<1x16x16x128xf32, #tpu.memory_space<vmem>>, vector<1x16x16x128xf32>,
    return
  }
  func.func @transform_0(%arg0: i32) -> (i32, i32, i32, i32) {
    %c0_i32 = arith.constant 0 : i32
    %c0_i32_0 = arith.constant 0 : i32
    %c0_i32_1 = arith.constant 0 : i32
    %c0_i32_2 = arith.constant 0 : i32
    return %arg0, %c0_i32, %c0_i32_0, %c0_i32_1 : i32, i32, i32, i32
  }
  func.func @transform_1(%arg0: i32) -> (i32, i32) {
    %c0_i32 = arith.constant 0 : i32
    %c0_i32_0 = arith.constant 0 : i32
    %c0_i32_1 = arith.constant 0 : i32
    return %c0_i32, %c0_i32_0 : i32, i32
  }
  func.func @transform_2(%arg0: i32) -> (i32, i32) {
    %c0_i32 = arith.constant 0 : i32
    %c0_i32_0 = arith.constant 0 : i32
    %c0_i32_1 = arith.constant 0 : i32
    return %c0_i32, %c0_i32_0 : i32, i32
  }
  func.func @transform_3(%arg0: i32) -> (i32, i32) {
    %c0_i32 = arith.constant 0 : i32
    %c0_i32_0 = arith.constant 0 : i32
    %c0_i32_1 = arith.constant 0 : i32
    return %c0_i32, %c0_i32_0 : i32, i32
  }
  func.func @transform_4(%arg0: i32) -> (i32, i32) {
    %c0_i32 = arith.constant 0 : i32
    %c0_i32_0 = arith.constant 0 : i32
    %c0_i32_1 = arith.constant 0 : i32
    return %c0_i32, %c0_i32_0 : i32, i32
  }
  func.func @transform_5(%arg0: i32) -> (i32, i32, i32, i32) {
    %c0_i32 = arith.constant 0 : i32
    %c0_i32_0 = arith.constant 0 : i32
    %c0_i32_1 = arith.constant 0 : i32
    %c0_i32_2 = arith.constant 0 : i32
    return %arg0, %c0_i32, %c0_i32_0, %c0_i32_1 : i32, i32, i32, i32
  }
  func.func @transform_6(%arg0: i32) -> (i32, i32, i32) {
    %c0_i32 = arith.constant 0 : i32
    %c0_i32_0 = arith.constant 0 : i32
    %c0_i32_1 = arith.constant 0 : i32
    return %arg0, %c0_i32, %c0_i32_0 : i32, i32, i32
  }
}

module attributes {stable_mosaic.version = 11 : i64} {
  func.func @_bn_relu_se_kernel(%arg0: i32, %arg1: memref<1x16x16x128xf32, #tpu.memory_space<vmem>>, %arg2: memref<1x128xf32, #tpu.memory_space<vmem>>, %arg3: memref<1x128xf32, #tpu.memory_space<vmem>>, %arg4: memref<128x2xf32, #tpu.memory_space<vmem>>, %arg5: memref<2x128xf32, #tpu.memory_space<vmem>>, %arg6: memref<1x16x16x128xf32, #tpu.memory_space<vmem>>) attributes {dimension_semantics = [#tpu.dimension_semantics<parallel>], iteration_bounds = array<i64: 2>, scalar_prefetch = 0 : i64, scratch_operands = 0 : i64, tpu.core_type = #tpu.core_type<tc>, window_params = [{transform_indices = @transform_0, window_bounds = array<i64: 1, 16, 16, 128>}, {pipeline_mode = #tpu.pipeline_mode<synchronous>, transform_indices = @transform_1, window_bounds = array<i64: 1, 128>}, {pipeline_mode = #tpu.pipeline_mode<synchronous>, transform_indices = @transform_2, window_bounds = array<i64: 1, 128>}, {pipeline_mode = #tpu.pipeline_mode<synchronous>, transform_indices = @transform_3, window_bounds = array<i64: 128, 2>}, {pipeline_mode = #tpu.pipeline_mode<synchronous>, transform_indices = @transform_4, window_bounds = array<i64: 2, 128>}, {transform_indices = @transform_5, window_bounds = array<i64: 1, 16, 16, 128>}]} {
    %c0 = arith.constant 0 : index
    %c0_0 = arith.constant 0 : index
    %c0_1 = arith.constant 0 : index
    %c0_2 = arith.constant 0 : index
    %0 = vector.load %arg1[%c0, %c0_0, %c0_1, %c0_2] : memref<1x16x16x128xf32, #tpu.memory_space<vmem>>, vector<1x16x16x128xf32>
    %1 = vector.shape_cast %0 : vector<1x16x16x128xf32> to vector<16x16x128xf32>
    %c0_3 = arith.constant 0 : index
    %c0_4 = arith.constant 0 : index
    %2 = vector.load %arg2[%c0_3, %c0_4] : memref<1x128xf32, #tpu.memory_space<vmem>>, vector<1x128xf32>
    %3 = vector.shape_cast %2 : vector<1x128xf32> to vector<1x1x128xf32>
    %4 = vector.broadcast %3 : vector<1x1x128xf32> to vector<16x16x128xf32>
    %5 = arith.mulf %1, %4 : vector<16x16x128xf32>
    %c0_5 = arith.constant 0 : index
    %c0_6 = arith.constant 0 : index
    %6 = vector.load %arg3[%c0_5, %c0_6] : memref<1x128xf32, #tpu.memory_space<vmem>>, vector<1x128xf32>
    %7 = vector.shape_cast %6 : vector<1x128xf32> to vector<1x1x128xf32>
    %8 = vector.broadcast %7 : vector<1x1x128xf32> to vector<16x16x128xf32>
    %9 = arith.addf %5, %8 : vector<16x16x128xf32>
    %cst = arith.constant 0.000000e+00 : f32
    %10 = vector.broadcast %cst : f32 to vector<16x16x128xf32>
    %11 = arith.maximumf %9, %10 : vector<16x16x128xf32>
    %12 = vector.shape_cast %11 : vector<16x16x128xf32> to vector<256x128xf32>
    %cst_7 = arith.constant dense<0.000000e+00> : vector<128xf32>
    %13 = vector.multi_reduction <add>, %12, %cst_7 [0] : vector<256x128xf32> to vector<128xf32>
    %14 = vector.shape_cast %13 : vector<128xf32> to vector<1x128xf32>
    %cst_8 = arith.constant 2.560000e+02 : f32
    %15 = vector.broadcast %cst_8 : f32 to vector<1x128xf32>
    %16 = arith.divf %14, %15 : vector<1x128xf32>
    %c0_9 = arith.constant 0 : index
    %c0_10 = arith.constant 0 : index
    %17 = vector.load %arg4[%c0_9, %c0_10] : memref<128x2xf32, #tpu.memory_space<vmem>>, vector<128x2xf32>
    %cst_11 = arith.constant dense<0.000000e+00> : vector<1x2xf32>
    %18 = tpu.matmul %16, %17, %cst_11 {dimension_numbers = #tpu.dot_dimension_numbers<[1], [0], [0], [1], [0, 0, 1, 1], [], []>} : vector<1x128xf32>, vector<128x2xf32>, vector<1x2xf32> -> vector<1x2xf32>
    %cst_12 = arith.constant 0.000000e+00 : f32
    %19 = vector.broadcast %cst_12 : f32 to vector<1x2xf32>
    %20 = arith.maximumf %18, %19 : vector<1x2xf32>
    %c0_13 = arith.constant 0 : index
    %c0_14 = arith.constant 0 : index
    %21 = vector.load %arg5[%c0_13, %c0_14] : memref<2x128xf32, #tpu.memory_space<vmem>>, vector<2x128xf32>
    %cst_15 = arith.constant dense<0.000000e+00> : vector<1x128xf32>
    %22 = tpu.matmul %20, %21, %cst_15 {dimension_numbers = #tpu.dot_dimension_numbers<[1], [0], [0], [1], [0, 0, 1, 1], [], []>} : vector<1x2xf32>, vector<2x128xf32>, vector<1x128xf32> -> vector<1x128xf32>
    %23 = arith.negf %22 : vector<1x128xf32>
    %24 = math.exp %23 : vector<1x128xf32>
    %cst_16 = arith.constant 1.000000e+00 : f32
    %25 = vector.broadcast %cst_16 : f32 to vector<1x128xf32>
    %26 = arith.addf %25, %24 : vector<1x128xf32>
    %27 = arith.divf %25, %26 : vector<1x128xf32>
    %28 = vector.shape_cast %27 : vector<1x128xf32> to vector<1x1x128xf32>
    %29 = vector.broadcast %28 : vector<1x1x128xf32> to vector<16x16x128xf32>
    %30 = arith.mulf %11, %29 : vector<16x16x128xf32>
    %c0_17 = arith.constant 0 : index
    %c0_18 = arith.constant 0 : index
    %c0_19 = arith.constant 0 : index
    %c0_20 = arith.constant 0 : index
    %31 = vector.load %arg6[%c0_17, %c0_18, %c0_19, %c0_20] : memref<1x16x16x128xf32, #tpu.memory_space<vmem>>, vector<1x16x16x128xf32>
    %32 = vector.shape_cast %31 : vector<1x16x16x128xf32> to vector<16x16x128xf32>
    %33 = vector.shape_cast %30 : vector<16x16x128xf32> to vector<1x16x16x128xf32>
    tpu.vector_store %arg6[%c0_17, %c0_18, %c0_19, %c0_20], %33 {strides = array<i32>} : memref<1x16x16x128xf32, #tpu.memory_space<vmem>>, vector<1x16x16x128xf32>,
    return
  }
  func.func @transform_0(%arg0: i32) -> (i32, i32, i32, i32) {
    %c0_i32 = arith.constant 0 : i32
    %c0_i32_0 = arith.constant 0 : i32
    %c0_i32_1 = arith.constant 0 : i32
    %c0_i32_2 = arith.constant 0 : i32
    return %arg0, %c0_i32, %c0_i32_0, %c0_i32_1 : i32, i32, i32, i32
  }
  func.func @transform_1(%arg0: i32) -> (i32, i32) {
    %c0_i32 = arith.constant 0 : i32
    %c0_i32_0 = arith.constant 0 : i32
    %c0_i32_1 = arith.constant 0 : i32
    return %c0_i32, %c0_i32_0 : i32, i32
  }
  func.func @transform_2(%arg0: i32) -> (i32, i32) {
    %c0_i32 = arith.constant 0 : i32
    %c0_i32_0 = arith.constant 0 : i32
    %c0_i32_1 = arith.constant 0 : i32
    return %c0_i32, %c0_i32_0 : i32, i32
  }
  func.func @transform_3(%arg0: i32) -> (i32, i32) {
    %c0_i32 = arith.constant 0 : i32
    %c0_i32_0 = arith.constant 0 : i32
    %c0_i32_1 = arith.constant 0 : i32
    return %c0_i32, %c0_i32_0 : i32, i32
  }
  func.func @transform_4(%arg0: i32) -> (i32, i32) {
    %c0_i32 = arith.constant 0 : i32
    %c0_i32_0 = arith.constant 0 : i32
    %c0_i32_1 = arith.constant 0 : i32
    return %c0_i32, %c0_i32_0 : i32, i32
  }
  func.func @transform_5(%arg0: i32) -> (i32, i32, i32, i32) {
    %c0_i32 = arith.constant 0 : i32
    %c0_i32_0 = arith.constant 0 : i32
    %c0_i32_1 = arith.constant 0 : i32
    %c0_i32_2 = arith.constant 0 : i32
    return %arg0, %c0_i32, %c0_i32_0, %c0_i32_1 : i32, i32, i32, i32
  }
}

</mosaic_0001>

<bundles_post_ra>
// kernel: vgg_block.5
= control target key start
LH: loop header
LB: loop body
LE: loop exit
PB: predicated region body
PF: predicated region fallthrough
CT: control target
= control target key end

     0   :  { %s858_s18 = smov 0   ;;  %s1299_s0 = inlined_call_operand.vmem [shape: f32[2,16,16,128], index: 0, kind: input, shape index: {}]   ;;  %s1300_s1 = inlined_call_operand.vmem [shape: f32[1,128], index: 1, kind: input, shape index: {}]   ;;  %s1301_s2 = inlined_call_operand.vmem [shape: f32[1,128], index: 2, kind: input, shape index: {}]   ;;  %s1302_s3 = inlined_call_operand.vmem [shape: f32[128,2], index: 3, kind: input, shape index: {}]   ;;  %s1303_s4 = inlined_call_operand.vmem [shape: f32[2,128], index: 4, kind: input, shape index: {}]   ;;  %s1304_s5 = inlined_call_operand.vmem [shape: f32[2,16,16,128], index: 5, kind: output, shape index: {}]  }
   0x1 LB: > { %s701_s19 = sadd.s32 4294967295, %s823_s18   ;;  %p705_p0 = scmp.ge.s32.totalorder %s823_s18, 1  ;;  %s823_s18 = sphi %s858_s18, %s15_s18  }
   0x2   : > { %p187_p1 = scmp.lt.s32.totalorder %s823_s18, 3 }
   0x4   : > { %p188_p2 = pnand %p705_p0, %p187_p1 }
   0x5   : > { %v406_v0 = vld [vmem:[%s1302_s3] sm:$0xff] (!%p188_p2)  ;;  %v407_v1 = vld [vmem:[%s1302_s3 + $0x8] sm:$0xff] (!%p188_p2)  ;;  %v408_v2 = vld [vmem:[%s1302_s3 + $0x10] sm:$0xff] (!%p188_p2)  ;;  %v825_v3 = vmov (!%p188_p2), 0.0|0.0   ;;  %vm826_vm0 = vmmov (!%p188_p2), 0   ;;  %v827_v6 = vmov (!%p188_p2), 0.0  }
   0x6   : > { %191 = sbr.rel (%p188_p2) target bundleno = 572 (0x23c), region = 40  ;;  %778 = vmatprep.subr.bf16.mxu0 (!%p188_p2), %v825_v3  ;;  %v779_v4 = vpack.c.bf16 (!%p188_p2), %v407_v1, %v406_v0  ;;  %v409_v5 = vld [vmem:[%s1302_s3 + $0x18] sm:$0xff] (!%p188_p2)  ;;  %770 = vmatprep.mubr.msk.f32.mxu0 (!%p188_p2), %vm826_vm0, %v827_v6  ;;  %p215_p3 = scmp.lt.s32.totalorder (!%p188_p2), %s701_s19, 1  ;;  %v410_v8 = vld [vmem:[%s1302_s3 + $0x20] sm:$0xff] (!%p188_p2)  ;;  %v411_v9 = vld [vmem:[%s1302_s3 + $0x28] sm:$0xff] (!%p188_p2)  ;;  %vm498_vm1 = vcmask (!%p188_p2), 1041408  }
   0x7   : > { %773 = vmatprep.subr.mxu1 (!%p188_p2), %v827_v6  ;;  %775 = vmatprep.mubr.msk.f32.mxu1 (!%p188_p2), %vm826_vm0, %v827_v6  ;;  %v782_v7 = vpack.c.bf16 (!%p188_p2), %v409_v5, %v408_v2  ;;  %v785_v10 = vpack.c.bf16 (!%p188_p2), %v411_v9, %v410_v8  ;;  %v412_v11 = vld [vmem:[%s1302_s3 + $0x30] sm:$0xff] (!%p188_p2)  ;;  %v413_v12 = vld [vmem:[%s1302_s3 + $0x38] sm:$0xff] (!%p188_p2)  ;;  %v414_v14 = vld [vmem:[%s1302_s3 + $0x40] sm:$0xff] (!%p188_p2)  ;;  %vm494_vm2 = vcmask (!%p188_p2), 15360  }
   0x8   : > { %780 = vmatpush3.bf16.msra.mxu0 (!%p188_p2), %v779_v4  ;;  %v788_v13 = vpack.c.bf16 (!%p188_p2), %v413_v12, %v412_v11  ;;  %v415_v15 = vld [vmem:[%s1302_s3 + $0x48] sm:$0xff] (!%p188_p2)  ;;  %v416_v17 = vld [vmem:[%s1302_s3 + $0x50] sm:$0xff] (!%p188_p2)  ;;  %v417_v18 = vld [vmem:[%s1302_s3 + $0x58] sm:$0xff] (!%p188_p2) }
   0x9   : > { %781 = vmatprep.subr.bf16.mxu0 (!%p188_p2), %v825_v3  ;;  %v791_v16 = vpack.c.bf16 (!%p188_p2), %v415_v15, %v414_v14  ;;  %v917_v21 = vld [vmem:[%s1300_s1] ss:$0 sm:$0xff] (!%p188_p2)  ;;  %v794_v22 = vpack.c.bf16 (!%p188_p2), %v417_v18, %v416_v17  ;;  %v419_v25 = vld [vmem:[%s1302_s3 + $0x68] sm:$0xff] (!%p188_p2)  ;;  %v420_v33 = vld [vmem:[%s1302_s3 + $0x70] sm:$0xff] (!%p188_p2) }
   0xa   : > { %v418_v24 = vld [vmem:[%s1302_s3 + $0x60] sm:$0xff] (!%p188_p2)  ;;  %v421_v34 = vld [vmem:[%s1302_s3 + $0x78] sm:$0xff] (!%p188_p2) }
   0xb   : > { %v932_v29 = vld [vmem:[%s1301_s2] ss:$0 sm:$0xff] (!%p188_p2)  ;;  %v797_v31 = vpack.c.bf16 (!%p188_p2), %v419_v25, %v418_v24  ;;  %v800_v41 = vpack.c.bf16 (!%p188_p2), %v421_v34, %v420_v33 }
   0xc   : > { %783 = vmatpush3.bf16.msra.mxu0 (!%p188_p2), %v782_v7 }
   0xd   : > { %s1334_s19 = smov (!%p215_p3, %s701_s19), 1  ;;  %784 = vmatprep.subr.bf16.mxu0 %v825_v3 }
   0xe   : > { %s717_s11 = sshll.u32 %s1334_s19, 8 }
   0xf   : > { %s904_s20 = scalar_lea.vmem %s1299_s0, %s717_s11  ;;  %s1198_s17 = scalar_lea.vmem %s1304_s5, %s717_s11 }
  0x10   : > { %786 = vmatpush3.bf16.msra.mxu0 %v785_v10  ;;  %v225_v19 = vld [vmem:[%s904_s20] sm:$0xff]  ;;  %v226_v20 = vld [vmem:[%s904_s20 + $0x8] sm:$0xff]  ;;  %v227_v23 = vld [vmem:[%s904_s20 + $0x10] sm:$0xff] }
  0x11   : > { %787 = vmatprep.subr.bf16.mxu0 %v825_v3  ;;  %v264_v26 = vmul.f32 %v917_v21, %v225_v19  ;;  %v265_v27 = vmul.f32 %v917_v21, %v226_v20  ;;  %v228_v28 = vld [vmem:[%s904_s20 + $0x18] sm:$0xff]  ;;  %v266_v30 = vmul.f32 %v917_v21, %v227_v23  ;;  %v229_v32 = vld [vmem:[%s904_s20 + $0x20] sm:$0xff]  ;;  %v230_v38 = vld [vmem:[%s904_s20 + $0x28] sm:$0xff] }
  0x12   : > { %v267_v35 = vmul.f32 %v917_v21, %v228_v28  ;;  %v268_v39 = vmul.f32 %v917_v21, %v229_v32  ;;  %v231_v42 = vld [vmem:[%s904_s20 + $0x30] sm:$0xff]  ;;  %v269_v43 = vmul.f32 %v917_v21, %v230_v38  ;;  %v232_v47 = vld [vmem:[%s904_s20 + $0x38] sm:$0xff]  ;;  %v233_v51 = vld [vmem:[%s904_s20 + $0x40] sm:$0xff] }
  0x13   : > { %v944_v36 = vadd.f32 %v932_v29, %v264_v26  ;;  %v947_v37 = vadd.f32 %v932_v29, %v265_v27  ;;  %v952_v40 = vadd.f32 %v932_v29, %v266_v30  ;;  %v270_v48 = vmul.f32 %v917_v21, %v231_v42  ;;  %v234_v56 = vld [vmem:[%s904_s20 + $0x48] sm:$0xff]  ;;  %v235_v61 = vld [vmem:[%s904_s20 + $0x50] sm:$0xff]  ;;  %v236_v2 = vld [vmem:[%s904_s20 + $0x58] sm:$0xff] }
  0x14   : > { %789 = vmatpush3.bf16.msra.mxu0 %v788_v13  ;;  %v957_v44 = vadd.f32 %v932_v29, %v267_v35  ;;  %v964_v49 = vadd.f32 %v932_v29, %v268_v39  ;;  %v271_v52 = vmul.f32 %v917_v21, %v232_v47  ;;  %v970_v53 = vadd.f32 %v932_v29, %v269_v43  ;;  %v237_v7 = vld [vmem:[%s904_s20 + $0x60] sm:$0xff]  ;;  %v238_v12 = vld [vmem:[%s904_s20 + $0x68] sm:$0xff]  ;;  %v239_v17 = vld [vmem:[%s904_s20 + $0x70] sm:$0xff] }
  0x15   : > { %790 = vmatprep.subr.bf16.mxu0 %v825_v3  ;;  %v335_v45 = vmax.f32 %v944_v36, 0.0  ;;  %v336_v46 = vmax.f32 %v947_v37, 0.0  ;;  %v337_v50 = vmax.f32 %v952_v40, 0.0  ;;  %v272_v57 = vmul.f32 %v917_v21, %v233_v51  ;;  %v240_v23 = vld [vmem:[%s904_s20 + $0x78] sm:$0xff]  ;;  %v241_v28 = vld [vmem:[%s904_s20 + $0x80] sm:$0xff]  ;;  %v242_v34 = vld [vmem:[%s904_s20 + $0x88] sm:$0xff] }
  0x16   : > { %v338_v54 = vmax.f32 %v957_v44, 0.0  ;;  %v980_v58 = vadd.f32 %v932_v29, %v270_v48  ;;  %v339_v59 = vmax.f32 %v964_v49, 0.0  ;;  %v273_v62 = vmul.f32 %v917_v21, %v234_v56  ;;  %v243_v42 = vld [vmem:[%s904_s20 + $0x90] sm:$0xff] }
  0x17   : > { %v367_v55 = vadd.f32 %v336_v46, %v335_v45  ;;  %v988_v63 = vadd.f32 %v932_v29, %v271_v52  ;;  %v340_v0 = vmax.f32 %v970_v53, 0.0  ;;  %v996_v4 = vadd.f32 %v932_v29, %v272_v57  ;;  %v244_v52 = vld [vmem:[%s904_s20 + $0x98] sm:$0xff] }
  0x18   : > { %792 = vmatpush3.bf16.msra.mxu0 %v791_v16  ;;  %v341_v5 = vmax.f32 %v980_v58, 0.0  ;;  %v275_v8 = vmul.f32 %v917_v21, %v236_v2  ;;  %v1004_v9 = vadd.f32 %v932_v29, %v273_v62  ;;  %v276_v13 = vmul.f32 %v917_v21, %v237_v7 }
  0x19   : > { %793 = vmatprep.subr.bf16.mxu0 %v825_v3  ;;  %v368_v60 = vadd.f32 %v367_v55, %v337_v50  ;;  %v342_v10 = vmax.f32 %v988_v63, 0.0  ;;  %v343_v15 = vmax.f32 %v996_v4, 0.0  ;;  %v277_v18 = vmul.f32 %v917_v21, %v238_v12 }
  0x1a   : > { %v1020_v19 = vadd.f32 %v932_v29, %v275_v8  ;;  %v344_v20 = vmax.f32 %v1004_v9, 0.0  ;;  %v278_v24 = vmul.f32 %v917_v21, %v239_v17  ;;  %v1028_v25 = vadd.f32 %v932_v29, %v276_v13  ;;  %v247_v13 = vld [vmem:[%s904_s20 + $0xb0] sm:$0xff] }
  0x1b   : > { %v369_v1 = vadd.f32 %v368_v60, %v338_v54  ;;  %v279_v30 = vmul.f32 %v917_v21, %v240_v23  ;;  %v280_v35 = vmul.f32 %v917_v21, %v241_v28  ;;  %v281_v43 = vmul.f32 %v917_v21, %v242_v34  ;;  %v248_v23 = vld [vmem:[%s904_s20 + $0xb8] sm:$0xff] }
  0x1c   : > { %795 = vmatpush3.bf16.msra.mxu0 %v794_v22  ;;  %v346_v32 = vmax.f32 %v1020_v19, 0.0  ;;  %v1044_v38 = vadd.f32 %v932_v29, %v278_v24  ;;  %v347_v39 = vmax.f32 %v1028_v25, 0.0  ;;  %v282_v55 = vmul.f32 %v917_v21, %v243_v42 }
  0x1d   : > { %796 = vmatprep.subr.bf16.mxu0 %v825_v3  ;;  %v370_v6 = vadd.f32 %v369_v1, %v339_v59  ;;  %v1052_v47 = vadd.f32 %v932_v29, %v279_v30  ;;  %v1060_v56 = vadd.f32 %v932_v29, %v280_v35  ;;  %v283_v62 = vmul.f32 %v917_v21, %v244_v52 }
  0x1e   : > { %v349_v57 = vmax.f32 %v1044_v38, 0.0  ;;  %v1068_v1 = vadd.f32 %v932_v29, %v281_v43  ;;  %v1076_v8 = vadd.f32 %v932_v29, %v282_v55  ;;  %v286_v24 = vmul.f32 %v917_v21, %v247_v13  ;;  %v250_v43 = vld [vmem:[%s904_s20 + $0xc8] sm:$0xff] }
  0x1f   : > { %v371_v11 = vadd.f32 %v370_v6, %v340_v0  ;;  %v350_v2 = vmax.f32 %v1052_v47, 0.0  ;;  %v246_v6 = vld [vmem:[%s904_s20 + $0xa8] sm:$0xff]  ;;  %v1084_v17 = vadd.f32 %v932_v29, %v283_v62  ;;  %v287_v34 = vmul.f32 %v917_v21, %v248_v23 }
  0x20   : > { %798 = vmatpush3.bf16.msra.mxu0 %v797_v31  ;;  %v1036_v31 = vadd.f32 %v932_v29, %v277_v18  ;;  %v1315_v18 = vmax.f32 %v1068_v1, 0.0  ;;  %v1308_v28 = vmax.f32 %v1076_v8, 0.0  ;;  %v1108_v52 = vadd.f32 %v932_v29, %v286_v24  ;;  %v253_v24 = vld [vmem:[%s904_s20 + $0xe0] sm:$0xff] }
  0x21   : > { %799 = vmatprep.subr.bf16.mxu0 %v825_v3  ;;  %v274_v3 = vmul.f32 %v917_v21, %v235_v61  ;;  %v372_v16 = vadd.f32 %v371_v11, %v341_v5  ;;  %v245_v61 = vld [vmem:[%s904_s20 + $0xa0] sm:$0xff]  ;;  %v1316_v11 = vmax.f32 %v1060_v56, 0.0  ;;  %v289_v62 = vmul.f32 %v917_v21, %v250_v43  ;;  %v254_v43 = vld [vmem:[%s904_s20 + $0xe8] sm:$0xff] }
  0x22   : > { %v348_v48 = vmax.f32 %v1036_v31, 0.0  ;;  %v284_v7 = vmul.f32 %v917_v21, %v245_v61  ;;  %v251_v61 = vld [vmem:[%s904_s20 + $0xd0] sm:$0xff] }
  0x23   : > { %v1012_v14 = vadd.f32 %v932_v29, %v274_v3  ;;  %v373_v22 = vadd.f32 %v372_v16, %v342_v10  ;;  %v285_v16 = vmul.f32 %v917_v21, %v246_v6  ;;  %v290_v13 = vmul.f32 %v917_v21, %v251_v61 }
  0x24   : > { %801 = vmatpush3.bf16.msra.mxu0 %v800_v41 }
  0x25   : > { %v345_v26 = vmax.f32 %v1012_v14, 0.0  ;;  %v374_v27 = vadd.f32 %v373_v22, %v343_v15  ;;  %v1100_v35 = vadd.f32 %v932_v29, %v285_v16 }
  0x27   : > { %v375_v33 = vadd.f32 %v374_v27, %v344_v20  ;;  %v1092_v27 = vadd.f32 %v932_v29, %v284_v7  ;;  %v1307_v6 = vmax.f32 %v1100_v35, 0.0 }
  0x29   : > { %v376_v41 = vadd.f32 %v375_v33, %v345_v26  ;;  %v249_v33 = vld [vmem:[%s904_s20 + $0xc0] sm:$0xff]  ;;  %v1305_v55 = vmax.f32 %v1092_v27, 0.0 }
  0x2b   : > { %v377_v51 = vadd.f32 %v376_v41, %v346_v32  ;;  %v1306_v41 = vmax.f32 %v1084_v17, 0.0 }
  0x2d   : > { %v378_v60 = vadd.f32 %v377_v51, %v347_v39  ;;  %v288_v51 = vmul.f32 %v917_v21, %v249_v33  ;;  %v1132_v33 = vadd.f32 %v932_v29, %v289_v62  ;;  %v293_v62 = vmul.f32 %v917_v21, %v254_v43 }
  0x2f   : > { %v379_v3 = vadd.f32 %v378_v60, %v348_v48  ;;  %v1124_v16 = vadd.f32 %v932_v29, %v288_v51  ;;  %v292_v51 = vmul.f32 %v917_v21, %v253_v24  ;;  %v256_v24 = vld [vmem:[%s904_s20 + $0xf8] sm:$0xff] }
  0x30   : > { %v295_v43 = vmul.f32 %v917_v21, %v256_v24 }
  0x31   : > { %v380_v12 = vadd.f32 %v379_v3, %v349_v57  ;;  %v1116_v3 = vadd.f32 %v932_v29, %v287_v34  ;;  %v1313_v61 = vmax.f32 %v1124_v16, 0.0 }
  0x33   : > { %v381_v22 = vadd.f32 %v380_v12, %v350_v2  ;;  %v252_v12 = vld [vmem:[%s904_s20 + $0xd8] sm:$0xff]  ;;  %v1310_v34 = vmax.f32 %v1116_v3, 0.0 }
  0x35   : > { %v382_v30 = vadd.f32 %v381_v22, %v1316_v11  ;;  %v1309_v22 = vmax.f32 %v1108_v52, 0.0 }
  0x37   : > { %v383_v42 = vadd.f32 %v382_v30, %v1315_v18  ;;  %v291_v30 = vmul.f32 %v917_v21, %v252_v12  ;;  %v255_v12 = vld [vmem:[%s904_s20 + $0xf0] sm:$0xff] }
  0x39   : > { %v384_v60 = vadd.f32 %v383_v42, %v1308_v28 }
  0x3b   : > { %v385_v7 = vadd.f32 %v384_v60, %v1306_v41  ;;  %v1140_v60 = vadd.f32 %v932_v29, %v290_v13  ;;  %v1311_v41 = vmax.f32 %v1132_v33, 0.0  ;;  %v294_v13 = vmul.f32 %v917_v21, %v255_v12 }
  0x3d   : > { %v386_v23 = vadd.f32 %v385_v7, %v1305_v55  ;;  %v1148_v55 = vadd.f32 %v932_v29, %v291_v30  ;;  %v1312_v28 = vmax.f32 %v1140_v60, 0.0  ;;  %v1163_v30 = vadd.f32 %v932_v29, %v293_v62 }
  0x3e   : > { %v1169_v12 = vadd.f32 %v932_v29, %v294_v13 }
  0x3f   : > { %v387_v42 = vadd.f32 %v386_v23, %v1307_v6  ;;  %v1156_v6 = vadd.f32 %v932_v29, %v292_v51  ;;  %v364_v21 = vmax.f32 %v1163_v30, 0.0 }
  0x40   : > { %v1317_v24 = vmax.f32 %v1169_v12, 0.0 }
  0x41   : > { %v388_v7 = vadd.f32 %v387_v42, %v1309_v22  ;;  %v1314_v22 = vmax.f32 %v1148_v55, 0.0  ;;  %v363_v51 = vmax.f32 %v1156_v6, 0.0 }
  0x43   : > { %v389_v23 = vadd.f32 %v388_v7, %v1310_v34 }
  0x45   : > { %v390_v42 = vadd.f32 %v389_v23, %v1313_v61  ;;  %v1175_v23 = vadd.f32 %v932_v29, %v295_v43 }
  0x47   : > { %v391_v7 = vadd.f32 %v390_v42, %v1311_v41  ;;  %v1318_v13 = vmax.f32 %v1175_v23, 0.0 }
  0x49   : > { %v392_v34 = vadd.f32 %v391_v7, %v1312_v28 }
  0x4b   : > { %v393_v62 = vadd.f32 %v392_v34, %v1314_v22 }
  0x4d   : > { %v394_v42 = vadd.f32 %v393_v62, %v363_v51  ;;  %v493_v62 = vld [vmem:[%s1303_s4] sm:$0x3] }
  0x4e   : > { %774 = vmatpush3.msk.msra.mxu1 %vm498_vm1, %v493_v62 }
  0x4f   : > { %v395_v41 = vadd.f32 %v394_v42, %v364_v21 }
  0x51   : > { %v396_v7 = vadd.f32 %v395_v41, %v1317_v24 }
  0x53   : > { %v397_v29 = vadd.f32 %v396_v7, %v1318_v13 }
  0x55   : > { %v398_v43 = vrot.slane %v397_v29, 4 }
  0x57   : > { %v399_v28 = vadd.f32 %v398_v43, %v397_v29 }
  0x59   : > { %v400_v61 = vrot.slane %v399_v28, 2 }
  0x5b   : > { %v401_v34 = vadd.f32 %v400_v61, %v399_v28 }
  0x5d   : > { %v402_v22 = vrot.slane %v401_v34, 1 }
  0x5f   : > { %v403_v18 = vadd.f32 %v402_v22, %v401_v34 }
  0x61   : > { %v405_v11 = vmul.f32 0.00390625, %v403_v18  ;;  %v578_v18 = vlaneseq }
  0x63   : > { %771 = vmatmul.mubr.f32.vlgmr.msra.gmra.mrb[0].mxu0 %v405_v11  ;;  %v579_v11 = vshrl.u32 %v578_v18, 7 }
  0x65   : > { %v580_v61 = vsub.s32 0, %v579_v11 }
 0x136   : > { %v488_v42 = vpop.f32.mrb[0].mxu0 }
 0x137   : > { %v492_v41 = vmax.f32 %v488_v42, 0.0  ;;  %v772_v24 = vpop.f32.mrb[1].mxu0 }
 0x139   : > { %776 = vmatmul.mubr.msk.f32.vlgmr.msra.gmra.mrb[0].mxu1 %vm494_vm2, %v492_v41 }
 0x20c   : > { %v568_v7 = vpop.f32.mrb[0].mxu1 }
 0x20d   : > { %v714_v29 = vmul.f32 -1.442695, %v568_v7  ;;  %v777_v43 = vpop.f32.mrb[1].mxu1 }
 0x20f   : > { %813 = vpow2.f32 %v714_v29 }
 0x219   : > { %v814_v28 = vpop.eup %813 }
 0x21a   : > { %v575_v22 = vadd.f32 1.0, %v814_v28 }
 0x21c   : > { %815 = vrcp.f32 %v575_v22 }
 0x226   : > { %v816_v34 = vpop.eup %815 }
 0x227   : > { %v581_v13 = vrot.slane %v816_v34, %v580_v61 }
 0x229   : > { %v582_v24 = vmul.f32 %v581_v13, %v335_v45  ;;  %v583_v62 = vmul.f32 %v581_v13, %v336_v46  ;;  %v584_v42 = vmul.f32 %v581_v13, %v337_v50  ;;  %v585_v41 = vmul.f32 %v581_v13, %v338_v54 }
 0x22a   : > { %v586_v7 = vmul.f32 %v581_v13, %v339_v59  ;;  %v587_v36 = vmul.f32 %v581_v13, %v340_v0  ;;  %v588_v45 = vmul.f32 %v581_v13, %v341_v5  ;;  %v589_v37 = vmul.f32 %v581_v13, %v342_v10 }
 0x22b   : > { %v590_v40 = vmul.f32 %v581_v13, %v343_v15  ;;  %v591_v44 = vmul.f32 %v581_v13, %v344_v20  ;;  %v592_v46 = vmul.f32 %v581_v13, %v345_v26  ;;  %v593_v49 = vmul.f32 %v581_v13, %v346_v32  ;;  %614 = vst [vmem:[%s1198_s17] sm:$0xff] %v582_v24 }
 0x22c   : > { %615 = vst [vmem:[%s1198_s17 + $0x8] sm:$0xff] %v583_v62  ;;  %616 = vst [vmem:[%s1198_s17 + $0x10] sm:$0xff] %v584_v42  ;;  %v594_v50 = vmul.f32 %v581_v13, %v347_v39  ;;  %v595_v53 = vmul.f32 %v581_v13, %v348_v48  ;;  %v596_v54 = vmul.f32 %v581_v13, %v349_v57  ;;  %v1319_v59 = vmax.f32 %v1060_v56, 0.0 }
 0x22d   : > { %617 = vst [vmem:[%s1198_s17 + $0x18] sm:$0xff] %v585_v41  ;;  %v597_v58 = vmul.f32 %v581_v13, %v350_v2  ;;  %618 = vst [vmem:[%s1198_s17 + $0x20] sm:$0xff] %v586_v7  ;;  %v1320_v0 = vmax.f32 %v1068_v1, 0.0  ;;  %v1321_v5 = vmax.f32 %v1076_v8, 0.0  ;;  %v1322_v10 = vmax.f32 %v1084_v17, 0.0 }
 0x22e   : > { %619 = vst [vmem:[%s1198_s17 + $0x28] sm:$0xff] %v587_v36  ;;  %620 = vst [vmem:[%s1198_s17 + $0x30] sm:$0xff] %v588_v45  ;;  %v598_v63 = vmul.f32 %v581_v13, %v1319_v59  ;;  %v1323_v15 = vmax.f32 %v1092_v27, 0.0  ;;  %v1324_v20 = vmax.f32 %v1100_v35, 0.0  ;;  %v1325_v26 = vmax.f32 %v1108_v52, 0.0 }
 0x22f   : > { %621 = vst [vmem:[%s1198_s17 + $0x38] sm:$0xff] %v589_v37  ;;  %v599_v4 = vmul.f32 %v581_v13, %v1320_v0  ;;  %v600_v9 = vmul.f32 %v581_v13, %v1321_v5  ;;  %v601_v14 = vmul.f32 %v581_v13, %v1322_v10  ;;  %622 = vst [vmem:[%s1198_s17 + $0x40] sm:$0xff] %v590_v40  ;;  %v1326_v32 = vmax.f32 %v1116_v3, 0.0 }
 0x230   : > { %623 = vst [vmem:[%s1198_s17 + $0x48] sm:$0xff] %v591_v44  ;;  %624 = vst [vmem:[%s1198_s17 + $0x50] sm:$0xff] %v592_v46  ;;  %v602_v19 = vmul.f32 %v581_v13, %v1323_v15  ;;  %v603_v25 = vmul.f32 %v581_v13, %v1324_v20  ;;  %v604_v31 = vmul.f32 %v581_v13, %v1325_v26  ;;  %v1327_v39 = vmax.f32 %v1124_v16, 0.0 }
 0x231   : > { %625 = vst [vmem:[%s1198_s17 + $0x58] sm:$0xff] %v593_v49  ;;  %v605_v38 = vmul.f32 %v581_v13, %v1326_v32  ;;  %626 = vst [vmem:[%s1198_s17 + $0x60] sm:$0xff] %v594_v50  ;;  %v1328_v48 = vmax.f32 %v1132_v33, 0.0  ;;  %v1329_v57 = vmax.f32 %v1140_v60, 0.0  ;;  %v1330_v2 = vmax.f32 %v1148_v55, 0.0 }
 0x232   : > { %627 = vst [vmem:[%s1198_s17 + $0x68] sm:$0xff] %v595_v53  ;;  %628 = vst [vmem:[%s1198_s17 + $0x70] sm:$0xff] %v596_v54  ;;  %v606_v47 = vmul.f32 %v581_v13, %v1327_v39  ;;  %v610_v17 = vmul.f32 %v581_v13, %v363_v51  ;;  %v611_v27 = vmul.f32 %v581_v13, %v364_v21  ;;  %v1331_v35 = vmax.f32 %v1169_v12, 0.0 }
 0x233   : > { %629 = vst [vmem:[%s1198_s17 + $0x78] sm:$0xff] %v597_v58  ;;  %v607_v56 = vmul.f32 %v581_v13, %v1328_v48  ;;  %v608_v1 = vmul.f32 %v581_v13, %v1329_v57  ;;  %v609_v8 = vmul.f32 %v581_v13, %v1330_v2  ;;  %630 = vst [vmem:[%s1198_s17 + $0x80] sm:$0xff] %v598_v63  ;;  %v1332_v55 = vmax.f32 %v1175_v23, 0.0 }
 0x234   : > { %631 = vst [vmem:[%s1198_s17 + $0x88] sm:$0xff] %v599_v4  ;;  %632 = vst [vmem:[%s1198_s17 + $0x90] sm:$0xff] %v600_v9  ;;  %v612_v52 = vmul.f32 %v581_v13, %v1331_v35 }
 0x235   : > { %633 = vst [vmem:[%s1198_s17 + $0x98] sm:$0xff] %v601_v14  ;;  %v613_v3 = vmul.f32 %v581_v13, %v1332_v55  ;;  %634 = vst [vmem:[%s1198_s17 + $0xa0] sm:$0xff] %v602_v19 }
 0x236   : > { %635 = vst [vmem:[%s1198_s17 + $0xa8] sm:$0xff] %v603_v25  ;;  %636 = vst [vmem:[%s1198_s17 + $0xb0] sm:$0xff] %v604_v31 }
 0x237   : > { %637 = vst [vmem:[%s1198_s17 + $0xb8] sm:$0xff] %v605_v38  ;;  %638 = vst [vmem:[%s1198_s17 + $0xc0] sm:$0xff] %v606_v47 }
 0x238   : > { %639 = vst [vmem:[%s1198_s17 + $0xc8] sm:$0xff] %v607_v56  ;;  %640 = vst [vmem:[%s1198_s17 + $0xd0] sm:$0xff] %v608_v1 }
 0x239   : > { %641 = vst [vmem:[%s1198_s17 + $0xd8] sm:$0xff] %v609_v8  ;;  %642 = vst [vmem:[%s1198_s17 + $0xe0] sm:$0xff] %v610_v17 }
 0x23a   : > { %643 = vst [vmem:[%s1198_s17 + $0xe8] sm:$0xff] %v611_v27  ;;  %644 = vst [vmem:[%s1198_s17 + $0xf0] sm:$0xff] %v612_v52 }
 0x23b   : > { %645 = vst [vmem:[%s1198_s17 + $0xf8] sm:$0xff] %v613_v3 }
 0x23c PF: > { %s15_s18 = sadd.s32 1, %s823_s18  }
 0x23d   : > { %p12_p4 = scmp.ge.s32.totalorder %s15_s18, 4  }
 0x23f   :  { %14 = sbr.rel (!%p12_p4) target bundleno = 1 (0x1), region = 70 }

// kernel: vgg_block.3
= control target key start
LH: loop header
LB: loop body
LE: loop exit
PB: predicated region body
PF: predicated region fallthrough
CT: control target
= control target key end

     0   :  { %s2012_s15 = smov 0   ;;  %s3058_s0 = inlined_call_operand.vmem [shape: f32[2,16,16,4], index: 0, kind: input, shape index: {}]   ;;  %s3059_s1 = inlined_call_operand.vmem [shape: bf16[36,128], index: 1, kind: input, shape index: {}]   ;;  %s3060_s2 = inlined_call_operand.vmem [shape: f32[1,128], index: 2, kind: input, shape index: {}]   ;;  %s3061_s3 = inlined_call_operand.vmem [shape: f32[2,16,16,128], index: 3, kind: output, shape index: {0}]   ;;  %s3062_s4 = inlined_call_operand.vmem [shape: f32[2,2,128], index: 4, kind: output, shape index: {1}]  }
   0x1 LB: > { %s1851_s16 = sadd.s32 4294967295, %s1976_s15   ;;  %p1855_p0 = scmp.ge.s32.totalorder %s1976_s15, 1  ;;  %s1976_s15 = sphi %s2012_s15, %s15_s15  }
   0x2   : > { %p165_p1 = scmp.lt.s32.totalorder %s1976_s15, 3 }
   0x4   : > { %p166_p2 = pnand %p1855_p0, %p165_p1 }
   0x5   : > { %p2022_p3 = scmp.lt.s32.totalorder (!%p166_p2), %s1851_s16, 1  ;;  %vm242_vm0 = vcmask (!%p166_p2), 293888   ;;  %v1978_v0 = vmov (!%p166_p2), 0.0   ;;  %vm276_vm1 = vcmask (!%p166_p2), 31744   ;;  %vm278_vm2 = vcmask (!%p166_p2), 30720   ;;  %s1979_s22 = smov (!%p166_p2), 4  }
   0x6   : > { %169 = sbr.rel (%p166_p2) target bundleno = 869 (0x365), region = 32  ;;  %247 = vst.msk [vmem:[#allocation2 + $0x20] sm:$0xff] (!%p166_p2), %vm242_vm0, %v1978_v0  ;;  %248 = vst.msk [vmem:[#allocation2 + $0x28] sm:$0xff] (!%p166_p2), %vm242_vm0, %v1978_v0  ;;  %s1980_s23 = smov (!%p166_p2), 8   ;;  %vm428_vm3 = vcmask (!%p166_p2), 64544   ;;  %v1967_v49 = vld [vmem:[%s3059_s1] sm:$0xff] (!%p166_p2)  }
   0x7   : > { %243 = vst.msk [vmem:[#allocation2] sm:$0xff] (!%p166_p2), %vm242_vm0, %v1978_v0  ;;  %244 = vst.msk [vmem:[#allocation2 + $0x8] sm:$0xff] (!%p166_p2), %vm242_vm0, %v1978_v0  ;;  %s1981_s24 = smov (!%p166_p2), 12   ;;  %s1982_s25 = smov (!%p166_p2), 16   ;;  %1904 = vmatprep.subr.bf16.mxu0 (!%p166_p2), %v1967_v49  ;;  %1942 = vmatprep.subr.bf16.mxu1 (!%p166_p2), %v1967_v49  ;;  %v1968_v52 = vld [vmem:[%s3059_s1 + $0x8] sm:$0xff] (!%p166_p2)   ;;  %vm1460_vm4 = vcmask (!%p166_p2), 1041408  }
   0x8   : > { %245 = vst.msk [vmem:[#allocation2 + $0x10] sm:$0xff] (!%p166_p2), %vm242_vm0, %v1978_v0  ;;  %246 = vst.msk [vmem:[#allocation2 + $0x18] sm:$0xff] (!%p166_p2), %vm242_vm0, %v1978_v0  ;;  %s1983_s26 = smov (!%p166_p2), 20   ;;  %s1984_s27 = smov (!%p166_p2), 24   ;;  %1905 = vmatpush3.bf16.msra.mxu0 (!%p166_p2), %v1967_v49  ;;  %1945 = vmatpush3.bf16.msra.mxu1 (!%p166_p2), %v1967_v49  ;;  %vm551_vm5 = vcmask (!%p166_p2), 97344   ;;  %vm549_vm6 = vcmask (!%p166_p2), 97345  }
   0x9   : > { %249 = vst.msk [vmem:[#allocation2 + $0x30] sm:$0xff] (!%p166_p2), %vm242_vm0, %v1978_v0  ;;  %250 = vst.msk [vmem:[#allocation2 + $0x38] sm:$0xff] (!%p166_p2), %vm242_vm0, %v1978_v0  ;;  %s1985_s6 = smov (!%p166_p2), 28   ;;  %1906 = vmatprep.subr.bf16.mxu0 (!%p166_p2), %v1968_v52  ;;  %1943 = vmatprep.subr.bf16.mxu1 (!%p166_p2), %v1968_v52  ;;  %v1969_v55 = vld [vmem:[%s3059_s1 + $0x10] ss:$0 sps:$4 sm:$0x33] (!%p166_p2)  }
   0xa   : > { %251 = vst.msk [vmem:[#allocation2 + $0x40] sm:$0xff] (!%p166_p2), %vm242_vm0, %v1978_v0  ;;  %252 = vst.msk [vmem:[#allocation2 + $0x48] sm:$0xff] (!%p166_p2), %vm242_vm0, %v1978_v0  ;;  %v1462_v56 = vsel (!%p166_p2), %vm1460_vm4, %v1969_v55, 0  ;;  %s1986_s9 = smov (!%p166_p2), 32   ;;  %vm681_vm7 = vcmask (!%p166_p2), 129120   ;;  %vm679_vm8 = vcmask (!%p166_p2), 130144  }
   0xb   : > { %253 = vst.msk [vmem:[#allocation2 + $0x50] sm:$0xff] (!%p166_p2), %vm242_vm0, %v1978_v0  ;;  %254 = vst.msk [vmem:[#allocation2 + $0x58] sm:$0xff] (!%p166_p2), %vm242_vm0, %v1978_v0  ;;  %vm809_vm9 = vcmask (!%p166_p2), 162944   ;;  %vm940_vm10 = vcmask (!%p166_p2), 195744   ;;  %vm938_vm11 = vcmask (!%p166_p2), 195745   ;;  %vm1064_vm12 = vcmask (!%p166_p2), 227520  }
   0xc   : > { %255 = vst.msk [vmem:[#allocation2 + $0x60] sm:$0xff] (!%p166_p2), %vm242_vm0, %v1978_v0  ;;  %256 = vst.msk [vmem:[#allocation2 + $0x68] sm:$0xff] (!%p166_p2), %vm242_vm0, %v1978_v0  ;;  %1907 = vmatpush3.bf16.msra.mxu0 (!%p166_p2), %v1968_v52  ;;  %1946 = vmatpush3.bf16.msra.mxu1 (!%p166_p2), %v1968_v52  ;;  %vm1062_vm13 = vcmask (!%p166_p2), 228544   ;;  %vm1184_vm14 = vcmask (!%p166_p2), 261344   ;;  %vm1307_vm15 = vcmask (!%p166_p2), 294144  }
   0xd   : > { %257 = vst.msk [vmem:[#allocation2 + $0x70] sm:$0xff] %vm242_vm0, %v1978_v0  ;;  %258 = vst.msk [vmem:[#allocation2 + $0x78] sm:$0xff] %vm242_vm0, %v1978_v0  ;;  %s3065_s16 = smov (!%p2022_p3, %s1851_s16), 1  ;;  %1948 = vmatprep.subr.msk.bf16.mxu0 %vm1460_vm4, %v1969_v55  ;;  %1949 = vmatprep.subr.msk.bf16.mxu1 %vm1460_vm4, %v1969_v55 }
   0xe   : > { %259 = vst.msk [vmem:[#allocation2 + $0x80] sm:$0xff] %vm242_vm0, %v1978_v0  ;;  %260 = vst.msk [vmem:[#allocation2 + $0x88] sm:$0xff] %vm242_vm0, %v1978_v0  ;;  %s1883_s18 = sshll.u32 %s3065_s16, 8  ;;  %s1860_s17 = sshll.u32 %s3065_s16, 1 }
   0xf   : > { %261 = vst.msk [vmem:[#allocation2 + $0x90] sm:$0xff] %vm242_vm0, %v1978_v0  ;;  %262 = vst.msk [vmem:[#allocation2 + $0x98] sm:$0xff] %vm242_vm0, %v1978_v0  ;;  %s2070_s21 = scalar_lea.vmem %s3058_s0, %s1883_s18  ;;  %s2927_s14 = scalar_lea.vmem %s3061_s3, %s1883_s18 }
  0x10   : > { %263 = vst.msk [vmem:[#allocation2 + $0xa0] sm:$0xff] %vm242_vm0, %v1978_v0  ;;  %264 = vst.msk [vmem:[#allocation2 + $0xa8] sm:$0xff] %vm242_vm0, %v1978_v0  ;;  %v2073_v1 = vld [vmem:[%s2070_s21 + $0x10] sm:$0xff]  ;;  %v2076_v2 = vld [vmem:[%s2070_s21] sm:$0xff]  ;;  %1909 = vmatpush3.bf16.msra.mxu0 %v1462_v56  ;;  %1947 = vmatpush3.bf16.msra.mxu1 %v1462_v56  ;;  %s208_s20 = scalar_lea.vmem %s3062_s4, %s1860_s17 }
  0x11   : > { %265 = vst.msk [vmem:[#allocation2 + $0xb0] sm:$0xff] %vm242_vm0, %v1978_v0  ;;  %266 = vst.msk [vmem:[#allocation2 + $0xb8] sm:$0xff] %vm242_vm0, %v1978_v0  ;;  %v2079_v3 = vld [vmem:[%s2070_s21 + $0x18] sm:$0xff]  ;;  %342 = vrot.lane.b32.xlu1 %v2073_v1, %s1979_s22  ;;  %338 = vrot.lane.b32.xlu0 %v2076_v2, %s1979_s22  ;;  %v2086_v4 = vld [vmem:[%s2070_s21 + $0x8] sm:$0xff] }
  0x12   : > { %267 = vst.msk [vmem:[#allocation2 + $0xc0] sm:$0xff] %vm242_vm0, %v1978_v0  ;;  %268 = vst.msk [vmem:[#allocation2 + $0xc8] sm:$0xff] %vm242_vm0, %v1978_v0  ;;  %v2089_v5 = vld [vmem:[%s2070_s21 + $0x28] sm:$0xff]  ;;  %v2098_v6 = vld [vmem:[%s2070_s21 + $0x20] sm:$0xff] }
  0x13   : > { %269 = vst.msk [vmem:[#allocation2 + $0xd0] sm:$0xff] %vm242_vm0, %v1978_v0  ;;  %270 = vst.msk [vmem:[#allocation2 + $0xd8] sm:$0xff] %vm242_vm0, %v1978_v0  ;;  %v2101_v7 = vld [vmem:[%s2070_s21 + $0x38] sm:$0xff]  ;;  %v2104_v8 = vld [vmem:[%s2070_s21 + $0x30] sm:$0xff] }
  0x14   : > { %271 = vst.msk [vmem:[#allocation2 + $0xe0] sm:$0xff] %vm242_vm0, %v1978_v0  ;;  %272 = vst.msk [vmem:[#allocation2 + $0xe8] sm:$0xff] %vm242_vm0, %v1978_v0  ;;  %v2111_v9 = vld [vmem:[%s2070_s21 + $0x48] sm:$0xff]  ;;  %v2114_v10 = vld [vmem:[%s2070_s21 + $0x40] sm:$0xff] }
  0x15   : > { %273 = vst.msk [vmem:[#allocation2 + $0xf0] sm:$0xff] %vm242_vm0, %v1978_v0  ;;  %274 = vst.msk [vmem:[#allocation2 + $0xf8] sm:$0xff] %vm242_vm0, %v1978_v0  ;;  %v2117_v11 = vld [vmem:[%s2070_s21 + $0x58] sm:$0xff]  ;;  %v2126_v12 = vld [vmem:[%s2070_s21 + $0x50] sm:$0xff]  ;;  %344 = vrot.lane.b32.xlu1 %v2079_v3, %s1979_s22  ;;  %340 = vrot.lane.b32.xlu0 %v2086_v4, %s1979_s22 }
  0x16   : > { %280 = vst.msk [vmem:[#allocation2 + $0x21] sm:$0xff] %vm276_vm1, %v2073_v1  ;;  %277 = vst.msk [vmem:[#allocation2 + $0x11] sm:$0xff] %vm276_vm1, %v2076_v2  ;;  %v2129_v13 = vld [vmem:[%s2070_s21 + $0x68] sm:$0xff]  ;;  %v2132_v14 = vld [vmem:[%s2070_s21 + $0x60] sm:$0xff] }
  0x17   : > { %281 = vst.msk [vmem:[#allocation2 + $0x29] sm:$0x7f] %vm278_vm2, %v2079_v3  ;;  %279 = vst.msk [vmem:[#allocation2 + $0x19] sm:$0x7f] %vm278_vm2, %v2086_v4  ;;  %v2145_v15 = vld [vmem:[%s2070_s21 + $0x78] sm:$0xff]  ;;  %v2148_v16 = vld [vmem:[%s2070_s21 + $0x70] sm:$0xff] }
  0x18   : > { %283 = vst.msk [vmem:[#allocation2 + $0x39] sm:$0x7f] %vm278_vm2, %v2089_v5  ;;  %285 = vst.msk [vmem:[#allocation2 + $0x49] sm:$0x7f] %vm278_vm2, %v2101_v7  ;;  %v2157_v17 = vld [vmem:[%s2070_s21 + $0x88] sm:$0xff]  ;;  %v2160_v18 = vld [vmem:[%s2070_s21 + $0x80] sm:$0xff] }
  0x19   : > { %282 = vst.msk [vmem:[#allocation2 + $0x31] sm:$0xff] %vm276_vm1, %v2098_v6  ;;  %284 = vst.msk [vmem:[#allocation2 + $0x41] sm:$0xff] %vm276_vm1, %v2104_v8  ;;  %v2163_v19 = vld [vmem:[%s2070_s21 + $0x98] sm:$0xff]  ;;  %v2170_v20 = vld [vmem:[%s2070_s21 + $0x90] sm:$0xff]  ;;  %348 = vrot.lane.b32.xlu1 %v2089_v5, %s1979_s22  ;;  %346 = vrot.lane.b32.xlu0 %v2098_v6, %s1979_s22 }
  0x1a   : > { %286 = vst.msk [vmem:[#allocation2 + $0x51] sm:$0xff] %vm276_vm1, %v2114_v10  ;;  %288 = vst.msk [vmem:[#allocation2 + $0x61] sm:$0xff] %vm276_vm1, %v2126_v12  ;;  %v2173_v21 = vld [vmem:[%s2070_s21 + $0xa8] sm:$0xff]  ;;  %v2176_v22 = vld [vmem:[%s2070_s21 + $0xa0] sm:$0xff] }
  0x1b   : > { %287 = vst.msk [vmem:[#allocation2 + $0x59] sm:$0x7f] %vm278_vm2, %v2111_v9  ;;  %289 = vst.msk [vmem:[#allocation2 + $0x69] sm:$0x7f] %vm278_vm2, %v2117_v11  ;;  %v2185_v23 = vld [vmem:[%s2070_s21 + $0xb8] sm:$0xff]  ;;  %v2188_v24 = vld [vmem:[%s2070_s21 + $0xb0] sm:$0xff] }
  0x1c   : > { %290 = vst.msk [vmem:[#allocation2 + $0x71] sm:$0xff] %vm276_vm1, %v2132_v14  ;;  %292 = vst.msk [vmem:[#allocation2 + $0x81] sm:$0xff] %vm276_vm1, %v2148_v16  ;;  %v2191_v25 = vld [vmem:[%s2070_s21 + $0xc8] sm:$0xff]  ;;  %v2204_v26 = vld [vmem:[%s2070_s21 + $0xc0] sm:$0xff] }
  0x1d   : > { %291 = vst.msk [vmem:[#allocation2 + $0x79] sm:$0x7f] %vm278_vm2, %v2129_v13  ;;  %293 = vst.msk [vmem:[#allocation2 + $0x89] sm:$0x7f] %vm278_vm2, %v2145_v15  ;;  %v2207_v27 = vld [vmem:[%s2070_s21 + $0xd8] sm:$0xff]  ;;  %v2216_v28 = vld [vmem:[%s2070_s21 + $0xd0] sm:$0xff]  ;;  %352 = vrot.lane.b32.xlu1 %v2101_v7, %s1979_s22  ;;  %350 = vrot.lane.b32.xlu0 %v2104_v8, %s1979_s22 }
  0x1e   : > { %294 = vst.msk [vmem:[#allocation2 + $0x91] sm:$0xff] %vm276_vm1, %v2160_v18  ;;  %296 = vst.msk [vmem:[#allocation2 + $0xa1] sm:$0xff] %vm276_vm1, %v2170_v20  ;;  %v2219_v29 = vld [vmem:[%s2070_s21 + $0xe8] sm:$0xff]  ;;  %v2222_v30 = vld [vmem:[%s2070_s21 + $0xe0] sm:$0xff] }
  0x1f   : > { %295 = vst.msk [vmem:[#allocation2 + $0x99] sm:$0x7f] %vm278_vm2, %v2157_v17  ;;  %297 = vst.msk [vmem:[#allocation2 + $0xa9] sm:$0x7f] %vm278_vm2, %v2163_v19 }
  0x20   : > { %298 = vst.msk [vmem:[#allocation2 + $0xb1] sm:$0xff] %vm276_vm1, %v2176_v22  ;;  %300 = vst.msk [vmem:[#allocation2 + $0xc1] sm:$0xff] %vm276_vm1, %v2188_v24 }
  0x21   : > { %299 = vst.msk [vmem:[#allocation2 + $0xb9] sm:$0x7f] %vm278_vm2, %v2173_v21  ;;  %301 = vst.msk [vmem:[#allocation2 + $0xc9] sm:$0x7f] %vm278_vm2, %v2185_v23  ;;  %356 = vrot.lane.b32.xlu1 %v2111_v9, %s1979_s22  ;;  %354 = vrot.lane.b32.xlu0 %v2114_v10, %s1979_s22 }
  0x22   : > { %303 = vst.msk [vmem:[#allocation2 + $0xd9] sm:$0x7f] %vm278_vm2, %v2191_v25  ;;  %305 = vst.msk [vmem:[#allocation2 + $0xe9] sm:$0x7f] %vm278_vm2, %v2207_v27 }
  0x23   : > { %302 = vst.msk [vmem:[#allocation2 + $0xd1] sm:$0xff] %vm276_vm1, %v2204_v26  ;;  %304 = vst.msk [vmem:[#allocation2 + $0xe1] sm:$0xff] %vm276_vm1, %v2216_v28 }
  0x24   : > { %306 = vst.msk [vmem:[#allocation2 + $0xf1] sm:$0xff] %vm276_vm1, %v2222_v30  ;;  %vm1305_vm1 = vcmask 294145  }
  0x25   : > { %307 = vst.msk [vmem:[#allocation2 + $0xf9] sm:$0x7f] %vm278_vm2, %v2219_v29  ;;  %360 = vrot.lane.b32.xlu1 %v2117_v11, %s1979_s22  ;;  %358 = vrot.lane.b32.xlu0 %v2126_v12, %s1979_s22 }
  0x29   : > { %364 = vrot.lane.b32.xlu1 %v2129_v13, %s1979_s22  ;;  %362 = vrot.lane.b32.xlu0 %v2132_v14, %s1979_s22 }
  0x2d   : > { %368 = vrot.lane.b32.xlu1 %v2145_v15, %s1979_s22  ;;  %366 = vrot.lane.b32.xlu0 %v2148_v16, %s1979_s22 }
  0x31   : > { %372 = vrot.lane.b32.xlu1 %v2157_v17, %s1979_s22  ;;  %370 = vrot.lane.b32.xlu0 %v2160_v18, %s1979_s22 }
  0x35   : > { %376 = vrot.lane.b32.xlu1 %v2163_v19, %s1979_s22  ;;  %374 = vrot.lane.b32.xlu0 %v2170_v20, %s1979_s22 }
  0x39   : > { %380 = vrot.lane.b32.xlu1 %v2173_v21, %s1979_s22  ;;  %378 = vrot.lane.b32.xlu0 %v2176_v22, %s1979_s22 }
  0x3d   : > { %384 = vrot.lane.b32.xlu1 %v2185_v23, %s1979_s22  ;;  %382 = vrot.lane.b32.xlu0 %v2188_v24, %s1979_s22 }
  0x41   : > { %388 = vrot.lane.b32.xlu1 %v2191_v25, %s1979_s22  ;;  %386 = vrot.lane.b32.xlu0 %v2204_v26, %s1979_s22 }
  0x45   : > { %392 = vrot.lane.b32.xlu1 %v2207_v27, %s1979_s22  ;;  %390 = vrot.lane.b32.xlu0 %v2216_v28, %s1979_s22 }
  0x49   : > { %396 = vrot.lane.b32.xlu1 %v2219_v29, %s1979_s22  ;;  %394 = vrot.lane.b32.xlu0 %v2222_v30, %s1979_s22 }
  0x4d   : > { %461 = vrot.lane.b32.xlu1 %v2086_v4, %s1980_s23  ;;  %459 = vrot.lane.b32.xlu0 %v2076_v2, %s1980_s23 }
  0x51   : > { %465 = vrot.lane.b32.xlu1 %v2079_v3, %s1980_s23  ;;  %463 = vrot.lane.b32.xlu0 %v2073_v1, %s1980_s23 }
  0x55   : > { %469 = vrot.lane.b32.xlu1 %v2089_v5, %s1980_s23  ;;  %467 = vrot.lane.b32.xlu0 %v2098_v6, %s1980_s23 }
  0x59   : > { %473 = vrot.lane.b32.xlu1 %v2101_v7, %s1980_s23  ;;  %471 = vrot.lane.b32.xlu0 %v2104_v8, %s1980_s23 }
  0x5d   : > { %477 = vrot.lane.b32.xlu1 %v2111_v9, %s1980_s23  ;;  %475 = vrot.lane.b32.xlu0 %v2114_v10, %s1980_s23 }
  0x61   : > { %481 = vrot.lane.b32.xlu1 %v2117_v11, %s1980_s23  ;;  %479 = vrot.lane.b32.xlu0 %v2126_v12, %s1980_s23 }
  0x65   : > { %485 = vrot.lane.b32.xlu1 %v2129_v13, %s1980_s23  ;;  %483 = vrot.lane.b32.xlu0 %v2132_v14, %s1980_s23 }
  0x69   : > { %489 = vrot.lane.b32.xlu1 %v2145_v15, %s1980_s23  ;;  %487 = vrot.lane.b32.xlu0 %v2148_v16, %s1980_s23 }
  0x6d   : > { %493 = vrot.lane.b32.xlu1 %v2157_v17, %s1980_s23  ;;  %491 = vrot.lane.b32.xlu0 %v2160_v18, %s1980_s23 }
  0x71   : > { %497 = vrot.lane.b32.xlu1 %v2163_v19, %s1980_s23  ;;  %495 = vrot.lane.b32.xlu0 %v2170_v20, %s1980_s23 }
  0x75   : > { %501 = vrot.lane.b32.xlu1 %v2173_v21, %s1980_s23  ;;  %499 = vrot.lane.b32.xlu0 %v2176_v22, %s1980_s23 }
  0x79   : > { %505 = vrot.lane.b32.xlu1 %v2185_v23, %s1980_s23  ;;  %503 = vrot.lane.b32.xlu0 %v2188_v24, %s1980_s23 }
  0x7d   : > { %509 = vrot.lane.b32.xlu1 %v2191_v25, %s1980_s23  ;;  %507 = vrot.lane.b32.xlu0 %v2204_v26, %s1980_s23 }
  0x81   : > { %513 = vrot.lane.b32.xlu1 %v2207_v27, %s1980_s23  ;;  %511 = vrot.lane.b32.xlu0 %v2216_v28, %s1980_s23 }
  0x83   : > { %v343_v31 = vpop.permute.xlu1 %342  ;;  %v339_v32 = vpop.permute.xlu0 %338 }
  0x84   : > { %431 = vst.msk [vmem:[#allocation2 + $0x20] sm:$0xff] %vm428_vm3, %v343_v31  ;;  %429 = vst.msk [vmem:[#allocation2 + $0x10] sm:$0xff] %vm428_vm3, %v339_v32 }
  0x85   : > { %517 = vrot.lane.b32.xlu1 %v2219_v29, %s1980_s23  ;;  %515 = vrot.lane.b32.xlu0 %v2222_v30, %s1980_s23 }
  0x87   : > { %v345_v33 = vpop.permute.xlu1 %344  ;;  %v341_v34 = vpop.permute.xlu0 %340 }
  0x88   : > { %432 = vst.msk [vmem:[#allocation2 + $0x28] sm:$0xff] %vm428_vm3, %v345_v33  ;;  %430 = vst.msk [vmem:[#allocation2 + $0x18] sm:$0xff] %vm428_vm3, %v341_v34 }
  0x89   : > { %585 = vrot.lane.b32.xlu1 %v2086_v4, %s1981_s24  ;;  %583 = vrot.lane.b32.xlu0 %v2076_v2, %s1981_s24 }
  0x8b   : > { %v349_v35 = vpop.permute.xlu1 %348  ;;  %v347_v36 = vpop.permute.xlu0 %346 }
  0x8c   : > { %434 = vst.msk [vmem:[#allocation2 + $0x38] sm:$0xff] %vm428_vm3, %v349_v35  ;;  %433 = vst.msk [vmem:[#allocation2 + $0x30] sm:$0xff] %vm428_vm3, %v347_v36 }
  0x8d   : > { %589 = vrot.lane.b32.xlu1 %v2079_v3, %s1981_s24  ;;  %587 = vrot.lane.b32.xlu0 %v2073_v1, %s1981_s24 }
  0x8f   : > { %v353_v37 = vpop.permute.xlu1 %352  ;;  %v351_v38 = vpop.permute.xlu0 %350 }
  0x90   : > { %436 = vst.msk [vmem:[#allocation2 + $0x48] sm:$0xff] %vm428_vm3, %v353_v37  ;;  %435 = vst.msk [vmem:[#allocation2 + $0x40] sm:$0xff] %vm428_vm3, %v351_v38 }
  0x91   : > { %715 = vrot.lane.b32.xlu1 %v2086_v4, %s1982_s25  ;;  %713 = vrot.lane.b32.xlu0 %v2076_v2, %s1982_s25 }
  0x93   : > { %v357_v39 = vpop.permute.xlu1 %356  ;;  %v355_v40 = vpop.permute.xlu0 %354 }
  0x94   : > { %438 = vst.msk [vmem:[#allocation2 + $0x58] sm:$0xff] %vm428_vm3, %v357_v39  ;;  %437 = vst.msk [vmem:[#allocation2 + $0x50] sm:$0xff] %vm428_vm3, %v355_v40 }
  0x95   : > { %719 = vrot.lane.b32.xlu1 %v2079_v3, %s1982_s25  ;;  %717 = vrot.lane.b32.xlu0 %v2073_v1, %s1982_s25 }
  0x97   : > { %v361_v41 = vpop.permute.xlu1 %360  ;;  %v359_v42 = vpop.permute.xlu0 %358 }
  0x98   : > { %440 = vst.msk [vmem:[#allocation2 + $0x68] sm:$0xff] %vm428_vm3, %v361_v41  ;;  %439 = vst.msk [vmem:[#allocation2 + $0x60] sm:$0xff] %vm428_vm3, %v359_v42 }
  0x99   : > { %844 = vrot.lane.b32.xlu1 %v2086_v4, %s1983_s26  ;;  %842 = vrot.lane.b32.xlu0 %v2076_v2, %s1983_s26 }
  0x9b   : > { %v365_v43 = vpop.permute.xlu1 %364  ;;  %v363_v44 = vpop.permute.xlu0 %362 }
  0x9c   : > { %442 = vst.msk [vmem:[#allocation2 + $0x78] sm:$0xff] %vm428_vm3, %v365_v43  ;;  %441 = vst.msk [vmem:[#allocation2 + $0x70] sm:$0xff] %vm428_vm3, %v363_v44 }
  0x9d   : > { %848 = vrot.lane.b32.xlu1 %v2079_v3, %s1983_s26  ;;  %846 = vrot.lane.b32.xlu0 %v2073_v1, %s1983_s26 }
  0x9f   : > { %v369_v45 = vpop.permute.xlu1 %368  ;;  %v367_v46 = vpop.permute.xlu0 %366 }
  0xa0   : > { %444 = vst.msk [vmem:[#allocation2 + $0x88] sm:$0xff] %vm428_vm3, %v369_v45  ;;  %443 = vst.msk [vmem:[#allocation2 + $0x80] sm:$0xff] %vm428_vm3, %v367_v46 }
  0xa1   : > { %974 = vrot.lane.b32.xlu1 %v2079_v3, %s1984_s27  ;;  %972 = vrot.lane.b32.xlu0 %v2073_v1, %s1984_s27 }
  0xa3   : > { %v373_v47 = vpop.permute.xlu1 %372  ;;  %v371_v48 = vpop.permute.xlu0 %370 }
  0xa4   : > { %446 = vst.msk [vmem:[#allocation2 + $0x98] sm:$0xff] %vm428_vm3, %v373_v47  ;;  %445 = vst.msk [vmem:[#allocation2 + $0x90] sm:$0xff] %vm428_vm3, %v371_v48 }
  0xa5   : > { %978 = vrot.lane.b32.xlu1 %v2089_v5, %s1984_s27  ;;  %976 = vrot.lane.b32.xlu0 %v2098_v6, %s1984_s27 }
  0xa7   : > { %v377_v50 = vpop.permute.xlu1 %376  ;;  %v375_v51 = vpop.permute.xlu0 %374 }
  0xa8   : > { %448 = vst.msk [vmem:[#allocation2 + $0xa8] sm:$0xff] %vm428_vm3, %v377_v50  ;;  %447 = vst.msk [vmem:[#allocation2 + $0xa0] sm:$0xff] %vm428_vm3, %v375_v51 }
  0xa9   : > { %1096 = vrot.lane.b32.xlu1 %v2079_v3, %s1985_s6  ;;  %1094 = vrot.lane.b32.xlu0 %v2073_v1, %s1985_s6 }
  0xab   : > { %v381_v53 = vpop.permute.xlu1 %380  ;;  %v379_v54 = vpop.permute.xlu0 %378 }
  0xac   : > { %450 = vst.msk [vmem:[#allocation2 + $0xb8] sm:$0xff] %vm428_vm3, %v381_v53  ;;  %449 = vst.msk [vmem:[#allocation2 + $0xb0] sm:$0xff] %vm428_vm3, %v379_v54 }
  0xad   : > { %1100 = vrot.lane.b32.xlu1 %v2089_v5, %s1985_s6  ;;  %1098 = vrot.lane.b32.xlu0 %v2098_v6, %s1985_s6 }
  0xaf   : > { %v385_v57 = vpop.permute.xlu1 %384  ;;  %v383_v58 = vpop.permute.xlu0 %382 }
  0xb0   : > { %452 = vst.msk [vmem:[#allocation2 + $0xc8] sm:$0xff] %vm428_vm3, %v385_v57  ;;  %451 = vst.msk [vmem:[#allocation2 + $0xc0] sm:$0xff] %vm428_vm3, %v383_v58 }
  0xb1   : > { %1217 = vrot.lane.b32.xlu1 %v2079_v3, %s1986_s9  ;;  %1215 = vrot.lane.b32.xlu0 %v2073_v1, %s1986_s9 }
  0xb3   : > { %v389_v59 = vpop.permute.xlu1 %388  ;;  %v387_v60 = vpop.permute.xlu0 %386 }
  0xb4   : > { %454 = vst.msk [vmem:[#allocation2 + $0xd8] sm:$0xff] %vm428_vm3, %v389_v59  ;;  %453 = vst.msk [vmem:[#allocation2 + $0xd0] sm:$0xff] %vm428_vm3, %v387_v60 }
  0xb5   : > { %1221 = vrot.lane.b32.xlu1 %v2089_v5, %s1986_s9  ;;  %1219 = vrot.lane.b32.xlu0 %v2098_v6, %s1986_s9 }
  0xb7   : > { %v393_v61 = vpop.permute.xlu1 %392  ;;  %v391_v62 = vpop.permute.xlu0 %390 }
  0xb8   : > { %456 = vst.msk [vmem:[#allocation2 + $0xe8] sm:$0xff] %vm428_vm3, %v393_v61  ;;  %455 = vst.msk [vmem:[#allocation2 + $0xe0] sm:$0xff] %vm428_vm3, %v391_v62 }
  0xb9   : > { %593 = vrot.lane.b32.xlu1 %v2089_v5, %s1981_s24  ;;  %591 = vrot.lane.b32.xlu0 %v2098_v6, %s1981_s24 }
  0xbb   : > { %v397_v63 = vpop.permute.xlu1 %396  ;;  %v395_v0 = vpop.permute.xlu0 %394 }
  0xbc   : > { %458 = vst.msk [vmem:[#allocation2 + $0xf8] sm:$0xff] %vm428_vm3, %v397_v63  ;;  %457 = vst.msk [vmem:[#allocation2 + $0xf0] sm:$0xff] %vm428_vm3, %v395_v0 }
  0xbd   : > { %597 = vrot.lane.b32.xlu1 %v2101_v7, %s1981_s24  ;;  %595 = vrot.lane.b32.xlu0 %v2104_v8, %s1981_s24 }
  0xbf   : > { %v462_v1 = vpop.permute.xlu1 %461  ;;  %v460_v2 = vpop.permute.xlu0 %459 }
  0xc0   : > { %552 = vst.msk [vmem:[#allocation2 + $0x17] sm:$0xff] %vm551_vm5, %v462_v1 }
  0xc1   : > { %550 = vst.msk [vmem:[#allocation2 + $0xf] sm:$0xfe] %vm549_vm6, %v460_v2  ;;  %723 = vrot.lane.b32.xlu1 %v2089_v5, %s1982_s25  ;;  %721 = vrot.lane.b32.xlu0 %v2098_v6, %s1982_s25 }
  0xc3   : > { %v466_v3 = vpop.permute.xlu1 %465  ;;  %v464_v4 = vpop.permute.xlu0 %463 }
  0xc4   : > { %554 = vst.msk [vmem:[#allocation2 + $0x27] sm:$0xff] %vm551_vm5, %v466_v3 }
  0xc5   : > { %553 = vst.msk [vmem:[#allocation2 + $0x1f] sm:$0xfe] %vm549_vm6, %v464_v4  ;;  %727 = vrot.lane.b32.xlu1 %v2101_v7, %s1982_s25  ;;  %725 = vrot.lane.b32.xlu0 %v2104_v8, %s1982_s25 }
  0xc7   : > { %v470_v31 = vpop.permute.xlu1 %469  ;;  %v468_v32 = vpop.permute.xlu0 %467 }
  0xc8   : > { %556 = vst.msk [vmem:[#allocation2 + $0x37] sm:$0xff] %vm551_vm5, %v470_v31 }
  0xc9   : > { %555 = vst.msk [vmem:[#allocation2 + $0x2f] sm:$0xfe] %vm549_vm6, %v468_v32  ;;  %852 = vrot.lane.b32.xlu1 %v2089_v5, %s1983_s26  ;;  %850 = vrot.lane.b32.xlu0 %v2098_v6, %s1983_s26 }
  0xcb   : > { %v474_v33 = vpop.permute.xlu1 %473  ;;  %v472_v34 = vpop.permute.xlu0 %471 }
  0xcc   : > { %558 = vst.msk [vmem:[#allocation2 + $0x47] sm:$0xff] %vm551_vm5, %v474_v33 }
  0xcd   : > { %557 = vst.msk [vmem:[#allocation2 + $0x3f] sm:$0xfe] %vm549_vm6, %v472_v34  ;;  %856 = vrot.lane.b32.xlu1 %v2101_v7, %s1983_s26  ;;  %854 = vrot.lane.b32.xlu0 %v2104_v8, %s1983_s26 }
  0xcf   : > { %v478_v35 = vpop.permute.xlu1 %477  ;;  %v476_v36 = vpop.permute.xlu0 %475 }
  0xd0   : > { %560 = vst.msk [vmem:[#allocation2 + $0x57] sm:$0xff] %vm551_vm5, %v478_v35 }
  0xd1   : > { %559 = vst.msk [vmem:[#allocation2 + $0x4f] sm:$0xfe] %vm549_vm6, %v476_v36  ;;  %982 = vrot.lane.b32.xlu1 %v2101_v7, %s1984_s27  ;;  %980 = vrot.lane.b32.xlu0 %v2104_v8, %s1984_s27 }
  0xd3   : > { %v482_v5 = vpop.permute.xlu1 %481  ;;  %v480_v6 = vpop.permute.xlu0 %479 }
  0xd4   : > { %562 = vst.msk [vmem:[#allocation2 + $0x67] sm:$0xff] %vm551_vm5, %v482_v5 }
  0xd5   : > { %561 = vst.msk [vmem:[#allocation2 + $0x5f] sm:$0xfe] %vm549_vm6, %v480_v6  ;;  %986 = vrot.lane.b32.xlu1 %v2111_v9, %s1984_s27  ;;  %984 = vrot.lane.b32.xlu0 %v2114_v10, %s1984_s27 }
  0xd7   : > { %v486_v37 = vpop.permute.xlu1 %485  ;;  %v484_v38 = vpop.permute.xlu0 %483 }
  0xd8   : > { %564 = vst.msk [vmem:[#allocation2 + $0x77] sm:$0xff] %vm551_vm5, %v486_v37 }
  0xd9   : > { %563 = vst.msk [vmem:[#allocation2 + $0x6f] sm:$0xfe] %vm549_vm6, %v484_v38  ;;  %1104 = vrot.lane.b32.xlu1 %v2101_v7, %s1985_s6  ;;  %1102 = vrot.lane.b32.xlu0 %v2104_v8, %s1985_s6 }
  0xdb   : > { %v490_v39 = vpop.permute.xlu1 %489  ;;  %v488_v40 = vpop.permute.xlu0 %487 }
  0xdc   : > { %566 = vst.msk [vmem:[#allocation2 + $0x87] sm:$0xff] %vm551_vm5, %v490_v39 }
  0xdd   : > { %565 = vst.msk [vmem:[#allocation2 + $0x7f] sm:$0xfe] %vm549_vm6, %v488_v40  ;;  %1108 = vrot.lane.b32.xlu1 %v2111_v9, %s1985_s6  ;;  %1106 = vrot.lane.b32.xlu0 %v2114_v10, %s1985_s6 }
  0xdf   : > { %v494_v41 = vpop.permute.xlu1 %493  ;;  %v492_v42 = vpop.permute.xlu0 %491 }
  0xe0   : > { %568 = vst.msk [vmem:[#allocation2 + $0x97] sm:$0xff] %vm551_vm5, %v494_v41 }
  0xe1   : > { %567 = vst.msk [vmem:[#allocation2 + $0x8f] sm:$0xfe] %vm549_vm6, %v492_v42  ;;  %1225 = vrot.lane.b32.xlu1 %v2101_v7, %s1986_s9  ;;  %1223 = vrot.lane.b32.xlu0 %v2104_v8, %s1986_s9 }
  0xe3   : > { %v498_v43 = vpop.permute.xlu1 %497  ;;  %v496_v44 = vpop.permute.xlu0 %495 }
  0xe4   : > { %570 = vst.msk [vmem:[#allocation2 + $0xa7] sm:$0xff] %vm551_vm5, %v498_v43 }
  0xe5   : > { %569 = vst.msk [vmem:[#allocation2 + $0x9f] sm:$0xfe] %vm549_vm6, %v496_v44  ;;  %1229 = vrot.lane.b32.xlu1 %v2111_v9, %s1986_s9  ;;  %1227 = vrot.lane.b32.xlu0 %v2114_v10, %s1986_s9 }
  0xe7   : > { %v502_v45 = vpop.permute.xlu1 %501  ;;  %v500_v46 = vpop.permute.xlu0 %499 }
  0xe8   : > { %572 = vst.msk [vmem:[#allocation2 + $0xb7] sm:$0xff] %vm551_vm5, %v502_v45 }
  0xe9   : > { %571 = vst.msk [vmem:[#allocation2 + $0xaf] sm:$0xfe] %vm549_vm6, %v500_v46  ;;  %601 = vrot.lane.b32.xlu1 %v2111_v9, %s1981_s24  ;;  %599 = vrot.lane.b32.xlu0 %v2114_v10, %s1981_s24 }
  0xeb   : > { %v506_v7 = vpop.permute.xlu1 %505  ;;  %v504_v8 = vpop.permute.xlu0 %503 }
  0xec   : > { %574 = vst.msk [vmem:[#allocation2 + $0xc7] sm:$0xff] %vm551_vm5, %v506_v7 }
  0xed   : > { %573 = vst.msk [vmem:[#allocation2 + $0xbf] sm:$0xfe] %vm549_vm6, %v504_v8  ;;  %605 = vrot.lane.b32.xlu1 %v2117_v11, %s1981_s24  ;;  %603 = vrot.lane.b32.xlu0 %v2126_v12, %s1981_s24 }
  0xef   : > { %v510_v47 = vpop.permute.xlu1 %509  ;;  %v508_v48 = vpop.permute.xlu0 %507 }
  0xf0   : > { %576 = vst.msk [vmem:[#allocation2 + $0xd7] sm:$0xff] %vm551_vm5, %v510_v47 }
  0xf1   : > { %575 = vst.msk [vmem:[#allocation2 + $0xcf] sm:$0xfe] %vm549_vm6, %v508_v48  ;;  %731 = vrot.lane.b32.xlu1 %v2111_v9, %s1982_s25  ;;  %729 = vrot.lane.b32.xlu0 %v2114_v10, %s1982_s25 }
  0xf3   : > { %v514_v49 = vpop.permute.xlu1 %513  ;;  %v512_v50 = vpop.permute.xlu0 %511 }
  0xf4   : > { %578 = vst.msk [vmem:[#allocation2 + $0xe7] sm:$0xff] %vm551_vm5, %v514_v49 }
  0xf5   : > { %577 = vst.msk [vmem:[#allocation2 + $0xdf] sm:$0xfe] %vm549_vm6, %v512_v50  ;;  %735 = vrot.lane.b32.xlu1 %v2117_v11, %s1982_s25  ;;  %733 = vrot.lane.b32.xlu0 %v2126_v12, %s1982_s25 }
  0xf7   : > { %v518_v51 = vpop.permute.xlu1 %517  ;;  %v516_v52 = vpop.permute.xlu0 %515 }
  0xf8   : > { %580 = vst.msk [vmem:[#allocation2 + $0xf7] sm:$0xff] %vm551_vm5, %v518_v51 }
  0xf9   : > { %579 = vst.msk [vmem:[#allocation2 + $0xef] sm:$0xfe] %vm549_vm6, %v516_v52  ;;  %860 = vrot.lane.b32.xlu1 %v2111_v9, %s1983_s26  ;;  %858 = vrot.lane.b32.xlu0 %v2114_v10, %s1983_s26 }
  0xfb   : > { %v586_v53 = vpop.permute.xlu1 %585  ;;  %v584_v54 = vpop.permute.xlu0 %583 }
  0xfc   : > { %682 = vst.msk [vmem:[#allocation2 + $0x9] sm:$0x7f] %vm681_vm7, %v586_v53 }
  0xfd   : > { %680 = vst.msk [vmem:[#allocation2 + $0x1] sm:$0xff] %vm679_vm8, %v584_v54  ;;  %864 = vrot.lane.b32.xlu1 %v2117_v11, %s1983_s26  ;;  %862 = vrot.lane.b32.xlu0 %v2126_v12, %s1983_s26 }
  0xff   : > { %v590_v55 = vpop.permute.xlu1 %589  ;;  %v588_v56 = vpop.permute.xlu0 %587 }
 0x100   : > { %684 = vst.msk [vmem:[#allocation2 + $0x19] sm:$0x7f] %vm681_vm7, %v590_v55 }
 0x101   : > { %683 = vst.msk [vmem:[#allocation2 + $0x11] sm:$0xff] %vm679_vm8, %v588_v56  ;;  %990 = vrot.lane.b32.xlu1 %v2117_v11, %s1984_s27  ;;  %988 = vrot.lane.b32.xlu0 %v2126_v12, %s1984_s27 }
 0x103   : > { %v716_v9 = vpop.permute.xlu1 %715  ;;  %v714_v10 = vpop.permute.xlu0 %713 }
 0x104   : > { %811 = vst.msk [vmem:[#allocation2 + $0x8] sm:$0xff] %vm809_vm9, %v716_v9  ;;  %810 = vst.msk [vmem:[#allocation2] sm:$0xff] %vm809_vm9, %v714_v10 }
 0x105   : > { %994 = vrot.lane.b32.xlu1 %v2129_v13, %s1984_s27  ;;  %992 = vrot.lane.b32.xlu0 %v2132_v14, %s1984_s27 }
 0x107   : > { %v720_v57 = vpop.permute.xlu1 %719  ;;  %v718_v58 = vpop.permute.xlu0 %717 }
 0x108   : > { %813 = vst.msk [vmem:[#allocation2 + $0x18] sm:$0xff] %vm809_vm9, %v720_v57  ;;  %812 = vst.msk [vmem:[#allocation2 + $0x10] sm:$0xff] %vm809_vm9, %v718_v58 }
 0x109   : > { %1112 = vrot.lane.b32.xlu1 %v2117_v11, %s1985_s6  ;;  %1110 = vrot.lane.b32.xlu0 %v2126_v12, %s1985_s6 }
 0x10b   : > { %v845_v59 = vpop.permute.xlu1 %844  ;;  %v843_v60 = vpop.permute.xlu0 %842 }
 0x10c   : > { %941 = vst.msk [vmem:[#allocation2 + $0x7] sm:$0xff] %vm940_vm10, %v845_v59 }
 0x10d   : > { %939 = vst.msk [vmem:[#allocation2 - $0x1] sm:$0xfe] %vm938_vm11, %v843_v60  ;;  %1116 = vrot.lane.b32.xlu1 %v2129_v13, %s1985_s6  ;;  %1114 = vrot.lane.b32.xlu0 %v2132_v14, %s1985_s6 }
 0x10f   : > { %v849_v61 = vpop.permute.xlu1 %848  ;;  %v847_v62 = vpop.permute.xlu0 %846 }
 0x110   : > { %943 = vst.msk [vmem:[#allocation2 + $0x17] sm:$0xff] %vm940_vm10, %v849_v61 }
 0x111   : > { %942 = vst.msk [vmem:[#allocation2 + $0xf] sm:$0xfe] %vm938_vm11, %v847_v62  ;;  %1233 = vrot.lane.b32.xlu1 %v2117_v11, %s1986_s9  ;;  %1231 = vrot.lane.b32.xlu0 %v2126_v12, %s1986_s9 }
 0x113   : > { %v975_v63 = vpop.permute.xlu1 %974  ;;  %v973_v0 = vpop.permute.xlu0 %972 }
 0x114   : > { %1065 = vst.msk [vmem:[#allocation2 + $0x9] sm:$0x7f] %vm1064_vm12, %v975_v63 }
 0x115   : > { %1063 = vst.msk [vmem:[#allocation2 + $0x1] sm:$0xff] %vm1062_vm13, %v973_v0  ;;  %1237 = vrot.lane.b32.xlu1 %v2129_v13, %s1986_s9  ;;  %1235 = vrot.lane.b32.xlu0 %v2132_v14, %s1986_s9 }
 0x117   : > { %v979_v1 = vpop.permute.xlu1 %978  ;;  %v977_v2 = vpop.permute.xlu0 %976 }
 0x118   : > { %1067 = vst.msk [vmem:[#allocation2 + $0x19] sm:$0x7f] %vm1064_vm12, %v979_v1 }
 0x119   : > { %1066 = vst.msk [vmem:[#allocation2 + $0x11] sm:$0xff] %vm1062_vm13, %v977_v2  ;;  %609 = vrot.lane.b32.xlu1 %v2129_v13, %s1981_s24  ;;  %607 = vrot.lane.b32.xlu0 %v2132_v14, %s1981_s24 }
 0x11b   : > { %v1097_v11 = vpop.permute.xlu1 %1096  ;;  %v1095_v12 = vpop.permute.xlu0 %1094 }
 0x11c   : > { %1186 = vst.msk [vmem:[#allocation2 + $0x8] sm:$0xff] %vm1184_vm14, %v1097_v11  ;;  %1185 = vst.msk [vmem:[#allocation2] sm:$0xff] %vm1184_vm14, %v1095_v12 }
 0x11d   : > { %613 = vrot.lane.b32.xlu1 %v2145_v15, %s1981_s24  ;;  %611 = vrot.lane.b32.xlu0 %v2148_v16, %s1981_s24 }
 0x11f   : > { %v1101_v3 = vpop.permute.xlu1 %1100  ;;  %v1099_v4 = vpop.permute.xlu0 %1098 }
 0x120   : > { %1188 = vst.msk [vmem:[#allocation2 + $0x18] sm:$0xff] %vm1184_vm14, %v1101_v3  ;;  %1187 = vst.msk [vmem:[#allocation2 + $0x10] sm:$0xff] %vm1184_vm14, %v1099_v4 }
 0x121   : > { %739 = vrot.lane.b32.xlu1 %v2129_v13, %s1982_s25  ;;  %737 = vrot.lane.b32.xlu0 %v2132_v14, %s1982_s25 }
 0x123   : > { %v1218_v31 = vpop.permute.xlu1 %1217  ;;  %v1216_v32 = vpop.permute.xlu0 %1215 }
 0x124   : > { %1308 = vst.msk [vmem:[#allocation2 + $0x7] sm:$0xff] %vm1307_vm15, %v1218_v31 }
 0x125   : > { %1306 = vst.msk [vmem:[#allocation2 - $0x1] sm:$0xfe] %vm1305_vm1, %v1216_v32  ;;  %743 = vrot.lane.b32.xlu1 %v2145_v15, %s1982_s25  ;;  %741 = vrot.lane.b32.xlu0 %v2148_v16, %s1982_s25 }
 0x127   : > { %v1222_v33 = vpop.permute.xlu1 %1221  ;;  %v1220_v34 = vpop.permute.xlu0 %1219 }
 0x128   : > { %1310 = vst.msk [vmem:[#allocation2 + $0x17] sm:$0xff] %vm1307_vm15, %v1222_v33 }
 0x129   : > { %1309 = vst.msk [vmem:[#allocation2 + $0xf] sm:$0xfe] %vm1305_vm1, %v1220_v34  ;;  %868 = vrot.lane.b32.xlu1 %v2129_v13, %s1983_s26  ;;  %866 = vrot.lane.b32.xlu0 %v2132_v14, %s1983_s26 }
 0x12b   : > { %v594_v35 = vpop.permute.xlu1 %593  ;;  %v592_v36 = vpop.permute.xlu0 %591  ;;  %v1338_v6 = vld [vmem:[#allocation2 + $0x8] sm:$0xff] }
 0x12c   : > { %v1337_v5 = vld [vmem:[#allocation2] sm:$0xff]  ;;  %686 = vst.msk [vmem:[#allocation2 + $0x29] sm:$0x7f] %vm681_vm7, %v594_v35 }
 0x12d   : > { %685 = vst.msk [vmem:[#allocation2 + $0x21] sm:$0xff] %vm679_vm8, %v592_v36  ;;  %v1369_v37 = vpack.c.bf16 %v1338_v6, %v1337_v5  ;;  %872 = vrot.lane.b32.xlu1 %v2145_v15, %s1983_s26  ;;  %870 = vrot.lane.b32.xlu0 %v2148_v16, %s1983_s26 }
 0x12f   : > { %1910 = vmatprep.mubr.msk.bf16.mxu0 %vm242_vm0, %v1369_v37  ;;  %v598_v13 = vpop.permute.xlu1 %597  ;;  %v596_v38 = vpop.permute.xlu0 %595  ;;  %v1340_v39 = vld [vmem:[#allocation2 + $0x18] sm:$0xff] }
 0x130   : > { %v1339_v14 = vld [vmem:[#allocation2 + $0x10] sm:$0xff]  ;;  %688 = vst.msk [vmem:[#allocation2 + $0x39] sm:$0x7f] %vm681_vm7, %v598_v13 }
 0x131   : > { %687 = vst.msk [vmem:[#allocation2 + $0x31] sm:$0xff] %vm679_vm8, %v596_v38  ;;  %v1370_v40 = vpack.c.bf16 %v1340_v39, %v1339_v14  ;;  %998 = vrot.lane.b32.xlu1 %v2145_v15, %s1984_s27  ;;  %996 = vrot.lane.b32.xlu0 %v2148_v16, %s1984_s27 }
 0x133   : > { %1911 = vmatmul.mubr.msk.bf16.vlgmr.msra.gmra.mrb[0].mxu0 %vm242_vm0, %v1370_v40  ;;  %v724_v41 = vpop.permute.xlu1 %723  ;;  %v722_v42 = vpop.permute.xlu0 %721 }
 0x134   : > { %815 = vst.msk [vmem:[#allocation2 + $0x28] sm:$0xff] %vm809_vm9, %v724_v41  ;;  %814 = vst.msk [vmem:[#allocation2 + $0x20] sm:$0xff] %vm809_vm9, %v722_v42 }
 0x135   : > { %1002 = vrot.lane.b32.xlu1 %v2157_v17, %s1984_s27  ;;  %1000 = vrot.lane.b32.xlu0 %v2160_v18, %s1984_s27 }
 0x137   : > { %v728_v43 = vpop.permute.xlu1 %727  ;;  %v726_v44 = vpop.permute.xlu0 %725 }
 0x138   : > { %817 = vst.msk [vmem:[#allocation2 + $0x38] sm:$0xff] %vm809_vm9, %v728_v43  ;;  %816 = vst.msk [vmem:[#allocation2 + $0x30] sm:$0xff] %vm809_vm9, %v726_v44 }
 0x139   : > { %1120 = vrot.lane.b32.xlu1 %v2145_v15, %s1985_s6  ;;  %1118 = vrot.lane.b32.xlu0 %v2148_v16, %s1985_s6 }
 0x13b   : > { %v853_v45 = vpop.permute.xlu1 %852  ;;  %v851_v46 = vpop.permute.xlu0 %850 }
 0x13c   : > { %945 = vst.msk [vmem:[#allocation2 + $0x27] sm:$0xff] %vm940_vm10, %v853_v45 }
 0x13d   : > { %944 = vst.msk [vmem:[#allocation2 + $0x1f] sm:$0xfe] %vm938_vm11, %v851_v46  ;;  %1124 = vrot.lane.b32.xlu1 %v2157_v17, %s1985_s6  ;;  %1122 = vrot.lane.b32.xlu0 %v2160_v18, %s1985_s6 }
 0x13f   : > { %v857_v7 = vpop.permute.xlu1 %856  ;;  %v855_v8 = vpop.permute.xlu0 %854 }
 0x140   : > { %947 = vst.msk [vmem:[#allocation2 + $0x37] sm:$0xff] %vm940_vm10, %v857_v7 }
 0x141   : > { %946 = vst.msk [vmem:[#allocation2 + $0x2f] sm:$0xfe] %vm938_vm11, %v855_v8  ;;  %1241 = vrot.lane.b32.xlu1 %v2145_v15, %s1986_s9  ;;  %1239 = vrot.lane.b32.xlu0 %v2148_v16, %s1986_s9 }
 0x143   : > { %v983_v47 = vpop.permute.xlu1 %982  ;;  %v981_v48 = vpop.permute.xlu0 %980 }
 0x144   : > { %1069 = vst.msk [vmem:[#allocation2 + $0x29] sm:$0x7f] %vm1064_vm12, %v983_v47 }
 0x145   : > { %1068 = vst.msk [vmem:[#allocation2 + $0x21] sm:$0xff] %vm1062_vm13, %v981_v48  ;;  %1245 = vrot.lane.b32.xlu1 %v2157_v17, %s1986_s9  ;;  %1243 = vrot.lane.b32.xlu0 %v2160_v18, %s1986_s9 }
 0x147   : > { %v987_v49 = vpop.permute.xlu1 %986  ;;  %v985_v50 = vpop.permute.xlu0 %984 }
 0x148   : > { %1071 = vst.msk [vmem:[#allocation2 + $0x39] sm:$0x7f] %vm1064_vm12, %v987_v49 }
 0x149   : > { %1070 = vst.msk [vmem:[#allocation2 + $0x31] sm:$0xff] %vm1062_vm13, %v985_v50  ;;  %617 = vrot.lane.b32.xlu1 %v2157_v17, %s1981_s24  ;;  %615 = vrot.lane.b32.xlu0 %v2160_v18, %s1981_s24 }
 0x14b   : > { %v1105_v15 = vpop.permute.xlu1 %1104  ;;  %v1103_v16 = vpop.permute.xlu0 %1102 }
 0x14c   : > { %1190 = vst.msk [vmem:[#allocation2 + $0x28] sm:$0xff] %vm1184_vm14, %v1105_v15  ;;  %1189 = vst.msk [vmem:[#allocation2 + $0x20] sm:$0xff] %vm1184_vm14, %v1103_v16 }
 0x14d   : > { %621 = vrot.lane.b32.xlu1 %v2163_v19, %s1981_s24  ;;  %619 = vrot.lane.b32.xlu0 %v2170_v20, %s1981_s24 }
 0x14f   : > { %v1109_v51 = vpop.permute.xlu1 %1108  ;;  %v1107_v52 = vpop.permute.xlu0 %1106 }
 0x150   : > { %1192 = vst.msk [vmem:[#allocation2 + $0x38] sm:$0xff] %vm1184_vm14, %v1109_v51  ;;  %1191 = vst.msk [vmem:[#allocation2 + $0x30] sm:$0xff] %vm1184_vm14, %v1107_v52 }
 0x151   : > { %747 = vrot.lane.b32.xlu1 %v2157_v17, %s1982_s25  ;;  %745 = vrot.lane.b32.xlu0 %v2160_v18, %s1982_s25 }
 0x153   : > { %v1226_v53 = vpop.permute.xlu1 %1225  ;;  %v1224_v54 = vpop.permute.xlu0 %1223 }
 0x154   : > { %1312 = vst.msk [vmem:[#allocation2 + $0x27] sm:$0xff] %vm1307_vm15, %v1226_v53 }
 0x155   : > { %1311 = vst.msk [vmem:[#allocation2 + $0x1f] sm:$0xfe] %vm1305_vm1, %v1224_v54  ;;  %751 = vrot.lane.b32.xlu1 %v2163_v19, %s1982_s25  ;;  %749 = vrot.lane.b32.xlu0 %v2170_v20, %s1982_s25 }
 0x157   : > { %v1230_v55 = vpop.permute.xlu1 %1229  ;;  %v1228_v56 = vpop.permute.xlu0 %1227 }
 0x158   : > { %1314 = vst.msk [vmem:[#allocation2 + $0x37] sm:$0xff] %vm1307_vm15, %v1230_v55 }
 0x159   : > { %1313 = vst.msk [vmem:[#allocation2 + $0x2f] sm:$0xfe] %vm1305_vm1, %v1228_v56  ;;  %876 = vrot.lane.b32.xlu1 %v2157_v17, %s1983_s26  ;;  %874 = vrot.lane.b32.xlu0 %v2160_v18, %s1983_s26 }
 0x15b   : > { %v602_v9 = vpop.permute.xlu1 %601  ;;  %v600_v10 = vpop.permute.xlu0 %599  ;;  %v1342_v58 = vld [vmem:[#allocation2 + $0x28] sm:$0xff] }
 0x15c   : > { %v1341_v57 = vld [vmem:[#allocation2 + $0x20] sm:$0xff]  ;;  %690 = vst.msk [vmem:[#allocation2 + $0x49] sm:$0x7f] %vm681_vm7, %v602_v9 }
 0x15d   : > { %689 = vst.msk [vmem:[#allocation2 + $0x41] sm:$0xff] %vm679_vm8, %v600_v10  ;;  %v1371_v59 = vpack.c.bf16 %v1342_v58, %v1341_v57  ;;  %880 = vrot.lane.b32.xlu1 %v2163_v19, %s1983_s26  ;;  %878 = vrot.lane.b32.xlu0 %v2170_v20, %s1983_s26 }
 0x15f   : > { %1914 = vmatprep.mubr.msk.bf16.mxu0 %vm242_vm0, %v1371_v59  ;;  %v606_v17 = vpop.permute.xlu1 %605  ;;  %v604_v60 = vpop.permute.xlu0 %603  ;;  %v1344_v61 = vld [vmem:[#allocation2 + $0x38] sm:$0xff] }
 0x160   : > { %v1343_v18 = vld [vmem:[#allocation2 + $0x30] sm:$0xff]  ;;  %692 = vst.msk [vmem:[#allocation2 + $0x59] sm:$0x7f] %vm681_vm7, %v606_v17 }
 0x161   : > { %691 = vst.msk [vmem:[#allocation2 + $0x51] sm:$0xff] %vm679_vm8, %v604_v60  ;;  %v1372_v62 = vpack.c.bf16 %v1344_v61, %v1343_v18  ;;  %1006 = vrot.lane.b32.xlu1 %v2163_v19, %s1984_s27  ;;  %1004 = vrot.lane.b32.xlu0 %v2170_v20, %s1984_s27 }
 0x163   : > { %1915 = vmatmul.mubr.msk.bf16.gmra.mrb[4].mxu0 %vm242_vm0, %v1372_v62  ;;  %v732_v63 = vpop.permute.xlu1 %731  ;;  %v730_v0 = vpop.permute.xlu0 %729 }
 0x164   : > { %819 = vst.msk [vmem:[#allocation2 + $0x48] sm:$0xff] %vm809_vm9, %v732_v63  ;;  %818 = vst.msk [vmem:[#allocation2 + $0x40] sm:$0xff] %vm809_vm9, %v730_v0 }
 0x165   : > { %1010 = vrot.lane.b32.xlu1 %v2173_v21, %s1984_s27  ;;  %1008 = vrot.lane.b32.xlu0 %v2176_v22, %s1984_s27 }
 0x167   : > { %v736_v1 = vpop.permute.xlu1 %735  ;;  %v734_v2 = vpop.permute.xlu0 %733 }
 0x168   : > { %821 = vst.msk [vmem:[#allocation2 + $0x58] sm:$0xff] %vm809_vm9, %v736_v1  ;;  %820 = vst.msk [vmem:[#allocation2 + $0x50] sm:$0xff] %vm809_vm9, %v734_v2 }
 0x169   : > { %1128 = vrot.lane.b32.xlu1 %v2163_v19, %s1985_s6  ;;  %1126 = vrot.lane.b32.xlu0 %v2170_v20, %s1985_s6 }
 0x16b   : > { %v861_v11 = vpop.permute.xlu1 %860  ;;  %v859_v12 = vpop.permute.xlu0 %858 }
 0x16c   : > { %949 = vst.msk [vmem:[#allocation2 + $0x47] sm:$0xff] %vm940_vm10, %v861_v11 }
 0x16d   : > { %948 = vst.msk [vmem:[#allocation2 + $0x3f] sm:$0xfe] %vm938_vm11, %v859_v12  ;;  %1132 = vrot.lane.b32.xlu1 %v2173_v21, %s1985_s6  ;;  %1130 = vrot.lane.b32.xlu0 %v2176_v22, %s1985_s6 }
 0x16f   : > { %v865_v3 = vpop.permute.xlu1 %864  ;;  %v863_v4 = vpop.permute.xlu0 %862 }
 0x170   : > { %951 = vst.msk [vmem:[#allocation2 + $0x57] sm:$0xff] %vm940_vm10, %v865_v3 }
 0x171   : > { %950 = vst.msk [vmem:[#allocation2 + $0x4f] sm:$0xfe] %vm938_vm11, %v863_v4  ;;  %1249 = vrot.lane.b32.xlu1 %v2163_v19, %s1986_s9  ;;  %1247 = vrot.lane.b32.xlu0 %v2170_v20, %s1986_s9 }
 0x173   : > { %v991_v31 = vpop.permute.xlu1 %990  ;;  %v989_v32 = vpop.permute.xlu0 %988 }
 0x174   : > { %1073 = vst.msk [vmem:[#allocation2 + $0x49] sm:$0x7f] %vm1064_vm12, %v991_v31 }
 0x175   : > { %1072 = vst.msk [vmem:[#allocation2 + $0x41] sm:$0xff] %vm1062_vm13, %v989_v32  ;;  %1253 = vrot.lane.b32.xlu1 %v2173_v21, %s1986_s9  ;;  %1251 = vrot.lane.b32.xlu0 %v2176_v22, %s1986_s9 }
 0x177   : > { %v995_v33 = vpop.permute.xlu1 %994  ;;  %v993_v34 = vpop.permute.xlu0 %992 }
 0x178   : > { %1075 = vst.msk [vmem:[#allocation2 + $0x59] sm:$0x7f] %vm1064_vm12, %v995_v33 }
 0x179   : > { %1074 = vst.msk [vmem:[#allocation2 + $0x51] sm:$0xff] %vm1062_vm13, %v993_v34  ;;  %625 = vrot.lane.b32.xlu1 %v2173_v21, %s1981_s24  ;;  %623 = vrot.lane.b32.xlu0 %v2176_v22, %s1981_s24 }
 0x17b   : > { %v1113_v19 = vpop.permute.xlu1 %1112  ;;  %v1111_v20 = vpop.permute.xlu0 %1110 }
 0x17c   : > { %1194 = vst.msk [vmem:[#allocation2 + $0x48] sm:$0xff] %vm1184_vm14, %v1113_v19  ;;  %1193 = vst.msk [vmem:[#allocation2 + $0x40] sm:$0xff] %vm1184_vm14, %v1111_v20 }
 0x17d   : > { %629 = vrot.lane.b32.xlu1 %v2185_v23, %s1981_s24  ;;  %627 = vrot.lane.b32.xlu0 %v2188_v24, %s1981_s24 }
 0x17f   : > { %v1117_v35 = vpop.permute.xlu1 %1116  ;;  %v1115_v36 = vpop.permute.xlu0 %1114 }
 0x180   : > { %1196 = vst.msk [vmem:[#allocation2 + $0x58] sm:$0xff] %vm1184_vm14, %v1117_v35  ;;  %1195 = vst.msk [vmem:[#allocation2 + $0x50] sm:$0xff] %vm1184_vm14, %v1115_v36  ;;  %v241_v35 = vld [vmem:[%s2070_s21 + $0xf8] sm:$0xff]  ;;  %v240_v36 = vld [vmem:[%s2070_s21 + $0xf0] sm:$0xff] }
 0x181   : > { %755 = vrot.lane.b32.xlu1 %v2173_v21, %s1982_s25  ;;  %753 = vrot.lane.b32.xlu0 %v2176_v22, %s1982_s25 }
 0x183   : > { %v1234_v5 = vpop.permute.xlu1 %1233  ;;  %v1232_v6 = vpop.permute.xlu0 %1231 }
 0x184   : > { %1316 = vst.msk [vmem:[#allocation2 + $0x47] sm:$0xff] %vm1307_vm15, %v1234_v5 }
 0x185   : > { %1315 = vst.msk [vmem:[#allocation2 + $0x3f] sm:$0xfe] %vm1305_vm1, %v1232_v6  ;;  %759 = vrot.lane.b32.xlu1 %v2185_v23, %s1982_s25  ;;  %757 = vrot.lane.b32.xlu0 %v2188_v24, %s1982_s25 }
 0x187   : > { %v1238_v37 = vpop.permute.xlu1 %1237  ;;  %v1236_v13 = vpop.permute.xlu0 %1235 }
 0x188   : > { %1318 = vst.msk [vmem:[#allocation2 + $0x57] sm:$0xff] %vm1307_vm15, %v1238_v37 }
 0x189   : > { %1317 = vst.msk [vmem:[#allocation2 + $0x4f] sm:$0xfe] %vm1305_vm1, %v1236_v13  ;;  %884 = vrot.lane.b32.xlu1 %v2173_v21, %s1983_s26  ;;  %882 = vrot.lane.b32.xlu0 %v2176_v22, %s1983_s26 }
 0x18b   : > { %v610_v38 = vpop.permute.xlu1 %609  ;;  %v608_v14 = vpop.permute.xlu0 %607  ;;  %v1346_v40 = vld [vmem:[#allocation2 + $0x48] sm:$0xff] }
 0x18c   : > { %v1345_v39 = vld [vmem:[#allocation2 + $0x40] sm:$0xff]  ;;  %694 = vst.msk [vmem:[#allocation2 + $0x69] sm:$0x7f] %vm681_vm7, %v610_v38 }
 0x18d   : > { %693 = vst.msk [vmem:[#allocation2 + $0x61] sm:$0xff] %vm679_vm8, %v608_v14  ;;  %v1373_v41 = vpack.c.bf16 %v1346_v40, %v1345_v39  ;;  %888 = vrot.lane.b32.xlu1 %v2185_v23, %s1983_s26  ;;  %886 = vrot.lane.b32.xlu0 %v2188_v24, %s1983_s26 }
 0x18f   : > { %1918 = vmatprep.mubr.msk.bf16.mxu0 %vm242_vm0, %v1373_v41  ;;  %v614_v21 = vpop.permute.xlu1 %613  ;;  %v612_v42 = vpop.permute.xlu0 %611  ;;  %v1348_v43 = vld [vmem:[#allocation2 + $0x58] sm:$0xff] }
 0x190   : > { %v1347_v22 = vld [vmem:[#allocation2 + $0x50] sm:$0xff]  ;;  %696 = vst.msk [vmem:[#allocation2 + $0x79] sm:$0x7f] %vm681_vm7, %v614_v21 }
 0x191   : > { %695 = vst.msk [vmem:[#allocation2 + $0x71] sm:$0xff] %vm679_vm8, %v612_v42  ;;  %v1374_v44 = vpack.c.bf16 %v1348_v43, %v1347_v22  ;;  %1014 = vrot.lane.b32.xlu1 %v2185_v23, %s1984_s27  ;;  %1012 = vrot.lane.b32.xlu0 %v2188_v24, %s1984_s27 }
 0x193   : > { %1919 = vmatmul.mubr.msk.bf16.gmra.mrb[8].mxu0 %vm242_vm0, %v1374_v44  ;;  %v740_v45 = vpop.permute.xlu1 %739  ;;  %v738_v46 = vpop.permute.xlu0 %737 }
 0x194   : > { %823 = vst.msk [vmem:[#allocation2 + $0x68] sm:$0xff] %vm809_vm9, %v740_v45  ;;  %822 = vst.msk [vmem:[#allocation2 + $0x60] sm:$0xff] %vm809_vm9, %v738_v46 }
 0x195   : > { %1018 = vrot.lane.b32.xlu1 %v2191_v25, %s1984_s27  ;;  %1016 = vrot.lane.b32.xlu0 %v2204_v26, %s1984_s27 }
 0x197   : > { %v744_v7 = vpop.permute.xlu1 %743  ;;  %v742_v8 = vpop.permute.xlu0 %741 }
 0x198   : > { %825 = vst.msk [vmem:[#allocation2 + $0x78] sm:$0xff] %vm809_vm9, %v744_v7  ;;  %824 = vst.msk [vmem:[#allocation2 + $0x70] sm:$0xff] %vm809_vm9, %v742_v8 }
 0x199   : > { %1136 = vrot.lane.b32.xlu1 %v2185_v23, %s1985_s6  ;;  %1134 = vrot.lane.b32.xlu0 %v2188_v24, %s1985_s6 }
 0x19b   : > { %v869_v47 = vpop.permute.xlu1 %868  ;;  %v867_v48 = vpop.permute.xlu0 %866 }
 0x19c   : > { %953 = vst.msk [vmem:[#allocation2 + $0x67] sm:$0xff] %vm940_vm10, %v869_v47 }
 0x19d   : > { %952 = vst.msk [vmem:[#allocation2 + $0x5f] sm:$0xfe] %vm938_vm11, %v867_v48  ;;  %1140 = vrot.lane.b32.xlu1 %v2191_v25, %s1985_s6  ;;  %1138 = vrot.lane.b32.xlu0 %v2204_v26, %s1985_s6 }
 0x19f   : > { %v873_v49 = vpop.permute.xlu1 %872  ;;  %v871_v50 = vpop.permute.xlu0 %870 }
 0x1a0   : > { %955 = vst.msk [vmem:[#allocation2 + $0x77] sm:$0xff] %vm940_vm10, %v873_v49 }
 0x1a1   : > { %954 = vst.msk [vmem:[#allocation2 + $0x6f] sm:$0xfe] %vm938_vm11, %v871_v50  ;;  %1257 = vrot.lane.b32.xlu1 %v2185_v23, %s1986_s9  ;;  %1255 = vrot.lane.b32.xlu0 %v2188_v24, %s1986_s9 }
 0x1a3   : > { %v999_v15 = vpop.permute.xlu1 %998  ;;  %v997_v16 = vpop.permute.xlu0 %996 }
 0x1a4   : > { %1077 = vst.msk [vmem:[#allocation2 + $0x69] sm:$0x7f] %vm1064_vm12, %v999_v15  ;;  %v2918_v15 = vld [vmem:[%s3060_s2] ss:$0 sm:$0xff] }
 0x1a5   : > { %1076 = vst.msk [vmem:[#allocation2 + $0x61] sm:$0xff] %vm1062_vm13, %v997_v16  ;;  %1261 = vrot.lane.b32.xlu1 %v2191_v25, %s1986_s9  ;;  %1259 = vrot.lane.b32.xlu0 %v2204_v26, %s1986_s9 }
 0x1a7   : > { %v1003_v51 = vpop.permute.xlu1 %1002  ;;  %v1001_v52 = vpop.permute.xlu0 %1000 }
 0x1a8   : > { %1079 = vst.msk [vmem:[#allocation2 + $0x79] sm:$0x7f] %vm1064_vm12, %v1003_v51 }
 0x1a9   : > { %1078 = vst.msk [vmem:[#allocation2 + $0x71] sm:$0xff] %vm1062_vm13, %v1001_v52  ;;  %633 = vrot.lane.b32.xlu1 %v2191_v25, %s1981_s24  ;;  %631 = vrot.lane.b32.xlu0 %v2204_v26, %s1981_s24 }
 0x1ab   : > { %v1121_v23 = vpop.permute.xlu1 %1120  ;;  %v1119_v24 = vpop.permute.xlu0 %1118 }
 0x1ac   : > { %1198 = vst.msk [vmem:[#allocation2 + $0x68] sm:$0xff] %vm1184_vm14, %v1121_v23  ;;  %1197 = vst.msk [vmem:[#allocation2 + $0x60] sm:$0xff] %vm1184_vm14, %v1119_v24 }
 0x1ad   : > { %637 = vrot.lane.b32.xlu1 %v2207_v27, %s1981_s24  ;;  %635 = vrot.lane.b32.xlu0 %v2216_v28, %s1981_s24 }
 0x1af   : > { %v1125_v53 = vpop.permute.xlu1 %1124  ;;  %v1123_v54 = vpop.permute.xlu0 %1122 }
 0x1b0   : > { %1200 = vst.msk [vmem:[#allocation2 + $0x78] sm:$0xff] %vm1184_vm14, %v1125_v53  ;;  %1199 = vst.msk [vmem:[#allocation2 + $0x70] sm:$0xff] %vm1184_vm14, %v1123_v54 }
 0x1b1   : > { %763 = vrot.lane.b32.xlu1 %v2191_v25, %s1982_s25  ;;  %761 = vrot.lane.b32.xlu0 %v2204_v26, %s1982_s25 }
 0x1b3   : > { %v1242_v55 = vpop.permute.xlu1 %1241  ;;  %v1240_v56 = vpop.permute.xlu0 %1239 }
 0x1b4   : > { %1320 = vst.msk [vmem:[#allocation2 + $0x67] sm:$0xff] %vm1307_vm15, %v1242_v55 }
 0x1b5   : > { %1319 = vst.msk [vmem:[#allocation2 + $0x5f] sm:$0xfe] %vm1305_vm1, %v1240_v56  ;;  %767 = vrot.lane.b32.xlu1 %v2207_v27, %s1982_s25  ;;  %765 = vrot.lane.b32.xlu0 %v2216_v28, %s1982_s25 }
 0x1b7   : > { %v1246_v9 = vpop.permute.xlu1 %1245  ;;  %v1244_v10 = vpop.permute.xlu0 %1243 }
 0x1b8   : > { %1322 = vst.msk [vmem:[#allocation2 + $0x77] sm:$0xff] %vm1307_vm15, %v1246_v9 }
 0x1b9   : > { %1321 = vst.msk [vmem:[#allocation2 + $0x6f] sm:$0xfe] %vm1305_vm1, %v1244_v10  ;;  %892 = vrot.lane.b32.xlu1 %v2191_v25, %s1983_s26  ;;  %890 = vrot.lane.b32.xlu0 %v2204_v26, %s1983_s26 }
 0x1bb   : > { %v618_v57 = vpop.permute.xlu1 %617  ;;  %v616_v58 = vpop.permute.xlu0 %615  ;;  %v1350_v17 = vld [vmem:[#allocation2 + $0x68] sm:$0xff] }
 0x1bc   : > { %v1349_v59 = vld [vmem:[#allocation2 + $0x60] sm:$0xff]  ;;  %698 = vst.msk [vmem:[#allocation2 + $0x89] sm:$0x7f] %vm681_vm7, %v618_v57 }
 0x1bd   : > { %697 = vst.msk [vmem:[#allocation2 + $0x81] sm:$0xff] %vm679_vm8, %v616_v58  ;;  %v1375_v60 = vpack.c.bf16 %v1350_v17, %v1349_v59  ;;  %896 = vrot.lane.b32.xlu1 %v2207_v27, %s1983_s26  ;;  %894 = vrot.lane.b32.xlu0 %v2216_v28, %s1983_s26 }
 0x1bf   : > { %1922 = vmatprep.mubr.msk.bf16.mxu0 %vm242_vm0, %v1375_v60  ;;  %v622_v25 = vpop.permute.xlu1 %621  ;;  %v620_v18 = vpop.permute.xlu0 %619  ;;  %v1352_v61 = vld [vmem:[#allocation2 + $0x78] sm:$0xff] }
 0x1c0   : > { %v1351_v26 = vld [vmem:[#allocation2 + $0x70] sm:$0xff]  ;;  %700 = vst.msk [vmem:[#allocation2 + $0x99] sm:$0x7f] %vm681_vm7, %v622_v25 }
 0x1c1   : > { %699 = vst.msk [vmem:[#allocation2 + $0x91] sm:$0xff] %vm679_vm8, %v620_v18  ;;  %v1376_v62 = vpack.c.bf16 %v1352_v61, %v1351_v26  ;;  %1022 = vrot.lane.b32.xlu1 %v2207_v27, %s1984_s27  ;;  %1020 = vrot.lane.b32.xlu0 %v2216_v28, %s1984_s27 }
 0x1c3   : > { %1923 = vmatmul.mubr.msk.bf16.gmra.mrb[12].mxu0 %vm242_vm0, %v1376_v62  ;;  %v748_v63 = vpop.permute.xlu1 %747  ;;  %v746_v0 = vpop.permute.xlu0 %745 }
 0x1c4   : > { %827 = vst.msk [vmem:[#allocation2 + $0x88] sm:$0xff] %vm809_vm9, %v748_v63  ;;  %826 = vst.msk [vmem:[#allocation2 + $0x80] sm:$0xff] %vm809_vm9, %v746_v0 }
 0x1c5   : > { %1026 = vrot.lane.b32.xlu1 %v2219_v29, %s1984_s27  ;;  %1024 = vrot.lane.b32.xlu0 %v2222_v30, %s1984_s27 }
 0x1c7   : > { %v752_v1 = vpop.permute.xlu1 %751  ;;  %v750_v2 = vpop.permute.xlu0 %749 }
 0x1c8   : > { %829 = vst.msk [vmem:[#allocation2 + $0x98] sm:$0xff] %vm809_vm9, %v752_v1  ;;  %828 = vst.msk [vmem:[#allocation2 + $0x90] sm:$0xff] %vm809_vm9, %v750_v2 }
 0x1c9   : > { %1144 = vrot.lane.b32.xlu1 %v2207_v27, %s1985_s6  ;;  %1142 = vrot.lane.b32.xlu0 %v2216_v28, %s1985_s6 }
 0x1cb   : > { %v877_v11 = vpop.permute.xlu1 %876  ;;  %v875_v12 = vpop.permute.xlu0 %874 }
 0x1cc   : > { %957 = vst.msk [vmem:[#allocation2 + $0x87] sm:$0xff] %vm940_vm10, %v877_v11 }
 0x1cd   : > { %956 = vst.msk [vmem:[#allocation2 + $0x7f] sm:$0xfe] %vm938_vm11, %v875_v12  ;;  %1148 = vrot.lane.b32.xlu1 %v2219_v29, %s1985_s6  ;;  %1146 = vrot.lane.b32.xlu0 %v2222_v30, %s1985_s6 }
 0x1cf   : > { %v881_v3 = vpop.permute.xlu1 %880  ;;  %v879_v4 = vpop.permute.xlu0 %878 }
 0x1d0   : > { %959 = vst.msk [vmem:[#allocation2 + $0x97] sm:$0xff] %vm940_vm10, %v881_v3 }
 0x1d1   : > { %958 = vst.msk [vmem:[#allocation2 + $0x8f] sm:$0xfe] %vm938_vm11, %v879_v4  ;;  %1265 = vrot.lane.b32.xlu1 %v2207_v27, %s1986_s9  ;;  %1263 = vrot.lane.b32.xlu0 %v2216_v28, %s1986_s9 }
 0x1d3   : > { %v1007_v31 = vpop.permute.xlu1 %1006  ;;  %v1005_v32 = vpop.permute.xlu0 %1004 }
 0x1d4   : > { %1081 = vst.msk [vmem:[#allocation2 + $0x89] sm:$0x7f] %vm1064_vm12, %v1007_v31 }
 0x1d5   : > { %1080 = vst.msk [vmem:[#allocation2 + $0x81] sm:$0xff] %vm1062_vm13, %v1005_v32  ;;  %1269 = vrot.lane.b32.xlu1 %v2219_v29, %s1986_s9  ;;  %1267 = vrot.lane.b32.xlu0 %v2222_v30, %s1986_s9 }
 0x1d7   : > { %v1011_v33 = vpop.permute.xlu1 %1010  ;;  %v1009_v34 = vpop.permute.xlu0 %1008 }
 0x1d8   : > { %1083 = vst.msk [vmem:[#allocation2 + $0x99] sm:$0x7f] %vm1064_vm12, %v1011_v33 }
 0x1d9   : > { %1082 = vst.msk [vmem:[#allocation2 + $0x91] sm:$0xff] %vm1062_vm13, %v1009_v34  ;;  %641 = vrot.lane.b32.xlu1 %v2219_v29, %s1981_s24  ;;  %639 = vrot.lane.b32.xlu0 %v2222_v30, %s1981_s24 }
 0x1db   : > { %v1129_v27 = vpop.permute.xlu1 %1128  ;;  %v1127_v28 = vpop.permute.xlu0 %1126 }
 0x1dc   : > { %1202 = vst.msk [vmem:[#allocation2 + $0x88] sm:$0xff] %vm1184_vm14, %v1129_v27  ;;  %1201 = vst.msk [vmem:[#allocation2 + $0x80] sm:$0xff] %vm1184_vm14, %v1127_v28 }
 0x1dd   : > { %771 = vrot.lane.b32.xlu1 %v2219_v29, %s1982_s25  ;;  %769 = vrot.lane.b32.xlu0 %v2222_v30, %s1982_s25 }
 0x1df   : > { %v1133_v19 = vpop.permute.xlu1 %1132  ;;  %v1131_v20 = vpop.permute.xlu0 %1130 }
 0x1e0   : > { %1204 = vst.msk [vmem:[#allocation2 + $0x98] sm:$0xff] %vm1184_vm14, %v1133_v19  ;;  %1203 = vst.msk [vmem:[#allocation2 + $0x90] sm:$0xff] %vm1184_vm14, %v1131_v20 }
 0x1e1   : > { %900 = vrot.lane.b32.xlu1 %v2219_v29, %s1983_s26  ;;  %898 = vrot.lane.b32.xlu0 %v2222_v30, %s1983_s26 }
 0x1e3   : > { %v1250_v5 = vpop.permute.xlu1 %1249  ;;  %v1248_v6 = vpop.permute.xlu0 %1247 }
 0x1e4   : > { %1324 = vst.msk [vmem:[#allocation2 + $0x87] sm:$0xff] %vm1307_vm15, %v1250_v5 }
 0x1e5   : > { %1323 = vst.msk [vmem:[#allocation2 + $0x7f] sm:$0xfe] %vm1305_vm1, %v1248_v6  ;;  %1030 = vrot.lane.b32.xlu1 %v241_v35, %s1984_s27  ;;  %1028 = vrot.lane.b32.xlu0 %v240_v36, %s1984_s27 }
 0x1e7   : > { %v1254_v37 = vpop.permute.xlu1 %1253  ;;  %v1252_v13 = vpop.permute.xlu0 %1251 }
 0x1e8   : > { %1326 = vst.msk [vmem:[#allocation2 + $0x97] sm:$0xff] %vm1307_vm15, %v1254_v37 }
 0x1e9   : > { %1325 = vst.msk [vmem:[#allocation2 + $0x8f] sm:$0xfe] %vm1305_vm1, %v1252_v13  ;;  %645 = vrot.lane.b32.xlu1 %v241_v35, %s1981_s24  ;;  %643 = vrot.lane.b32.xlu0 %v240_v36, %s1981_s24 }
 0x1eb   : > { %v626_v29 = vpop.permute.xlu1 %625  ;;  %v624_v30 = vpop.permute.xlu0 %623  ;;  %v1354_v14 = vld [vmem:[#allocation2 + $0x88] sm:$0xff] }
 0x1ec   : > { %v1353_v38 = vld [vmem:[#allocation2 + $0x80] sm:$0xff]  ;;  %702 = vst.msk [vmem:[#allocation2 + $0xa9] sm:$0x7f] %vm681_vm7, %v626_v29 }
 0x1ed   : > { %701 = vst.msk [vmem:[#allocation2 + $0xa1] sm:$0xff] %vm679_vm8, %v624_v30  ;;  %v1377_v39 = vpack.c.bf16 %v1354_v14, %v1353_v38  ;;  %1152 = vrot.lane.b32.xlu1 %v241_v35, %s1985_s6  ;;  %1150 = vrot.lane.b32.xlu0 %v240_v36, %s1985_s6 }
 0x1ef   : > { %1926 = vmatprep.mubr.msk.bf16.mxu1 %vm242_vm0, %v1377_v39  ;;  %v630_v40 = vpop.permute.xlu1 %629  ;;  %v628_v41 = vpop.permute.xlu0 %627  ;;  %v1356_v42 = vld [vmem:[#allocation2 + $0x98] sm:$0xff] }
 0x1f0   : > { %v1355_v21 = vld [vmem:[#allocation2 + $0x90] sm:$0xff]  ;;  %704 = vst.msk [vmem:[#allocation2 + $0xb9] sm:$0x7f] %vm681_vm7, %v630_v40 }
 0x1f1   : > { %703 = vst.msk [vmem:[#allocation2 + $0xb1] sm:$0xff] %vm679_vm8, %v628_v41  ;;  %v1378_v22 = vpack.c.bf16 %v1356_v42, %v1355_v21  ;;  %775 = vrot.lane.b32.xlu1 %v241_v35, %s1982_s25  ;;  %773 = vrot.lane.b32.xlu0 %v240_v36, %s1982_s25 }
 0x1f3   : > { %1927 = vmatmul.mubr.msk.bf16.vlgmr.msra.gmra.mrb[0].mxu1 %vm242_vm0, %v1378_v22  ;;  %v756_v43 = vpop.permute.xlu1 %755  ;;  %v754_v44 = vpop.permute.xlu0 %753 }
 0x1f4   : > { %831 = vst.msk [vmem:[#allocation2 + $0xa8] sm:$0xff] %vm809_vm9, %v756_v43  ;;  %830 = vst.msk [vmem:[#allocation2 + $0xa0] sm:$0xff] %vm809_vm9, %v754_v44 }
 0x1f5   : > { %1273 = vrot.lane.b32.xlu1 %v241_v35, %s1986_s9  ;;  %1271 = vrot.lane.b32.xlu0 %v240_v36, %s1986_s9 }
 0x1f7   : > { %v760_v45 = vpop.permute.xlu1 %759  ;;  %v758_v46 = vpop.permute.xlu0 %757 }
 0x1f8   : > { %833 = vst.msk [vmem:[#allocation2 + $0xb8] sm:$0xff] %vm809_vm9, %v760_v45  ;;  %832 = vst.msk [vmem:[#allocation2 + $0xb0] sm:$0xff] %vm809_vm9, %v758_v46 }
 0x1f9   : > { %904 = vrot.lane.b32.xlu1 %v241_v35, %s1983_s26  ;;  %902 = vrot.lane.b32.xlu0 %v240_v36, %s1983_s26 }
 0x1fb   : > { %v885_v7 = vpop.permute.xlu1 %884  ;;  %v883_v8 = vpop.permute.xlu0 %882 }
 0x1fc   : > { %961 = vst.msk [vmem:[#allocation2 + $0xa7] sm:$0xff] %vm940_vm10, %v885_v7 }
 0x1fd   : > { %960 = vst.msk [vmem:[#allocation2 + $0x9f] sm:$0xfe] %vm938_vm11, %v883_v8 }
 0x1ff   : > { %v889_v47 = vpop.permute.xlu1 %888  ;;  %v887_v48 = vpop.permute.xlu0 %886 }
 0x200   : > { %963 = vst.msk [vmem:[#allocation2 + $0xb7] sm:$0xff] %vm940_vm10, %v889_v47 }
 0x201   : > { %962 = vst.msk [vmem:[#allocation2 + $0xaf] sm:$0xfe] %vm938_vm11, %v887_v48 }
 0x203   : > { %v1015_v49 = vpop.permute.xlu1 %1014  ;;  %v1013_v50 = vpop.permute.xlu0 %1012 }
 0x204   : > { %1085 = vst.msk [vmem:[#allocation2 + $0xa9] sm:$0x7f] %vm1064_vm12, %v1015_v49 }
 0x205   : > { %1084 = vst.msk [vmem:[#allocation2 + $0xa1] sm:$0xff] %vm1062_vm13, %v1013_v50 }
 0x206   : > { %v1912_v16 = vpop.f32.mrb[0].mxu0 }
 0x207   : > { %v1507_v51 = vadd.f32 %v1912_v16, %v2918_v15  ;;  %v1498_v52 = vpop.f32.mrb[1].mxu0  ;;  %v1019_v24 = vpop.permute.xlu1 %1018 }
 0x208   : > { %v1499_v23 = vadd.f32 %v2918_v15, %v1498_v52  ;;  %v1017_v53 = vpop.permute.xlu0 %1016  ;;  %1087 = vst.msk [vmem:[#allocation2 + $0xb9] sm:$0x7f] %vm1064_vm12, %v1019_v24  ;;  %v1913_v54 = vpop.f32.mrb[2].mxu0 }
 0x209   : > { %1735 = vst [vmem:[%s2927_s14 + $0x10] sm:$0xff] %v1507_v51  ;;  %1086 = vst.msk [vmem:[#allocation2 + $0xb1] sm:$0xff] %vm1062_vm13, %v1017_v53  ;;  %v1510_v55 = vadd.f32 %v1913_v54, %v2918_v15  ;;  %v1501_v56 = vpop.f32.mrb[3].mxu0  ;;  %v1665_v60 = vmul.f32 %v1507_v51, %v1507_v51 }
 0x20a   : > { %1733 = vst [vmem:[%s2927_s14] sm:$0xff] %v1499_v23  ;;  %v1502_v9 = vadd.f32 %v2918_v15, %v1501_v56  ;;  %v1663_v58 = vmul.f32 %v1499_v23, %v1499_v23 }
 0x20b   : > { %1736 = vst [vmem:[%s2927_s14 + $0x18] sm:$0xff] %v1510_v55  ;;  %v1137_v10 = vpop.permute.xlu1 %1136  ;;  %v1666_v62 = vmul.f32 %v1510_v55, %v1510_v55 }
 0x20c   : > { %v1135_v57 = vpop.permute.xlu0 %1134  ;;  %v1625_v59 = vadd.f32 %v1502_v9, %v1499_v23  ;;  %v1664_v17 = vmul.f32 %v1502_v9, %v1502_v9  ;;  %1734 = vst [vmem:[%s2927_s14 + $0x8] sm:$0xff] %v1502_v9  ;;  %1206 = vst.msk [vmem:[#allocation2 + $0xa8] sm:$0xff] %vm1184_vm14, %v1137_v10 }
 0x20d   : > { %1205 = vst.msk [vmem:[#allocation2 + $0xa0] sm:$0xff] %vm1184_vm14, %v1135_v57 }
 0x20e   : > { %v1626_v25 = vadd.f32 %v1625_v59, %v1507_v51  ;;  %v1695_v18 = vadd.f32 %v1664_v17, %v1663_v58 }
 0x20f   : > { %v1141_v26 = vpop.permute.xlu1 %1140 }
 0x210   : > { %v1139_v61 = vpop.permute.xlu0 %1138  ;;  %v1696_v63 = vadd.f32 %v1695_v18, %v1665_v60  ;;  %1208 = vst.msk [vmem:[#allocation2 + $0xb8] sm:$0xff] %vm1184_vm14, %v1141_v26  ;;  %v1627_v0 = vadd.f32 %v1626_v25, %v1510_v55 }
 0x211   : > { %1207 = vst.msk [vmem:[#allocation2 + $0xb0] sm:$0xff] %vm1184_vm14, %v1139_v61 }
 0x212   : > { %v1697_v1 = vadd.f32 %v1696_v63, %v1666_v62 }
 0x213   : > { %v1258_v2 = vpop.permute.xlu1 %1257 }
 0x214   : > { %v1256_v11 = vpop.permute.xlu0 %1255  ;;  %1328 = vst.msk [vmem:[#allocation2 + $0xa7] sm:$0xff] %vm1307_vm15, %v1258_v2 }
 0x215   : > { %1327 = vst.msk [vmem:[#allocation2 + $0x9f] sm:$0xfe] %vm1305_vm1, %v1256_v11 }
 0x217   : > { %v1262_v12 = vpop.permute.xlu1 %1261 }
 0x218   : > { %v1260_v3 = vpop.permute.xlu0 %1259  ;;  %1330 = vst.msk [vmem:[#allocation2 + $0xb7] sm:$0xff] %vm1307_vm15, %v1262_v12 }
 0x219   : > { %1329 = vst.msk [vmem:[#allocation2 + $0xaf] sm:$0xfe] %vm1305_vm1, %v1260_v3 }
 0x21b   : > { %v634_v4 = vpop.permute.xlu1 %633  ;;  %v1358_v33 = vld [vmem:[#allocation2 + $0xa8] sm:$0xff] }
 0x21c   : > { %v632_v31 = vpop.permute.xlu0 %631  ;;  %v1357_v32 = vld [vmem:[#allocation2 + $0xa0] sm:$0xff]  ;;  %706 = vst.msk [vmem:[#allocation2 + $0xc9] sm:$0x7f] %vm681_vm7, %v634_v4 }
 0x21d   : > { %705 = vst.msk [vmem:[#allocation2 + $0xc1] sm:$0xff] %vm679_vm8, %v632_v31  ;;  %v1379_v34 = vpack.c.bf16 %v1358_v33, %v1357_v32 }
 0x21f   : > { %1930 = vmatprep.mubr.msk.bf16.mxu1 %vm242_vm0, %v1379_v34  ;;  %v638_v27 = vpop.permute.xlu1 %637  ;;  %v1360_v20 = vld [vmem:[#allocation2 + $0xb8] sm:$0xff] }
 0x220   : > { %v636_v28 = vpop.permute.xlu0 %635  ;;  %v1359_v19 = vld [vmem:[#allocation2 + $0xb0] sm:$0xff]  ;;  %708 = vst.msk [vmem:[#allocation2 + $0xd9] sm:$0x7f] %vm681_vm7, %v638_v27 }
 0x221   : > { %707 = vst.msk [vmem:[#allocation2 + $0xd1] sm:$0xff] %vm679_vm8, %v636_v28  ;;  %v1380_v35 = vpack.c.bf16 %v1360_v20, %v1359_v19 }
 0x223   : > { %1931 = vmatmul.mubr.msk.bf16.gmra.mrb[4].mxu1 %vm242_vm0, %v1380_v35  ;;  %v764_v36 = vpop.permute.xlu1 %763 }
 0x224   : > { %v762_v5 = vpop.permute.xlu0 %761  ;;  %835 = vst.msk [vmem:[#allocation2 + $0xc8] sm:$0xff] %vm809_vm9, %v764_v36 }
 0x225   : > { %834 = vst.msk [vmem:[#allocation2 + $0xc0] sm:$0xff] %vm809_vm9, %v762_v5 }
 0x227   : > { %v768_v6 = vpop.permute.xlu1 %767 }
 0x228   : > { %v766_v37 = vpop.permute.xlu0 %765  ;;  %837 = vst.msk [vmem:[#allocation2 + $0xd8] sm:$0xff] %vm809_vm9, %v768_v6 }
 0x229   : > { %836 = vst.msk [vmem:[#allocation2 + $0xd0] sm:$0xff] %vm809_vm9, %v766_v37 }
 0x22b   : > { %v893_v13 = vpop.permute.xlu1 %892 }
 0x22c   : > { %v891_v29 = vpop.permute.xlu0 %890  ;;  %965 = vst.msk [vmem:[#allocation2 + $0xc7] sm:$0xff] %vm940_vm10, %v893_v13 }
 0x22d   : > { %964 = vst.msk [vmem:[#allocation2 + $0xbf] sm:$0xfe] %vm938_vm11, %v891_v29 }
 0x22f   : > { %v897_v30 = vpop.permute.xlu1 %896 }
 0x230   : > { %v895_v38 = vpop.permute.xlu0 %894  ;;  %967 = vst.msk [vmem:[#allocation2 + $0xd7] sm:$0xff] %vm940_vm10, %v897_v30 }
 0x231   : > { %966 = vst.msk [vmem:[#allocation2 + $0xcf] sm:$0xfe] %vm938_vm11, %v895_v38 }
 0x233   : > { %v1023_v14 = vpop.permute.xlu1 %1022 }
 0x234   : > { %v1021_v39 = vpop.permute.xlu0 %1020  ;;  %1089 = vst.msk [vmem:[#allocation2 + $0xc9] sm:$0x7f] %vm1064_vm12, %v1023_v14 }
 0x235   : > { %1088 = vst.msk [vmem:[#allocation2 + $0xc1] sm:$0xff] %vm1062_vm13, %v1021_v39 }
 0x236   : > { %v1916_v40 = vpop.f32.mrb[4].mxu0 }
 0x237   : > { %v1523_v41 = vadd.f32 %v1916_v40, %v2918_v15  ;;  %v1514_v21 = vpop.f32.mrb[5].mxu0  ;;  %v1027_v22 = vpop.permute.xlu1 %1026 }
 0x238   : > { %v1515_v42 = vadd.f32 %v2918_v15, %v1514_v21  ;;  %v1025_v43 = vpop.permute.xlu0 %1024  ;;  %1091 = vst.msk [vmem:[#allocation2 + $0xd9] sm:$0x7f] %vm1064_vm12, %v1027_v22  ;;  %v1917_v44 = vpop.f32.mrb[6].mxu0 }
 0x239   : > { %1739 = vst [vmem:[%s2927_s14 + $0x30] sm:$0xff] %v1523_v41  ;;  %1090 = vst.msk [vmem:[#allocation2 + $0xd1] sm:$0xff] %vm1062_vm13, %v1025_v43  ;;  %v1526_v7 = vadd.f32 %v1917_v44, %v2918_v15  ;;  %v1517_v8 = vpop.f32.mrb[7].mxu0  ;;  %v1669_v52 = vmul.f32 %v1523_v41, %v1523_v41 }
 0x23a   : > { %v1628_v45 = vadd.f32 %v1627_v0, %v1515_v42  ;;  %v1667_v46 = vmul.f32 %v1515_v42, %v1515_v42  ;;  %1737 = vst [vmem:[%s2927_s14 + $0x20] sm:$0xff] %v1515_v42  ;;  %v1518_v47 = vadd.f32 %v2918_v15, %v1517_v8 }
 0x23b   : > { %1740 = vst [vmem:[%s2927_s14 + $0x38] sm:$0xff] %v1526_v7  ;;  %v1145_v49 = vpop.permute.xlu1 %1144  ;;  %v1670_v55 = vmul.f32 %v1526_v7, %v1526_v7 }
 0x23c   : > { %v1698_v48 = vadd.f32 %v1697_v1, %v1667_v46  ;;  %v1143_v50 = vpop.permute.xlu0 %1142  ;;  %v1629_v16 = vadd.f32 %v1628_v45, %v1518_v47  ;;  %v1668_v51 = vmul.f32 %v1518_v47, %v1518_v47  ;;  %1738 = vst [vmem:[%s2927_s14 + $0x28] sm:$0xff] %v1518_v47  ;;  %1210 = vst.msk [vmem:[#allocation2 + $0xc8] sm:$0xff] %vm1184_vm14, %v1145_v49 }
 0x23d   : > { %1209 = vst.msk [vmem:[#allocation2 + $0xc0] sm:$0xff] %vm1184_vm14, %v1143_v50 }
 0x23e   : > { %v1630_v23 = vadd.f32 %v1629_v16, %v1523_v41  ;;  %v1699_v24 = vadd.f32 %v1698_v48, %v1668_v51 }
 0x23f   : > { %v1149_v53 = vpop.permute.xlu1 %1148 }
 0x240   : > { %v1147_v54 = vpop.permute.xlu0 %1146  ;;  %v1700_v56 = vadd.f32 %v1699_v24, %v1669_v52  ;;  %1212 = vst.msk [vmem:[#allocation2 + $0xd8] sm:$0xff] %vm1184_vm14, %v1149_v53  ;;  %v1631_v9 = vadd.f32 %v1630_v23, %v1526_v7 }
 0x241   : > { %1211 = vst.msk [vmem:[#allocation2 + $0xd0] sm:$0xff] %vm1184_vm14, %v1147_v54 }
 0x242   : > { %v1701_v10 = vadd.f32 %v1700_v56, %v1670_v55 }
 0x243   : > { %v1266_v57 = vpop.permute.xlu1 %1265 }
 0x244   : > { %v1264_v58 = vpop.permute.xlu0 %1263  ;;  %1332 = vst.msk [vmem:[#allocation2 + $0xc7] sm:$0xff] %vm1307_vm15, %v1266_v57 }
 0x245   : > { %1331 = vst.msk [vmem:[#allocation2 + $0xbf] sm:$0xfe] %vm1305_vm1, %v1264_v58 }
 0x247   : > { %v1270_v59 = vpop.permute.xlu1 %1269 }
 0x248   : > { %v1268_v17 = vpop.permute.xlu0 %1267  ;;  %1334 = vst.msk [vmem:[#allocation2 + $0xd7] sm:$0xff] %vm1307_vm15, %v1270_v59 }
 0x249   : > { %1333 = vst.msk [vmem:[#allocation2 + $0xcf] sm:$0xfe] %vm1305_vm1, %v1268_v17 }
 0x24b   : > { %v642_v60 = vpop.permute.xlu1 %641  ;;  %v1362_v26 = vld [vmem:[#allocation2 + $0xc8] sm:$0xff] }
 0x24c   : > { %v640_v25 = vpop.permute.xlu0 %639  ;;  %v1361_v18 = vld [vmem:[#allocation2 + $0xc0] sm:$0xff]  ;;  %710 = vst.msk [vmem:[#allocation2 + $0xe9] sm:$0x7f] %vm681_vm7, %v642_v60 }
 0x24d   : > { %709 = vst.msk [vmem:[#allocation2 + $0xe1] sm:$0xff] %vm679_vm8, %v640_v25  ;;  %v1381_v61 = vpack.c.bf16 %v1362_v26, %v1361_v18 }
 0x24f   : > { %1934 = vmatprep.mubr.msk.bf16.mxu1 %vm242_vm0, %v1381_v61  ;;  %v772_v62 = vpop.permute.xlu1 %771  ;;  %v1364_v1 = vld [vmem:[#allocation2 + $0xd8] sm:$0xff] }
 0x250   : > { %v770_v63 = vpop.permute.xlu0 %769  ;;  %v1363_v0 = vld [vmem:[#allocation2 + $0xd0] sm:$0xff]  ;;  %839 = vst.msk [vmem:[#allocation2 + $0xe8] sm:$0xff] %vm809_vm9, %v772_v62 }
 0x251   : > { %838 = vst.msk [vmem:[#allocation2 + $0xe0] sm:$0xff] %vm809_vm9, %v770_v63  ;;  %v1382_v2 = vpack.c.bf16 %v1364_v1, %v1363_v0 }
 0x253   : > { %1935 = vmatmul.mubr.msk.bf16.gmra.mrb[8].mxu1 %vm242_vm0, %v1382_v2  ;;  %v901_v11 = vpop.permute.xlu1 %900 }
 0x254   : > { %v899_v12 = vpop.permute.xlu0 %898  ;;  %969 = vst.msk [vmem:[#allocation2 + $0xe7] sm:$0xff] %vm940_vm10, %v901_v11 }
 0x255   : > { %968 = vst.msk [vmem:[#allocation2 + $0xdf] sm:$0xfe] %vm938_vm11, %v899_v12 }
 0x257   : > { %v1031_v3 = vpop.permute.xlu1 %1030 }
 0x258   : > { %v1029_v4 = vpop.permute.xlu0 %1028  ;;  %1093 = vst.msk [vmem:[#allocation2 + $0xe9] sm:$0x7f] %vm1064_vm12, %v1031_v3 }
 0x259   : > { %1092 = vst.msk [vmem:[#allocation2 + $0xe1] sm:$0xff] %vm1062_vm13, %v1029_v4 }
 0x25b   : > { %v646_v31 = vpop.permute.xlu1 %645 }
 0x25c   : > { %v644_v32 = vpop.permute.xlu0 %643  ;;  %712 = vst.msk [vmem:[#allocation2 + $0xf9] sm:$0x7f] %vm681_vm7, %v646_v31 }
 0x25d   : > { %711 = vst.msk [vmem:[#allocation2 + $0xf1] sm:$0xff] %vm679_vm8, %v644_v32 }
 0x25f   : > { %v1153_v33 = vpop.permute.xlu1 %1152 }
 0x260   : > { %v1151_v34 = vpop.permute.xlu0 %1150  ;;  %1214 = vst.msk [vmem:[#allocation2 + $0xe8] sm:$0xff] %vm1184_vm14, %v1153_v33 }
 0x261   : > { %1213 = vst.msk [vmem:[#allocation2 + $0xe0] sm:$0xff] %vm1184_vm14, %v1151_v34 }
 0x263   : > { %v776_v27 = vpop.permute.xlu1 %775 }
 0x264   : > { %v774_v28 = vpop.permute.xlu0 %773  ;;  %841 = vst.msk [vmem:[#allocation2 + $0xf8] sm:$0xff] %vm809_vm9, %v776_v27 }
 0x265   : > { %840 = vst.msk [vmem:[#allocation2 + $0xf0] sm:$0xff] %vm809_vm9, %v774_v28 }
 0x266   : > { %v1920_v19 = vpop.f32.mrb[8].mxu0 }
 0x267   : > { %v1539_v20 = vadd.f32 %v1920_v19, %v2918_v15  ;;  %v1530_v35 = vpop.f32.mrb[9].mxu0  ;;  %v1274_v5 = vpop.permute.xlu1 %1273 }
 0x268   : > { %v1531_v36 = vadd.f32 %v2918_v15, %v1530_v35  ;;  %v1272_v6 = vpop.permute.xlu0 %1271  ;;  %1336 = vst.msk [vmem:[#allocation2 + $0xe7] sm:$0xff] %vm1307_vm15, %v1274_v5  ;;  %v1921_v37 = vpop.f32.mrb[10].mxu0 }
 0x269   : > { %1743 = vst [vmem:[%s2927_s14 + $0x50] sm:$0xff] %v1539_v20  ;;  %1335 = vst.msk [vmem:[#allocation2 + $0xdf] sm:$0xfe] %vm1305_vm1, %v1272_v6  ;;  %v1542_v30 = vadd.f32 %v1921_v37, %v2918_v15  ;;  %v1533_v38 = vpop.f32.mrb[11].mxu0  ;;  %v1673_v22 = vmul.f32 %v1539_v20, %v1539_v20 }
 0x26a   : > { %v1632_v13 = vadd.f32 %v1631_v9, %v1531_v36  ;;  %v1671_v29 = vmul.f32 %v1531_v36, %v1531_v36  ;;  %1741 = vst [vmem:[%s2927_s14 + $0x40] sm:$0xff] %v1531_v36  ;;  %v1534_v14 = vadd.f32 %v2918_v15, %v1533_v38 }
 0x26b   : > { %1744 = vst [vmem:[%s2927_s14 + $0x58] sm:$0xff] %v1542_v30  ;;  %v905_v40 = vpop.permute.xlu1 %904  ;;  %v1674_v7 = vmul.f32 %v1542_v30, %v1542_v30 }
 0x26c   : > { %v1702_v39 = vadd.f32 %v1701_v10, %v1671_v29  ;;  %v903_v41 = vpop.permute.xlu0 %902  ;;  %v1633_v21 = vadd.f32 %v1632_v13, %v1534_v14  ;;  %v1672_v42 = vmul.f32 %v1534_v14, %v1534_v14  ;;  %1742 = vst [vmem:[%s2927_s14 + $0x48] sm:$0xff] %v1534_v14  ;;  %971 = vst.msk [vmem:[#allocation2 + $0xf7] sm:$0xff] %vm940_vm10, %v905_v40 }
 0x26d   : > { %970 = vst.msk [vmem:[#allocation2 + $0xef] sm:$0xfe] %vm938_vm11, %v903_v41 }
 0x26e   : > { %v1634_v43 = vadd.f32 %v1633_v21, %v1539_v20  ;;  %v1703_v44 = vadd.f32 %v1702_v39, %v1672_v42 }
 0x26f   : > { %v1366_v46 = vld [vmem:[#allocation2 + $0xe8] sm:$0xff] }
 0x270   : > { %v1365_v45 = vld [vmem:[#allocation2 + $0xe0] sm:$0xff]  ;;  %v1704_v8 = vadd.f32 %v1703_v44, %v1673_v22  ;;  %v1635_v48 = vadd.f32 %v1634_v43, %v1542_v30 }
 0x271   : > { %v1383_v47 = vpack.c.bf16 %v1366_v46, %v1365_v45 }
 0x272   : > { %v1705_v49 = vadd.f32 %v1704_v8, %v1674_v7 }
 0x273   : > { %1938 = vmatprep.mubr.msk.bf16.mxu1 %vm242_vm0, %v1383_v47  ;;  %v1368_v16 = vld [vmem:[#allocation2 + $0xf8] sm:$0xff] }
 0x274   : > { %v1367_v50 = vld [vmem:[#allocation2 + $0xf0] sm:$0xff] }
 0x275   : > { %v1384_v51 = vpack.c.bf16 %v1368_v16, %v1367_v50 }
 0x277   : > { %1939 = vmatmul.mubr.msk.bf16.gmra.mrb[12].mxu1 %vm242_vm0, %v1384_v51 }
 0x296   : > { %v1924_v52 = vpop.f32.mrb[12].mxu0 }
 0x297   : > { %v1555_v23 = vadd.f32 %v1924_v52, %v2918_v15  ;;  %v1546_v24 = vpop.f32.mrb[13].mxu0 }
 0x298   : > { %v1547_v53 = vadd.f32 %v2918_v15, %v1546_v24  ;;  %v1925_v54 = vpop.f32.mrb[14].mxu0 }
 0x299   : > { %1747 = vst [vmem:[%s2927_s14 + $0x70] sm:$0xff] %v1555_v23  ;;  %v1558_v55 = vadd.f32 %v1925_v54, %v2918_v15  ;;  %v1549_v56 = vpop.f32.mrb[15].mxu0  ;;  %v1677_v60 = vmul.f32 %v1555_v23, %v1555_v23 }
 0x29a   : > { %v1636_v9 = vadd.f32 %v1635_v48, %v1547_v53  ;;  %v1675_v10 = vmul.f32 %v1547_v53, %v1547_v53  ;;  %1745 = vst [vmem:[%s2927_s14 + $0x60] sm:$0xff] %v1547_v53  ;;  %v1550_v57 = vadd.f32 %v2918_v15, %v1549_v56 }
 0x29b   : > { %1748 = vst [vmem:[%s2927_s14 + $0x78] sm:$0xff] %v1558_v55  ;;  %v1678_v26 = vmul.f32 %v1558_v55, %v1558_v55 }
 0x29c   : > { %v1706_v58 = vadd.f32 %v1705_v49, %v1675_v10  ;;  %v1637_v59 = vadd.f32 %v1636_v9, %v1550_v57  ;;  %v1676_v17 = vmul.f32 %v1550_v57, %v1550_v57  ;;  %1746 = vst [vmem:[%s2927_s14 + $0x68] sm:$0xff] %v1550_v57 }
 0x29e   : > { %v1638_v25 = vadd.f32 %v1637_v59, %v1555_v23  ;;  %v1707_v18 = vadd.f32 %v1706_v58, %v1676_v17 }
 0x2a0   : > { %v1708_v61 = vadd.f32 %v1707_v18, %v1677_v60  ;;  %v1639_v62 = vadd.f32 %v1638_v25, %v1558_v55 }
 0x2a2   : > { %v1709_v63 = vadd.f32 %v1708_v61, %v1678_v26 }
 0x2c6   : > { %v1928_v0 = vpop.f32.mrb[0].mxu1 }
 0x2c7   : > { %v1571_v1 = vadd.f32 %v1928_v0, %v2918_v15  ;;  %v1562_v2 = vpop.f32.mrb[1].mxu1 }
 0x2c8   : > { %v1563_v11 = vadd.f32 %v2918_v15, %v1562_v2  ;;  %v1929_v12 = vpop.f32.mrb[2].mxu1 }
 0x2c9   : > { %1751 = vst [vmem:[%s2927_s14 + $0x90] sm:$0xff] %v1571_v1  ;;  %v1574_v3 = vadd.f32 %v1929_v12, %v2918_v15  ;;  %v1565_v4 = vpop.f32.mrb[3].mxu1  ;;  %v1681_v19 = vmul.f32 %v1571_v1, %v1571_v1 }
 0x2ca   : > { %v1640_v31 = vadd.f32 %v1639_v62, %v1563_v11  ;;  %v1679_v32 = vmul.f32 %v1563_v11, %v1563_v11  ;;  %1749 = vst [vmem:[%s2927_s14 + $0x80] sm:$0xff] %v1563_v11  ;;  %v1566_v33 = vadd.f32 %v2918_v15, %v1565_v4 }
 0x2cb   : > { %1752 = vst [vmem:[%s2927_s14 + $0x98] sm:$0xff] %v1574_v3  ;;  %v1682_v36 = vmul.f32 %v1574_v3, %v1574_v3 }
 0x2cc   : > { %v1710_v34 = vadd.f32 %v1709_v63, %v1679_v32  ;;  %v1641_v27 = vadd.f32 %v1640_v31, %v1566_v33  ;;  %v1680_v28 = vmul.f32 %v1566_v33, %v1566_v33  ;;  %1750 = vst [vmem:[%s2927_s14 + $0x88] sm:$0xff] %v1566_v33 }
 0x2ce   : > { %v1642_v20 = vadd.f32 %v1641_v27, %v1571_v1  ;;  %v1711_v35 = vadd.f32 %v1710_v34, %v1680_v28 }
 0x2d0   : > { %v1712_v5 = vadd.f32 %v1711_v35, %v1681_v19  ;;  %v1643_v6 = vadd.f32 %v1642_v20, %v1574_v3 }
 0x2d2   : > { %v1713_v37 = vadd.f32 %v1712_v5, %v1682_v36 }
 0x2f6   : > { %v1932_v13 = vpop.f32.mrb[4].mxu1 }
 0x2f7   : > { %v1587_v29 = vadd.f32 %v1932_v13, %v2918_v15  ;;  %v1578_v30 = vpop.f32.mrb[5].mxu1 }
 0x2f8   : > { %v1579_v38 = vadd.f32 %v2918_v15, %v1578_v30  ;;  %v1933_v14 = vpop.f32.mrb[6].mxu1 }
 0x2f9   : > { %1755 = vst [vmem:[%s2927_s14 + $0xb0] sm:$0xff] %v1587_v29  ;;  %v1590_v39 = vadd.f32 %v1933_v14, %v2918_v15  ;;  %v1581_v40 = vpop.f32.mrb[7].mxu1  ;;  %v1685_v45 = vmul.f32 %v1587_v29, %v1587_v29 }
 0x2fa   : > { %v1644_v41 = vadd.f32 %v1643_v6, %v1579_v38  ;;  %v1683_v21 = vmul.f32 %v1579_v38, %v1579_v38  ;;  %1753 = vst [vmem:[%s2927_s14 + $0xa0] sm:$0xff] %v1579_v38  ;;  %v1582_v42 = vadd.f32 %v2918_v15, %v1581_v40 }
 0x2fb   : > { %1756 = vst [vmem:[%s2927_s14 + $0xb8] sm:$0xff] %v1590_v39  ;;  %v1686_v8 = vmul.f32 %v1590_v39, %v1590_v39 }
 0x2fc   : > { %v1714_v22 = vadd.f32 %v1713_v37, %v1683_v21  ;;  %v1645_v43 = vadd.f32 %v1644_v41, %v1582_v42  ;;  %v1684_v44 = vmul.f32 %v1582_v42, %v1582_v42  ;;  %1754 = vst [vmem:[%s2927_s14 + $0xa8] sm:$0xff] %v1582_v42 }
 0x2fe   : > { %v1646_v46 = vadd.f32 %v1645_v43, %v1587_v29  ;;  %v1715_v7 = vadd.f32 %v1714_v22, %v1684_v44 }
 0x300   : > { %v1716_v47 = vadd.f32 %v1715_v7, %v1685_v45  ;;  %v1647_v48 = vadd.f32 %v1646_v46, %v1590_v39 }
 0x302   : > { %v1717_v49 = vadd.f32 %v1716_v47, %v1686_v8 }
 0x326   : > { %v1936_v50 = vpop.f32.mrb[8].mxu1 }
 0x327   : > { %v1603_v16 = vadd.f32 %v1936_v50, %v2918_v15  ;;  %v1594_v51 = vpop.f32.mrb[9].mxu1 }
 0x328   : > { %v1595_v52 = vadd.f32 %v2918_v15, %v1594_v51  ;;  %v1937_v23 = vpop.f32.mrb[10].mxu1 }
 0x329   : > { %1759 = vst [vmem:[%s2927_s14 + $0xd0] sm:$0xff] %v1603_v16  ;;  %v1606_v24 = vadd.f32 %v1937_v23, %v2918_v15  ;;  %v1597_v53 = vpop.f32.mrb[11].mxu1  ;;  %v1689_v58 = vmul.f32 %v1603_v16, %v1603_v16 }
 0x32a   : > { %v1648_v54 = vadd.f32 %v1647_v48, %v1595_v52  ;;  %v1687_v55 = vmul.f32 %v1595_v52, %v1595_v52  ;;  %1757 = vst [vmem:[%s2927_s14 + $0xc0] sm:$0xff] %v1595_v52  ;;  %v1598_v56 = vadd.f32 %v2918_v15, %v1597_v53 }
 0x32b   : > { %1760 = vst [vmem:[%s2927_s14 + $0xd8] sm:$0xff] %v1606_v24  ;;  %v1690_v60 = vmul.f32 %v1606_v24, %v1606_v24 }
 0x32c   : > { %v1718_v9 = vadd.f32 %v1717_v49, %v1687_v55  ;;  %v1649_v10 = vadd.f32 %v1648_v54, %v1598_v56  ;;  %v1688_v57 = vmul.f32 %v1598_v56, %v1598_v56  ;;  %1758 = vst [vmem:[%s2927_s14 + $0xc8] sm:$0xff] %v1598_v56 }
 0x32e   : > { %v1650_v59 = vadd.f32 %v1649_v10, %v1603_v16  ;;  %v1719_v17 = vadd.f32 %v1718_v9, %v1688_v57 }
 0x330   : > { %v1720_v25 = vadd.f32 %v1719_v17, %v1689_v58  ;;  %v1651_v18 = vadd.f32 %v1650_v59, %v1606_v24 }
 0x332   : > { %v1721_v26 = vadd.f32 %v1720_v25, %v1690_v60 }
 0x34a   : > { %v1940_v61 = vpop.f32.mrb[12].mxu1 }
 0x34b   : > { %v1619_v62 = vadd.f32 %v1940_v61, %v2918_v15  ;;  %v1610_v63 = vpop.f32.mrb[13].mxu1 }
 0x34c   : > { %v1611_v0 = vadd.f32 %v2918_v15, %v1610_v63  ;;  %v1941_v1 = vpop.f32.mrb[14].mxu1 }
 0x34d   : > { %1763 = vst [vmem:[%s2927_s14 + $0xf0] sm:$0xff] %v1619_v62  ;;  %v1622_v2 = vadd.f32 %v1941_v1, %v2918_v15  ;;  %v1613_v11 = vpop.f32.mrb[15].mxu1  ;;  %v1693_v34 = vmul.f32 %v1619_v62, %v1619_v62 }
 0x34e   : > { %v1652_v12 = vadd.f32 %v1651_v18, %v1611_v0  ;;  %v1691_v3 = vmul.f32 %v1611_v0, %v1611_v0  ;;  %1761 = vst [vmem:[%s2927_s14 + $0xe0] sm:$0xff] %v1611_v0  ;;  %v1614_v4 = vadd.f32 %v2918_v15, %v1613_v11 }
 0x34f   : > { %1764 = vst [vmem:[%s2927_s14 + $0xf8] sm:$0xff] %v1622_v2  ;;  %v1694_v19 = vmul.f32 %v1622_v2, %v1622_v2 }
 0x350   : > { %v1722_v31 = vadd.f32 %v1721_v26, %v1691_v3  ;;  %v1653_v32 = vadd.f32 %v1652_v12, %v1614_v4  ;;  %v1692_v33 = vmul.f32 %v1614_v4, %v1614_v4  ;;  %1762 = vst [vmem:[%s2927_s14 + $0xe8] sm:$0xff] %v1614_v4 }
 0x352   : > { %v1654_v27 = vadd.f32 %v1653_v32, %v1619_v62  ;;  %v1723_v28 = vadd.f32 %v1722_v31, %v1692_v33 }
 0x354   : > { %v1655_v20 = vadd.f32 %v1654_v27, %v1622_v2  ;;  %v1724_v35 = vadd.f32 %v1723_v28, %v1693_v34 }
 0x356   : > { %v1656_v36 = vrot.slane %v1655_v20, 4  ;;  %v1725_v5 = vadd.f32 %v1724_v35, %v1694_v19 }
 0x358   : > { %v1657_v6 = vadd.f32 %v1656_v36, %v1655_v20  ;;  %v1726_v37 = vrot.slane %v1725_v5, 4 }
 0x35a   : > { %v1658_v13 = vrot.slane %v1657_v6, 2  ;;  %v1727_v29 = vadd.f32 %v1726_v37, %v1725_v5 }
 0x35c   : > { %v1659_v15 = vadd.f32 %v1658_v13, %v1657_v6  ;;  %v1728_v30 = vrot.slane %v1727_v29, 2 }
 0x35e   : > { %v1660_v38 = vrot.slane %v1659_v15, 1  ;;  %v1729_v14 = vadd.f32 %v1728_v30, %v1727_v29 }
 0x360   : > { %v1661_v39 = vadd.f32 %v1660_v38, %v1659_v15  ;;  %v1730_v40 = vrot.slane %v1729_v14, 1 }
 0x362   : > { %1662 = vst [vmem:[%s208_s20] sm:$0x1] %v1661_v39  ;;  %v1731_v41 = vadd.f32 %v1730_v40, %v1729_v14 }
 0x364   : > { %1732 = vst [vmem:[%s208_s20 + $0x1] sm:$0x1] %v1731_v41 }
 0x365 PF: > { %s15_s15 = sadd.s32 1, %s1976_s15  }
 0x366   : > { %p12_p4 = scmp.ge.s32.totalorder %s15_s15, 4  }
 0x368   :  { %14 = sbr.rel (!%p12_p4) target bundleno = 1 (0x1), region = 75 }

// kernel: vgg_block.4
= control target key start
LH: loop header
LB: loop body
LE: loop exit
PB: predicated region body
PF: predicated region fallthrough
CT: control target
= control target key end

     0   :  { %s2220_s21 = smov 0   ;;  %s3338_s0 = inlined_call_operand.vmem [shape: f32[2,16,16,128], index: 0, kind: input, shape index: {}]   ;;  %s3339_s1 = inlined_call_operand.vmem [shape: f32[1,128], index: 1, kind: input, shape index: {}]   ;;  %s3340_s2 = inlined_call_operand.vmem [shape: f32[1,128], index: 2, kind: input, shape index: {}]   ;;  %s3341_s3 = inlined_call_operand.vmem [shape: bf16[72,128], index: 3, kind: input, shape index: {}]   ;;  %s3342_s4 = inlined_call_operand.vmem [shape: f32[1,128], index: 4, kind: input, shape index: {}]   ;;  %s3343_s5 = inlined_call_operand.vmem [shape: f32[2,16,16,128], index: 5, kind: output, shape index: {0}]   ;;  %s3344_s6 = inlined_call_operand.vmem [shape: f32[2,2,128], index: 6, kind: output, shape index: {1}]  }
   0x1 LB: > { %s2031_s22 = sadd.s32 4294967295, %s2174_s21   ;;  %p2035_p0 = scmp.ge.s32.totalorder %s2174_s21, 1  ;;  %s2174_s21 = sphi %s2220_s21, %s17_s21  }
   0x2   : > { %p215_p1 = scmp.lt.s32.totalorder %s2174_s21, 3 }
   0x4   : > { %p216_p2 = pnand %p2035_p0, %p215_p1 }
   0x5   : > { %p249_p3 = scmp.lt.s32.totalorder (!%p216_p2), %s2031_s22, 1  ;;  %vm406_vm0 = vcmask (!%p216_p2), 588800   ;;  %v2233_v0 = vld [vmem:[%s3339_s1] ss:$0 sm:$0xff] (!%p216_p2)  ;;  %v2176_v1 = vmov (!%p216_p2), 0.0   ;;  %vm440_vm1 = vcmask (!%p216_p2), 64512  }
   0x6   : > { %219 = sbr.rel (%p216_p2) target bundleno = 876 (0x36c), region = 40  ;;  %411 = vst.msk [vmem:[#allocation2 + $0x20] sm:$0xff] (!%p216_p2), %vm406_vm0, %v2176_v1  ;;  %412 = vst.msk [vmem:[#allocation2 + $0x28] sm:$0xff] (!%p216_p2), %vm406_vm0, %v2176_v1  ;;  %v2278_v2 = vld [vmem:[%s3340_s2] ss:$0 sm:$0xff] (!%p216_p2)  ;;  %vm442_vm2 = vcmask (!%p216_p2), 63488  }
   0x7   : > { %407 = vst.msk [vmem:[#allocation2] sm:$0xff] (!%p216_p2), %vm406_vm0, %v2176_v1  ;;  %408 = vst.msk [vmem:[#allocation2 + $0x8] sm:$0xff] (!%p216_p2), %vm406_vm0, %v2176_v1  ;;  %s2177_s7 = smov (!%p216_p2), 8   ;;  %s2178_s8 = smov (!%p216_p2), 16   ;;  %vm592_vm3 = vcmask (!%p216_p2), 130112   ;;  %vm1640_vm4 = vcmask (!%p216_p2), 1043456  }
   0x8   : > { %409 = vst.msk [vmem:[#allocation2 + $0x10] sm:$0xff] (!%p216_p2), %vm406_vm0, %v2176_v1  ;;  %410 = vst.msk [vmem:[#allocation2 + $0x18] sm:$0xff] (!%p216_p2), %vm406_vm0, %v2176_v1  ;;  %s2179_s9 = smov (!%p216_p2), 24   ;;  %s2180_s10 = smov (!%p216_p2), 32   ;;  %vm715_vm5 = vcmask (!%p216_p2), 195712   ;;  %vm713_vm6 = vcmask (!%p216_p2), 195713  }
   0x9   : > { %413 = vst.msk [vmem:[#allocation2 + $0x30] sm:$0xff] (!%p216_p2), %vm406_vm0, %v2176_v1  ;;  %414 = vst.msk [vmem:[#allocation2 + $0x38] sm:$0xff] (!%p216_p2), %vm406_vm0, %v2176_v1  ;;  %s2181_s11 = smov (!%p216_p2), 40   ;;  %s2182_s16 = smov (!%p216_p2), 48   ;;  %vm845_vm7 = vcmask (!%p216_p2), 260288   ;;  %vm843_vm8 = vcmask (!%p216_p2), 261312  }
   0xa   : > { %415 = vst.msk [vmem:[#allocation2 + $0x40] sm:$0xff] (!%p216_p2), %vm406_vm0, %v2176_v1  ;;  %416 = vst.msk [vmem:[#allocation2 + $0x48] sm:$0xff] (!%p216_p2), %vm406_vm0, %v2176_v1  ;;  %s2183_s23 = smov (!%p216_p2), 56   ;;  %s2184_s27 = smov (!%p216_p2), 64   ;;  %vm973_vm9 = vcmask (!%p216_p2), 326912   ;;  %vm1104_vm10 = vcmask (!%p216_p2), 392512  }
   0xb   : > { %417 = vst.msk [vmem:[#allocation2 + $0x50] sm:$0xff] (!%p216_p2), %vm406_vm0, %v2176_v1  ;;  %418 = vst.msk [vmem:[#allocation2 + $0x58] sm:$0xff] (!%p216_p2), %vm406_vm0, %v2176_v1  ;;  %vm1102_vm11 = vcmask (!%p216_p2), 392513   ;;  %vm1228_vm12 = vcmask (!%p216_p2), 457088   ;;  %vm1226_vm13 = vcmask (!%p216_p2), 458112   ;;  %vm1348_vm14 = vcmask (!%p216_p2), 523712  }
   0xc   : > { %419 = vst.msk [vmem:[#allocation2 + $0x60] sm:$0xff] (!%p216_p2), %vm406_vm0, %v2176_v1  ;;  %420 = vst.msk [vmem:[#allocation2 + $0x68] sm:$0xff] (!%p216_p2), %vm406_vm0, %v2176_v1  ;;  %vm1471_vm15 = vcmask (!%p216_p2), 589312  }
   0xd   : > { %s3346_s22 = smov (!%p249_p3, %s2031_s22), 1  ;;  %421 = vst.msk [vmem:[#allocation2 + $0x70] sm:$0xff] %vm406_vm0, %v2176_v1  ;;  %422 = vst.msk [vmem:[#allocation2 + $0x78] sm:$0xff] %vm406_vm0, %v2176_v1 }
   0xe   : > { %423 = vst.msk [vmem:[#allocation2 + $0x80] sm:$0xff] %vm406_vm0, %v2176_v1  ;;  %424 = vst.msk [vmem:[#allocation2 + $0x88] sm:$0xff] %vm406_vm0, %v2176_v1  ;;  %s2067_s25 = sshll.u32 %s3346_s22, 8 }
   0xf   : > { %425 = vst.msk [vmem:[#allocation2 + $0x90] sm:$0xff] %vm406_vm0, %v2176_v1  ;;  %426 = vst.msk [vmem:[#allocation2 + $0x98] sm:$0xff] %vm406_vm0, %v2176_v1  ;;  %s2273_s28 = scalar_lea.vmem %s3338_s0, %s2067_s25  ;;  %s3207_s12 = scalar_lea.vmem %s3343_s5, %s2067_s25 }
  0x10   : > { %427 = vst.msk [vmem:[#allocation2 + $0xa0] sm:$0xff] %vm406_vm0, %v2176_v1  ;;  %428 = vst.msk [vmem:[#allocation2 + $0xa8] sm:$0xff] %vm406_vm0, %v2176_v1  ;;  %v266_v3 = vld [vmem:[%s2273_s28 + $0x10] sm:$0xff]  ;;  %v264_v4 = vld [vmem:[%s2273_s28] sm:$0xff]  ;;  %s2040_s25 = sshll.u32 %s3346_s22, 1 }
  0x11   : > { %429 = vst.msk [vmem:[#allocation2 + $0xb0] sm:$0xff] %vm406_vm0, %v2176_v1  ;;  %430 = vst.msk [vmem:[#allocation2 + $0xb8] sm:$0xff] %vm406_vm0, %v2176_v1  ;;  %v267_v5 = vld [vmem:[%s2273_s28 + $0x18] sm:$0xff]  ;;  %v306_v6 = vmul.f32 %v2233_v0, %v266_v3  ;;  %v304_v7 = vmul.f32 %v2233_v0, %v264_v4  ;;  %v265_v9 = vld [vmem:[%s2273_s28 + $0x8] sm:$0xff]  ;;  %s262_s15 = scalar_lea.vmem %s3344_s6, %s2040_s25 }
  0x12   : > { %431 = vst.msk [vmem:[#allocation2 + $0xc0] sm:$0xff] %vm406_vm0, %v2176_v1  ;;  %432 = vst.msk [vmem:[#allocation2 + $0xc8] sm:$0xff] %vm406_vm0, %v2176_v1  ;;  %v307_v8 = vmul.f32 %v2233_v0, %v267_v5  ;;  %v269_v10 = vld [vmem:[%s2273_s28 + $0x28] sm:$0xff]  ;;  %v268_v11 = vld [vmem:[%s2273_s28 + $0x20] sm:$0xff]  ;;  %v305_v12 = vmul.f32 %v2233_v0, %v265_v9 }
  0x13   : > { %433 = vst.msk [vmem:[#allocation2 + $0xd0] sm:$0xff] %vm406_vm0, %v2176_v1  ;;  %434 = vst.msk [vmem:[#allocation2 + $0xd8] sm:$0xff] %vm406_vm0, %v2176_v1  ;;  %v309_v13 = vmul.f32 %v2233_v0, %v269_v10  ;;  %v308_v14 = vmul.f32 %v2233_v0, %v268_v11  ;;  %v271_v15 = vld [vmem:[%s2273_s28 + $0x38] sm:$0xff]  ;;  %v270_v16 = vld [vmem:[%s2273_s28 + $0x30] sm:$0xff]  ;;  %v344_v17 = vadd.f32 %v2278_v2, %v306_v6 }
  0x14   : > { %435 = vst.msk [vmem:[#allocation2 + $0xe0] sm:$0xff] %vm406_vm0, %v2176_v1  ;;  %436 = vst.msk [vmem:[#allocation2 + $0xe8] sm:$0xff] %vm406_vm0, %v2176_v1  ;;  %v342_v18 = vadd.f32 %v2278_v2, %v304_v7  ;;  %v345_v19 = vadd.f32 %v2278_v2, %v307_v8  ;;  %v311_v20 = vmul.f32 %v2233_v0, %v271_v15  ;;  %v273_v25 = vld [vmem:[%s2273_s28 + $0x48] sm:$0xff]  ;;  %v272_v26 = vld [vmem:[%s2273_s28 + $0x40] sm:$0xff] }
  0x15   : > { %437 = vst.msk [vmem:[#allocation2 + $0xf0] sm:$0xff] %vm406_vm0, %v2176_v1  ;;  %438 = vst.msk [vmem:[#allocation2 + $0xf8] sm:$0xff] %vm406_vm0, %v2176_v1  ;;  %v343_v21 = vadd.f32 %v2278_v2, %v305_v12  ;;  %v347_v22 = vadd.f32 %v2278_v2, %v309_v13  ;;  %v346_v23 = vadd.f32 %v2278_v2, %v308_v14  ;;  %v275_v27 = vld [vmem:[%s2273_s28 + $0x58] sm:$0xff]  ;;  %v2305_v28 = vmax.f32 %v344_v17, 0.0  ;;  %v274_v32 = vld [vmem:[%s2273_s28 + $0x50] sm:$0xff] }
  0x16   : > { %v310_v24 = vmul.f32 %v2233_v0, %v270_v16  ;;  %v2307_v29 = vmax.f32 %v342_v18, 0.0  ;;  %v2309_v30 = vmax.f32 %v345_v19, 0.0  ;;  %v349_v31 = vadd.f32 %v2278_v2, %v311_v20  ;;  %v277_v33 = vld [vmem:[%s2273_s28 + $0x68] sm:$0xff]  ;;  %v276_v34 = vld [vmem:[%s2273_s28 + $0x60] sm:$0xff]  ;;  %v279_v39 = vld [vmem:[%s2273_s28 + $0x78] sm:$0xff] }
  0x17   : > { %v2315_v35 = vmax.f32 %v343_v21, 0.0  ;;  %v2317_v36 = vmax.f32 %v347_v22, 0.0  ;;  %v2319_v37 = vmax.f32 %v346_v23, 0.0  ;;  %506 = vrot.lane.b32.xlu1 %v2305_v28, %s2177_s7  ;;  %v313_v41 = vmul.f32 %v2233_v0, %v273_v25  ;;  %v278_v44 = vld [vmem:[%s2273_s28 + $0x70] sm:$0xff]  ;;  %444 = vst.msk [vmem:[#allocation2 + $0x21] sm:$0xff] %vm440_vm1, %v2305_v28  ;;  %v281_v53 = vld [vmem:[%s2273_s28 + $0x88] sm:$0xff] }
  0x18   : > { %v348_v38 = vadd.f32 %v2278_v2, %v310_v24  ;;  %502 = vrot.lane.b32.xlu0 %v2307_v29, %s2177_s7  ;;  %v2327_v40 = vmax.f32 %v349_v31, 0.0  ;;  %v312_v42 = vmul.f32 %v2233_v0, %v272_v26  ;;  %v315_v43 = vmul.f32 %v2233_v0, %v275_v27  ;;  %441 = vst.msk [vmem:[#allocation2 + $0x11] sm:$0xff] %vm440_vm1, %v2307_v29  ;;  %v280_v58 = vld [vmem:[%s2273_s28 + $0x80] sm:$0xff]  ;;  %v283_v59 = vld [vmem:[%s2273_s28 + $0x98] sm:$0xff]  ;;  %v282_v60 = vld [vmem:[%s2273_s28 + $0x90] sm:$0xff] }
  0x19   : > { %445 = vst.msk [vmem:[#allocation2 + $0x29] sm:$0x7f] %vm442_vm2, %v2309_v30  ;;  %v314_v46 = vmul.f32 %v2233_v0, %v274_v32  ;;  %v317_v47 = vmul.f32 %v2233_v0, %v277_v33  ;;  %v316_v48 = vmul.f32 %v2233_v0, %v276_v34  ;;  %443 = vst.msk [vmem:[#allocation2 + $0x19] sm:$0x7f] %vm442_vm2, %v2315_v35  ;;  %v285_v3 = vld [vmem:[%s2273_s28 + $0xa8] sm:$0xff]  ;;  %v284_v4 = vld [vmem:[%s2273_s28 + $0xa0] sm:$0xff] }
  0x1a   : > { %v2339_v45 = vmax.f32 %v348_v38, 0.0  ;;  %446 = vst.msk [vmem:[#allocation2 + $0x31] sm:$0xff] %vm440_vm1, %v2319_v37  ;;  %v351_v49 = vadd.f32 %v2278_v2, %v313_v41  ;;  %v350_v50 = vadd.f32 %v2278_v2, %v312_v42  ;;  %v353_v51 = vadd.f32 %v2278_v2, %v315_v43  ;;  %v287_v13 = vld [vmem:[%s2273_s28 + $0xb8] sm:$0xff]  ;;  %v286_v18 = vld [vmem:[%s2273_s28 + $0xb0] sm:$0xff]  ;;  %v289_v26 = vld [vmem:[%s2273_s28 + $0xc8] sm:$0xff] }
  0x1b   : > { %447 = vst.msk [vmem:[#allocation2 + $0x39] sm:$0x7f] %vm442_vm2, %v2317_v36  ;;  %v319_v52 = vmul.f32 %v2233_v0, %v279_v39  ;;  %449 = vst.msk [vmem:[#allocation2 + $0x49] sm:$0x7f] %vm442_vm2, %v2327_v40  ;;  %v352_v54 = vadd.f32 %v2278_v2, %v314_v46  ;;  %v355_v55 = vadd.f32 %v2278_v2, %v317_v47  ;;  %508 = vrot.lane.b32.xlu1 %v2309_v30, %s2177_s7  ;;  %v288_v27 = vld [vmem:[%s2273_s28 + $0xc0] sm:$0xff]  ;;  %v291_v38 = vld [vmem:[%s2273_s28 + $0xd8] sm:$0xff] }
  0x1c   : > { %v354_v56 = vadd.f32 %v2278_v2, %v316_v48  ;;  %v318_v57 = vmul.f32 %v2233_v0, %v278_v44  ;;  %448 = vst.msk [vmem:[#allocation2 + $0x41] sm:$0xff] %vm440_vm1, %v2339_v45  ;;  %504 = vrot.lane.b32.xlu0 %v2315_v35, %s2177_s7  ;;  %v2370_v61 = vmax.f32 %v351_v49, 0.0  ;;  %v2372_v62 = vmax.f32 %v350_v50, 0.0  ;;  %v290_v39 = vld [vmem:[%s2273_s28 + $0xd0] sm:$0xff]  ;;  %v293_v41 = vld [vmem:[%s2273_s28 + $0xe8] sm:$0xff]  ;;  %v292_v47 = vld [vmem:[%s2273_s28 + $0xe0] sm:$0xff] }
  0x1d   : > { %v2374_v63 = vmax.f32 %v353_v51, 0.0  ;;  %v357_v1 = vadd.f32 %v2278_v2, %v319_v52  ;;  %v2379_v5 = vmax.f32 %v352_v54, 0.0  ;;  %v2381_v6 = vmax.f32 %v355_v55, 0.0 }
  0x1e   : > { %v2383_v7 = vmax.f32 %v354_v56, 0.0  ;;  %v356_v8 = vadd.f32 %v2278_v2, %v318_v57  ;;  %v321_v10 = vmul.f32 %v2233_v0, %v281_v53  ;;  %v320_v11 = vmul.f32 %v2233_v0, %v280_v58  ;;  %450 = vst.msk [vmem:[#allocation2 + $0x51] sm:$0xff] %vm440_vm1, %v2372_v62 }
  0x1f   : > { %v2386_v9 = vmax.f32 %v357_v1, 0.0  ;;  %v323_v12 = vmul.f32 %v2233_v0, %v283_v59  ;;  %451 = vst.msk [vmem:[#allocation2 + $0x59] sm:$0x7f] %vm442_vm2, %v2370_v61  ;;  %453 = vst.msk [vmem:[#allocation2 + $0x69] sm:$0x7f] %vm442_vm2, %v2374_v63  ;;  %v322_v15 = vmul.f32 %v2233_v0, %v282_v60  ;;  %v325_v16 = vmul.f32 %v2233_v0, %v285_v3 }
  0x20   : > { %v2398_v14 = vmax.f32 %v356_v8, 0.0  ;;  %v324_v17 = vmul.f32 %v2233_v0, %v284_v4  ;;  %452 = vst.msk [vmem:[#allocation2 + $0x61] sm:$0xff] %vm440_vm1, %v2379_v5  ;;  %454 = vst.msk [vmem:[#allocation2 + $0x71] sm:$0xff] %vm440_vm1, %v2383_v7  ;;  %512 = vrot.lane.b32.xlu1 %v2317_v36, %s2177_s7  ;;  %510 = vrot.lane.b32.xlu0 %v2319_v37, %s2177_s7  ;;  %v359_v19 = vadd.f32 %v2278_v2, %v321_v10 }
  0x21   : > { %455 = vst.msk [vmem:[#allocation2 + $0x79] sm:$0x7f] %vm442_vm2, %v2381_v6  ;;  %v358_v20 = vadd.f32 %v2278_v2, %v320_v11  ;;  %v361_v21 = vadd.f32 %v2278_v2, %v323_v12  ;;  %457 = vst.msk [vmem:[#allocation2 + $0x89] sm:$0x7f] %vm442_vm2, %v2386_v9  ;;  %v360_v22 = vadd.f32 %v2278_v2, %v322_v15 }
  0x22   : > { %v363_v23 = vadd.f32 %v2278_v2, %v325_v16  ;;  %v362_v24 = vadd.f32 %v2278_v2, %v324_v17  ;;  %v327_v25 = vmul.f32 %v2233_v0, %v287_v13  ;;  %456 = vst.msk [vmem:[#allocation2 + $0x81] sm:$0xff] %vm440_vm1, %v2398_v14  ;;  %v2427_v31 = vmax.f32 %v359_v19, 0.0 }
  0x23   : > { %v2429_v32 = vmax.f32 %v358_v20, 0.0  ;;  %v2431_v33 = vmax.f32 %v361_v21, 0.0  ;;  %v326_v34 = vmul.f32 %v2233_v0, %v286_v18  ;;  %v2437_v42 = vmax.f32 %v360_v22, 0.0 }
  0x24   : > { %v2439_v43 = vmax.f32 %v363_v23, 0.0  ;;  %v2441_v44 = vmax.f32 %v362_v24, 0.0  ;;  %v365_v46 = vadd.f32 %v2278_v2, %v327_v25  ;;  %516 = vrot.lane.b32.xlu1 %v2327_v40, %s2177_s7  ;;  %514 = vrot.lane.b32.xlu0 %v2339_v45, %s2177_s7  ;;  %v329_v49 = vmul.f32 %v2233_v0, %v289_v26  ;;  %459 = vst.msk [vmem:[#allocation2 + $0x99] sm:$0x7f] %vm442_vm2, %v2427_v31 }
  0x25   : > { %v364_v48 = vadd.f32 %v2278_v2, %v326_v34  ;;  %v328_v50 = vmul.f32 %v2233_v0, %v288_v27  ;;  %458 = vst.msk [vmem:[#allocation2 + $0x91] sm:$0xff] %vm440_vm1, %v2429_v32  ;;  %v331_v52 = vmul.f32 %v2233_v0, %v291_v38  ;;  %v330_v53 = vmul.f32 %v2233_v0, %v290_v39  ;;  %v2161_v27 = vld [vmem:[%s3341_s3] sm:$0xff]   ;;  %v2162_v34 = vld [vmem:[%s3341_s3 + $0x8] sm:$0xff]  }
  0x26   : > { %461 = vst.msk [vmem:[#allocation2 + $0xa9] sm:$0x7f] %vm442_vm2, %v2431_v33  ;;  %v2458_v51 = vmax.f32 %v365_v46, 0.0  ;;  %v333_v54 = vmul.f32 %v2233_v0, %v293_v41  ;;  %463 = vst.msk [vmem:[#allocation2 + $0xb9] sm:$0x7f] %vm442_vm2, %v2439_v43  ;;  %v367_v56 = vadd.f32 %v2278_v2, %v329_v49  ;;  %v332_v58 = vmul.f32 %v2233_v0, %v292_v47  ;;  %v2163_v41 = vld [vmem:[%s3341_s3 + $0x10] sm:$0xff]  }
  0x27   : > { %460 = vst.msk [vmem:[#allocation2 + $0xa1] sm:$0xff] %vm440_vm1, %v2437_v42  ;;  %462 = vst.msk [vmem:[#allocation2 + $0xb1] sm:$0xff] %vm440_vm1, %v2441_v44  ;;  %v2469_v55 = vmax.f32 %v364_v48, 0.0  ;;  %v366_v57 = vadd.f32 %v2278_v2, %v328_v50  ;;  %v369_v59 = vadd.f32 %v2278_v2, %v331_v52  ;;  %v368_v60 = vadd.f32 %v2278_v2, %v330_v53  ;;  %v2164_v48 = vld [vmem:[%s3341_s3 + $0x18] sm:$0xff]   ;;  %v2165_v52 = vld [vmem:[%s3341_s3 + $0x20] ss:$0 sps:$4 sm:$0xff]  }
  0x28   : > { %v371_v1 = vadd.f32 %v2278_v2, %v333_v54  ;;  %465 = vst.msk [vmem:[#allocation2 + $0xc9] sm:$0x7f] %vm442_vm2, %v2458_v51  ;;  %520 = vrot.lane.b32.xlu1 %v2370_v61, %s2177_s7  ;;  %518 = vrot.lane.b32.xlu0 %v2372_v62, %s2177_s7  ;;  %v2483_v3 = vmax.f32 %v367_v56, 0.0  ;;  %v370_v0 = vadd.f32 %v2278_v2, %v332_v58  ;;  %v1642_v53 = vsel %vm1640_vm4, %v2165_v52, 0 }
  0x29   : > { %v2485_v4 = vmax.f32 %v366_v57, 0.0  ;;  %464 = vst.msk [vmem:[#allocation2 + $0xc1] sm:$0xff] %vm440_vm1, %v2469_v55  ;;  %v2490_v8 = vmax.f32 %v369_v59, 0.0  ;;  %v2492_v10 = vmax.f32 %v368_v60, 0.0  ;;  %2090 = vmatprep.subr.bf16.mxu0 %v2161_v27  ;;  %2132 = vmatprep.subr.bf16.mxu1 %v2161_v27 }
  0x2a   : > { %v2494_v11 = vmax.f32 %v371_v1, 0.0  ;;  %v2496_v12 = vmax.f32 %v370_v0, 0.0  ;;  %467 = vst.msk [vmem:[#allocation2 + $0xd9] sm:$0x7f] %vm442_vm2, %v2483_v3  ;;  %2091 = vmatpush3.bf16.msra.mxu0 %v2161_v27  ;;  %2137 = vmatpush3.bf16.msra.mxu1 %v2161_v27 }
  0x2b   : > { %466 = vst.msk [vmem:[#allocation2 + $0xd1] sm:$0xff] %vm440_vm1, %v2485_v4  ;;  %468 = vst.msk [vmem:[#allocation2 + $0xe1] sm:$0xff] %vm440_vm1, %v2492_v10  ;;  %2092 = vmatprep.subr.bf16.mxu0 %v2162_v34  ;;  %2133 = vmatprep.subr.bf16.mxu1 %v2162_v34 }
  0x2c   : > { %469 = vst.msk [vmem:[#allocation2 + $0xe9] sm:$0x7f] %vm442_vm2, %v2490_v8  ;;  %471 = vst.msk [vmem:[#allocation2 + $0xf9] sm:$0x7f] %vm442_vm2, %v2494_v11  ;;  %524 = vrot.lane.b32.xlu1 %v2374_v63, %s2177_s7  ;;  %522 = vrot.lane.b32.xlu0 %v2379_v5, %s2177_s7 }
  0x2d   : > { %470 = vst.msk [vmem:[#allocation2 + $0xf1] sm:$0xff] %vm440_vm1, %v2496_v12  ;;  %vm1469_vm1 = vcmask 589313  }
  0x2e   : > { %2093 = vmatpush3.bf16.msra.mxu0 %v2162_v34  ;;  %2138 = vmatpush3.bf16.msra.mxu1 %v2162_v34 }
  0x2f   : > { %2094 = vmatprep.subr.bf16.mxu0 %v2163_v41  ;;  %2134 = vmatprep.subr.bf16.mxu1 %v2163_v41 }
  0x30   : > { %528 = vrot.lane.b32.xlu1 %v2381_v6, %s2177_s7  ;;  %526 = vrot.lane.b32.xlu0 %v2383_v7, %s2177_s7 }
  0x32   : > { %2095 = vmatpush3.bf16.msra.mxu0 %v2163_v41  ;;  %2139 = vmatpush3.bf16.msra.mxu1 %v2163_v41 }
  0x33   : > { %2096 = vmatprep.subr.bf16.mxu0 %v2164_v48  ;;  %2135 = vmatprep.subr.bf16.mxu1 %v2164_v48 }
  0x34   : > { %532 = vrot.lane.b32.xlu1 %v2386_v9, %s2177_s7  ;;  %530 = vrot.lane.b32.xlu0 %v2398_v14, %s2177_s7 }
  0x36   : > { %2097 = vmatpush3.bf16.msra.mxu0 %v2164_v48  ;;  %2140 = vmatpush3.bf16.msra.mxu1 %v2164_v48 }
  0x37   : > { %2142 = vmatprep.subr.msk.bf16.mxu0 %vm1640_vm4, %v2165_v52  ;;  %2143 = vmatprep.subr.msk.bf16.mxu1 %vm1640_vm4, %v2165_v52 }
  0x38   : > { %536 = vrot.lane.b32.xlu1 %v2427_v31, %s2177_s7  ;;  %534 = vrot.lane.b32.xlu0 %v2429_v32, %s2177_s7 }
  0x3a   : > { %2099 = vmatpush3.bf16.msra.mxu0 %v1642_v53  ;;  %2141 = vmatpush3.bf16.msra.mxu1 %v1642_v53 }
  0x3c   : > { %540 = vrot.lane.b32.xlu1 %v2431_v33, %s2177_s7  ;;  %538 = vrot.lane.b32.xlu0 %v2437_v42, %s2177_s7 }
  0x40   : > { %544 = vrot.lane.b32.xlu1 %v2439_v43, %s2177_s7  ;;  %542 = vrot.lane.b32.xlu0 %v2441_v44, %s2177_s7 }
  0x44   : > { %548 = vrot.lane.b32.xlu1 %v2458_v51, %s2177_s7  ;;  %546 = vrot.lane.b32.xlu0 %v2469_v55, %s2177_s7 }
  0x48   : > { %552 = vrot.lane.b32.xlu1 %v2483_v3, %s2177_s7  ;;  %550 = vrot.lane.b32.xlu0 %v2485_v4, %s2177_s7 }
  0x4c   : > { %556 = vrot.lane.b32.xlu1 %v2490_v8, %s2177_s7  ;;  %554 = vrot.lane.b32.xlu0 %v2492_v10, %s2177_s7 }
  0x50   : > { %560 = vrot.lane.b32.xlu1 %v2494_v11, %s2177_s7  ;;  %558 = vrot.lane.b32.xlu0 %v2496_v12, %s2177_s7 }
  0x54   : > { %625 = vrot.lane.b32.xlu1 %v2315_v35, %s2178_s8  ;;  %623 = vrot.lane.b32.xlu0 %v2307_v29, %s2178_s8 }
  0x58   : > { %629 = vrot.lane.b32.xlu1 %v2309_v30, %s2178_s8  ;;  %627 = vrot.lane.b32.xlu0 %v2305_v28, %s2178_s8 }
  0x5c   : > { %633 = vrot.lane.b32.xlu1 %v2317_v36, %s2178_s8  ;;  %631 = vrot.lane.b32.xlu0 %v2319_v37, %s2178_s8 }
  0x60   : > { %637 = vrot.lane.b32.xlu1 %v2327_v40, %s2178_s8  ;;  %635 = vrot.lane.b32.xlu0 %v2339_v45, %s2178_s8 }
  0x64   : > { %641 = vrot.lane.b32.xlu1 %v2370_v61, %s2178_s8  ;;  %639 = vrot.lane.b32.xlu0 %v2372_v62, %s2178_s8 }
  0x68   : > { %645 = vrot.lane.b32.xlu1 %v2374_v63, %s2178_s8  ;;  %643 = vrot.lane.b32.xlu0 %v2379_v5, %s2178_s8 }
  0x6c   : > { %649 = vrot.lane.b32.xlu1 %v2381_v6, %s2178_s8  ;;  %647 = vrot.lane.b32.xlu0 %v2383_v7, %s2178_s8 }
  0x70   : > { %653 = vrot.lane.b32.xlu1 %v2386_v9, %s2178_s8  ;;  %651 = vrot.lane.b32.xlu0 %v2398_v14, %s2178_s8 }
  0x74   : > { %657 = vrot.lane.b32.xlu1 %v2427_v31, %s2178_s8  ;;  %655 = vrot.lane.b32.xlu0 %v2429_v32, %s2178_s8 }
  0x78   : > { %661 = vrot.lane.b32.xlu1 %v2431_v33, %s2178_s8  ;;  %659 = vrot.lane.b32.xlu0 %v2437_v42, %s2178_s8 }
  0x7c   : > { %665 = vrot.lane.b32.xlu1 %v2439_v43, %s2178_s8  ;;  %663 = vrot.lane.b32.xlu0 %v2441_v44, %s2178_s8 }
  0x80   : > { %669 = vrot.lane.b32.xlu1 %v2458_v51, %s2178_s8  ;;  %667 = vrot.lane.b32.xlu0 %v2469_v55, %s2178_s8 }
  0x84   : > { %673 = vrot.lane.b32.xlu1 %v2483_v3, %s2178_s8  ;;  %671 = vrot.lane.b32.xlu0 %v2485_v4, %s2178_s8 }
  0x88   : > { %677 = vrot.lane.b32.xlu1 %v2490_v8, %s2178_s8  ;;  %675 = vrot.lane.b32.xlu0 %v2492_v10, %s2178_s8 }
  0x89   : > { %v507_v2 = vpop.permute.xlu1 %506 }
  0x8a   : > { %v503_v13 = vpop.permute.xlu0 %502  ;;  %595 = vst.msk [vmem:[#allocation2 + $0x20] sm:$0xff] %vm592_vm3, %v507_v2 }
  0x8b   : > { %593 = vst.msk [vmem:[#allocation2 + $0x10] sm:$0xff] %vm592_vm3, %v503_v13 }
  0x8c   : > { %681 = vrot.lane.b32.xlu1 %v2494_v11, %s2178_s8  ;;  %679 = vrot.lane.b32.xlu0 %v2496_v12, %s2178_s8 }
  0x8d   : > { %v509_v15 = vpop.permute.xlu1 %508 }
  0x8e   : > { %v505_v16 = vpop.permute.xlu0 %504  ;;  %596 = vst.msk [vmem:[#allocation2 + $0x28] sm:$0xff] %vm592_vm3, %v509_v15 }
  0x8f   : > { %594 = vst.msk [vmem:[#allocation2 + $0x18] sm:$0xff] %vm592_vm3, %v505_v16 }
  0x90   : > { %749 = vrot.lane.b32.xlu1 %v2315_v35, %s2179_s9  ;;  %747 = vrot.lane.b32.xlu0 %v2307_v29, %s2179_s9 }
  0x92   : > { %v513_v17 = vpop.permute.xlu1 %512  ;;  %v511_v18 = vpop.permute.xlu0 %510 }
  0x93   : > { %598 = vst.msk [vmem:[#allocation2 + $0x38] sm:$0xff] %vm592_vm3, %v513_v17  ;;  %597 = vst.msk [vmem:[#allocation2 + $0x30] sm:$0xff] %vm592_vm3, %v511_v18 }
  0x94   : > { %753 = vrot.lane.b32.xlu1 %v2309_v30, %s2179_s9  ;;  %751 = vrot.lane.b32.xlu0 %v2305_v28, %s2179_s9 }
  0x96   : > { %v517_v19 = vpop.permute.xlu1 %516  ;;  %v515_v20 = vpop.permute.xlu0 %514 }
  0x97   : > { %600 = vst.msk [vmem:[#allocation2 + $0x48] sm:$0xff] %vm592_vm3, %v517_v19  ;;  %599 = vst.msk [vmem:[#allocation2 + $0x40] sm:$0xff] %vm592_vm3, %v515_v20 }
  0x98   : > { %879 = vrot.lane.b32.xlu1 %v2315_v35, %s2180_s10  ;;  %877 = vrot.lane.b32.xlu0 %v2307_v29, %s2180_s10 }
  0x9a   : > { %v521_v21 = vpop.permute.xlu1 %520  ;;  %v519_v22 = vpop.permute.xlu0 %518 }
  0x9b   : > { %602 = vst.msk [vmem:[#allocation2 + $0x58] sm:$0xff] %vm592_vm3, %v521_v21  ;;  %601 = vst.msk [vmem:[#allocation2 + $0x50] sm:$0xff] %vm592_vm3, %v519_v22 }
  0x9c   : > { %883 = vrot.lane.b32.xlu1 %v2309_v30, %s2180_s10  ;;  %881 = vrot.lane.b32.xlu0 %v2305_v28, %s2180_s10 }
  0x9e   : > { %v525_v23 = vpop.permute.xlu1 %524  ;;  %v523_v24 = vpop.permute.xlu0 %522 }
  0x9f   : > { %604 = vst.msk [vmem:[#allocation2 + $0x68] sm:$0xff] %vm592_vm3, %v525_v23  ;;  %603 = vst.msk [vmem:[#allocation2 + $0x60] sm:$0xff] %vm592_vm3, %v523_v24 }
  0xa0   : > { %1008 = vrot.lane.b32.xlu1 %v2315_v35, %s2181_s11  ;;  %1006 = vrot.lane.b32.xlu0 %v2307_v29, %s2181_s11 }
  0xa2   : > { %v529_v25 = vpop.permute.xlu1 %528  ;;  %v527_v26 = vpop.permute.xlu0 %526 }
  0xa3   : > { %606 = vst.msk [vmem:[#allocation2 + $0x78] sm:$0xff] %vm592_vm3, %v529_v25  ;;  %605 = vst.msk [vmem:[#allocation2 + $0x70] sm:$0xff] %vm592_vm3, %v527_v26 }
  0xa4   : > { %1012 = vrot.lane.b32.xlu1 %v2309_v30, %s2181_s11  ;;  %1010 = vrot.lane.b32.xlu0 %v2305_v28, %s2181_s11 }
  0xa6   : > { %v533_v35 = vpop.permute.xlu1 %532  ;;  %v531_v29 = vpop.permute.xlu0 %530 }
  0xa7   : > { %608 = vst.msk [vmem:[#allocation2 + $0x88] sm:$0xff] %vm592_vm3, %v533_v35  ;;  %607 = vst.msk [vmem:[#allocation2 + $0x80] sm:$0xff] %vm592_vm3, %v531_v29 }
  0xa8   : > { %1138 = vrot.lane.b32.xlu1 %v2309_v30, %s2182_s16  ;;  %1136 = vrot.lane.b32.xlu0 %v2305_v28, %s2182_s16 }
  0xaa   : > { %v537_v38 = vpop.permute.xlu1 %536  ;;  %v535_v39 = vpop.permute.xlu0 %534 }
  0xab   : > { %610 = vst.msk [vmem:[#allocation2 + $0x98] sm:$0xff] %vm592_vm3, %v537_v38  ;;  %609 = vst.msk [vmem:[#allocation2 + $0x90] sm:$0xff] %vm592_vm3, %v535_v39 }
  0xac   : > { %1142 = vrot.lane.b32.xlu1 %v2317_v36, %s2182_s16  ;;  %1140 = vrot.lane.b32.xlu0 %v2319_v37, %s2182_s16 }
  0xae   : > { %v541_v46 = vpop.permute.xlu1 %540  ;;  %v539_v47 = vpop.permute.xlu0 %538 }
  0xaf   : > { %612 = vst.msk [vmem:[#allocation2 + $0xa8] sm:$0xff] %vm592_vm3, %v541_v46  ;;  %611 = vst.msk [vmem:[#allocation2 + $0xa0] sm:$0xff] %vm592_vm3, %v539_v47 }
  0xb0   : > { %1260 = vrot.lane.b32.xlu1 %v2309_v30, %s2183_s23  ;;  %1258 = vrot.lane.b32.xlu0 %v2305_v28, %s2183_s23 }
  0xb2   : > { %v545_v49 = vpop.permute.xlu1 %544  ;;  %v543_v50 = vpop.permute.xlu0 %542 }
  0xb3   : > { %614 = vst.msk [vmem:[#allocation2 + $0xb8] sm:$0xff] %vm592_vm3, %v545_v49  ;;  %613 = vst.msk [vmem:[#allocation2 + $0xb0] sm:$0xff] %vm592_vm3, %v543_v50 }
  0xb4   : > { %1264 = vrot.lane.b32.xlu1 %v2317_v36, %s2183_s23  ;;  %1262 = vrot.lane.b32.xlu0 %v2319_v37, %s2183_s23 }
  0xb6   : > { %v549_v54 = vpop.permute.xlu1 %548  ;;  %v547_v56 = vpop.permute.xlu0 %546 }
  0xb7   : > { %616 = vst.msk [vmem:[#allocation2 + $0xc8] sm:$0xff] %vm592_vm3, %v549_v54  ;;  %615 = vst.msk [vmem:[#allocation2 + $0xc0] sm:$0xff] %vm592_vm3, %v547_v56 }
  0xb8   : > { %1381 = vrot.lane.b32.xlu1 %v2309_v30, %s2184_s27  ;;  %1379 = vrot.lane.b32.xlu0 %v2305_v28, %s2184_s27 }
  0xba   : > { %v553_v57 = vpop.permute.xlu1 %552  ;;  %v551_v58 = vpop.permute.xlu0 %550 }
  0xbb   : > { %618 = vst.msk [vmem:[#allocation2 + $0xd8] sm:$0xff] %vm592_vm3, %v553_v57  ;;  %617 = vst.msk [vmem:[#allocation2 + $0xd0] sm:$0xff] %vm592_vm3, %v551_v58 }
  0xbc   : > { %1385 = vrot.lane.b32.xlu1 %v2317_v36, %s2184_s27  ;;  %1383 = vrot.lane.b32.xlu0 %v2319_v37, %s2184_s27 }
  0xbe   : > { %v557_v59 = vpop.permute.xlu1 %556  ;;  %v555_v60 = vpop.permute.xlu0 %554 }
  0xbf   : > { %620 = vst.msk [vmem:[#allocation2 + $0xe8] sm:$0xff] %vm592_vm3, %v557_v59  ;;  %619 = vst.msk [vmem:[#allocation2 + $0xe0] sm:$0xff] %vm592_vm3, %v555_v60 }
  0xc0   : > { %757 = vrot.lane.b32.xlu1 %v2317_v36, %s2179_s9  ;;  %755 = vrot.lane.b32.xlu0 %v2319_v37, %s2179_s9 }
  0xc2   : > { %v561_v28 = vpop.permute.xlu1 %560  ;;  %v559_v30 = vpop.permute.xlu0 %558 }
  0xc3   : > { %622 = vst.msk [vmem:[#allocation2 + $0xf8] sm:$0xff] %vm592_vm3, %v561_v28  ;;  %621 = vst.msk [vmem:[#allocation2 + $0xf0] sm:$0xff] %vm592_vm3, %v559_v30 }
  0xc4   : > { %761 = vrot.lane.b32.xlu1 %v2327_v40, %s2179_s9  ;;  %759 = vrot.lane.b32.xlu0 %v2339_v45, %s2179_s9 }
  0xc6   : > { %v626_v1 = vpop.permute.xlu1 %625  ;;  %v624_v0 = vpop.permute.xlu0 %623 }
  0xc7   : > { %716 = vst.msk [vmem:[#allocation2 + $0x17] sm:$0xff] %vm715_vm5, %v626_v1 }
  0xc8   : > { %714 = vst.msk [vmem:[#allocation2 + $0xf] sm:$0xfe] %vm713_vm6, %v624_v0  ;;  %887 = vrot.lane.b32.xlu1 %v2317_v36, %s2180_s10  ;;  %885 = vrot.lane.b32.xlu0 %v2319_v37, %s2180_s10 }
  0xca   : > { %v630_v2 = vpop.permute.xlu1 %629  ;;  %v628_v13 = vpop.permute.xlu0 %627 }
  0xcb   : > { %718 = vst.msk [vmem:[#allocation2 + $0x27] sm:$0xff] %vm715_vm5, %v630_v2 }
  0xcc   : > { %717 = vst.msk [vmem:[#allocation2 + $0x1f] sm:$0xfe] %vm713_vm6, %v628_v13  ;;  %891 = vrot.lane.b32.xlu1 %v2327_v40, %s2180_s10  ;;  %889 = vrot.lane.b32.xlu0 %v2339_v45, %s2180_s10 }
  0xce   : > { %v634_v15 = vpop.permute.xlu1 %633  ;;  %v632_v16 = vpop.permute.xlu0 %631 }
  0xcf   : > { %720 = vst.msk [vmem:[#allocation2 + $0x37] sm:$0xff] %vm715_vm5, %v634_v15 }
  0xd0   : > { %719 = vst.msk [vmem:[#allocation2 + $0x2f] sm:$0xfe] %vm713_vm6, %v632_v16  ;;  %1016 = vrot.lane.b32.xlu1 %v2317_v36, %s2181_s11  ;;  %1014 = vrot.lane.b32.xlu0 %v2319_v37, %s2181_s11 }
  0xd2   : > { %v638_v17 = vpop.permute.xlu1 %637  ;;  %v636_v18 = vpop.permute.xlu0 %635 }
  0xd3   : > { %722 = vst.msk [vmem:[#allocation2 + $0x47] sm:$0xff] %vm715_vm5, %v638_v17 }
  0xd4   : > { %721 = vst.msk [vmem:[#allocation2 + $0x3f] sm:$0xfe] %vm713_vm6, %v636_v18  ;;  %1020 = vrot.lane.b32.xlu1 %v2327_v40, %s2181_s11  ;;  %1018 = vrot.lane.b32.xlu0 %v2339_v45, %s2181_s11 }
  0xd6   : > { %v642_v19 = vpop.permute.xlu1 %641  ;;  %v640_v20 = vpop.permute.xlu0 %639 }
  0xd7   : > { %724 = vst.msk [vmem:[#allocation2 + $0x57] sm:$0xff] %vm715_vm5, %v642_v19 }
  0xd8   : > { %723 = vst.msk [vmem:[#allocation2 + $0x4f] sm:$0xfe] %vm713_vm6, %v640_v20  ;;  %1146 = vrot.lane.b32.xlu1 %v2327_v40, %s2182_s16  ;;  %1144 = vrot.lane.b32.xlu0 %v2339_v45, %s2182_s16 }
  0xda   : > { %v646_v36 = vpop.permute.xlu1 %645  ;;  %v644_v37 = vpop.permute.xlu0 %643 }
  0xdb   : > { %726 = vst.msk [vmem:[#allocation2 + $0x67] sm:$0xff] %vm715_vm5, %v646_v36 }
  0xdc   : > { %725 = vst.msk [vmem:[#allocation2 + $0x5f] sm:$0xfe] %vm713_vm6, %v644_v37  ;;  %1150 = vrot.lane.b32.xlu1 %v2370_v61, %s2182_s16  ;;  %1148 = vrot.lane.b32.xlu0 %v2372_v62, %s2182_s16 }
  0xde   : > { %v650_v21 = vpop.permute.xlu1 %649  ;;  %v648_v22 = vpop.permute.xlu0 %647 }
  0xdf   : > { %728 = vst.msk [vmem:[#allocation2 + $0x77] sm:$0xff] %vm715_vm5, %v650_v21 }
  0xe0   : > { %727 = vst.msk [vmem:[#allocation2 + $0x6f] sm:$0xfe] %vm713_vm6, %v648_v22  ;;  %1268 = vrot.lane.b32.xlu1 %v2327_v40, %s2183_s23  ;;  %1266 = vrot.lane.b32.xlu0 %v2339_v45, %s2183_s23 }
  0xe2   : > { %v654_v23 = vpop.permute.xlu1 %653  ;;  %v652_v24 = vpop.permute.xlu0 %651 }
  0xe3   : > { %730 = vst.msk [vmem:[#allocation2 + $0x87] sm:$0xff] %vm715_vm5, %v654_v23 }
  0xe4   : > { %729 = vst.msk [vmem:[#allocation2 + $0x7f] sm:$0xfe] %vm713_vm6, %v652_v24  ;;  %1272 = vrot.lane.b32.xlu1 %v2370_v61, %s2183_s23  ;;  %1270 = vrot.lane.b32.xlu0 %v2372_v62, %s2183_s23 }
  0xe6   : > { %v658_v25 = vpop.permute.xlu1 %657  ;;  %v656_v26 = vpop.permute.xlu0 %655 }
  0xe7   : > { %732 = vst.msk [vmem:[#allocation2 + $0x97] sm:$0xff] %vm715_vm5, %v658_v25 }
  0xe8   : > { %731 = vst.msk [vmem:[#allocation2 + $0x8f] sm:$0xfe] %vm713_vm6, %v656_v26  ;;  %1389 = vrot.lane.b32.xlu1 %v2327_v40, %s2184_s27  ;;  %1387 = vrot.lane.b32.xlu0 %v2339_v45, %s2184_s27 }
  0xea   : > { %v662_v27 = vpop.permute.xlu1 %661  ;;  %v660_v35 = vpop.permute.xlu0 %659 }
  0xeb   : > { %734 = vst.msk [vmem:[#allocation2 + $0xa7] sm:$0xff] %vm715_vm5, %v662_v27 }
  0xec   : > { %733 = vst.msk [vmem:[#allocation2 + $0x9f] sm:$0xfe] %vm713_vm6, %v660_v35  ;;  %1393 = vrot.lane.b32.xlu1 %v2370_v61, %s2184_s27  ;;  %1391 = vrot.lane.b32.xlu0 %v2372_v62, %s2184_s27 }
  0xee   : > { %v666_v29 = vpop.permute.xlu1 %665  ;;  %v664_v34 = vpop.permute.xlu0 %663 }
  0xef   : > { %736 = vst.msk [vmem:[#allocation2 + $0xb7] sm:$0xff] %vm715_vm5, %v666_v29 }
  0xf0   : > { %735 = vst.msk [vmem:[#allocation2 + $0xaf] sm:$0xfe] %vm713_vm6, %v664_v34  ;;  %765 = vrot.lane.b32.xlu1 %v2370_v61, %s2179_s9  ;;  %763 = vrot.lane.b32.xlu0 %v2372_v62, %s2179_s9 }
  0xf2   : > { %v670_v40 = vpop.permute.xlu1 %669  ;;  %v668_v45 = vpop.permute.xlu0 %667 }
  0xf3   : > { %738 = vst.msk [vmem:[#allocation2 + $0xc7] sm:$0xff] %vm715_vm5, %v670_v40 }
  0xf4   : > { %737 = vst.msk [vmem:[#allocation2 + $0xbf] sm:$0xfe] %vm713_vm6, %v668_v45  ;;  %769 = vrot.lane.b32.xlu1 %v2374_v63, %s2179_s9  ;;  %767 = vrot.lane.b32.xlu0 %v2379_v5, %s2179_s9 }
  0xf6   : > { %v674_v38 = vpop.permute.xlu1 %673  ;;  %v672_v39 = vpop.permute.xlu0 %671 }
  0xf7   : > { %740 = vst.msk [vmem:[#allocation2 + $0xd7] sm:$0xff] %vm715_vm5, %v674_v38 }
  0xf8   : > { %739 = vst.msk [vmem:[#allocation2 + $0xcf] sm:$0xfe] %vm713_vm6, %v672_v39  ;;  %895 = vrot.lane.b32.xlu1 %v2370_v61, %s2180_s10  ;;  %893 = vrot.lane.b32.xlu0 %v2372_v62, %s2180_s10 }
  0xfa   : > { %v678_v41 = vpop.permute.xlu1 %677  ;;  %v676_v46 = vpop.permute.xlu0 %675 }
  0xfb   : > { %742 = vst.msk [vmem:[#allocation2 + $0xe7] sm:$0xff] %vm715_vm5, %v678_v41 }
  0xfc   : > { %741 = vst.msk [vmem:[#allocation2 + $0xdf] sm:$0xfe] %vm713_vm6, %v676_v46  ;;  %899 = vrot.lane.b32.xlu1 %v2374_v63, %s2180_s10  ;;  %897 = vrot.lane.b32.xlu0 %v2379_v5, %s2180_s10 }
  0xfe   : > { %v682_v47 = vpop.permute.xlu1 %681  ;;  %v680_v48 = vpop.permute.xlu0 %679 }
  0xff   : > { %744 = vst.msk [vmem:[#allocation2 + $0xf7] sm:$0xff] %vm715_vm5, %v682_v47 }
 0x100   : > { %743 = vst.msk [vmem:[#allocation2 + $0xef] sm:$0xfe] %vm713_vm6, %v680_v48  ;;  %1024 = vrot.lane.b32.xlu1 %v2370_v61, %s2181_s11  ;;  %1022 = vrot.lane.b32.xlu0 %v2372_v62, %s2181_s11 }
 0x102   : > { %v750_v49 = vpop.permute.xlu1 %749  ;;  %v748_v50 = vpop.permute.xlu0 %747 }
 0x103   : > { %846 = vst.msk [vmem:[#allocation2 + $0x9] sm:$0x7f] %vm845_vm7, %v750_v49 }
 0x104   : > { %844 = vst.msk [vmem:[#allocation2 + $0x1] sm:$0xff] %vm843_vm8, %v748_v50  ;;  %1028 = vrot.lane.b32.xlu1 %v2374_v63, %s2181_s11  ;;  %1026 = vrot.lane.b32.xlu0 %v2379_v5, %s2181_s11 }
 0x106   : > { %v754_v52 = vpop.permute.xlu1 %753  ;;  %v752_v53 = vpop.permute.xlu0 %751 }
 0x107   : > { %848 = vst.msk [vmem:[#allocation2 + $0x19] sm:$0x7f] %vm845_vm7, %v754_v52 }
 0x108   : > { %847 = vst.msk [vmem:[#allocation2 + $0x11] sm:$0xff] %vm843_vm8, %v752_v53  ;;  %1154 = vrot.lane.b32.xlu1 %v2374_v63, %s2182_s16  ;;  %1152 = vrot.lane.b32.xlu0 %v2379_v5, %s2182_s16 }
 0x10a   : > { %v880_v61 = vpop.permute.xlu1 %879  ;;  %v878_v62 = vpop.permute.xlu0 %877 }
 0x10b   : > { %975 = vst.msk [vmem:[#allocation2 + $0x8] sm:$0xff] %vm973_vm9, %v880_v61  ;;  %974 = vst.msk [vmem:[#allocation2] sm:$0xff] %vm973_vm9, %v878_v62 }
 0x10c   : > { %1158 = vrot.lane.b32.xlu1 %v2381_v6, %s2182_s16  ;;  %1156 = vrot.lane.b32.xlu0 %v2383_v7, %s2182_s16 }
 0x10e   : > { %v884_v54 = vpop.permute.xlu1 %883  ;;  %v882_v56 = vpop.permute.xlu0 %881 }
 0x10f   : > { %977 = vst.msk [vmem:[#allocation2 + $0x18] sm:$0xff] %vm973_vm9, %v884_v54  ;;  %976 = vst.msk [vmem:[#allocation2 + $0x10] sm:$0xff] %vm973_vm9, %v882_v56 }
 0x110   : > { %1276 = vrot.lane.b32.xlu1 %v2374_v63, %s2183_s23  ;;  %1274 = vrot.lane.b32.xlu0 %v2379_v5, %s2183_s23 }
 0x112   : > { %v1009_v57 = vpop.permute.xlu1 %1008  ;;  %v1007_v58 = vpop.permute.xlu0 %1006 }
 0x113   : > { %1105 = vst.msk [vmem:[#allocation2 + $0x7] sm:$0xff] %vm1104_vm10, %v1009_v57 }
 0x114   : > { %1103 = vst.msk [vmem:[#allocation2 - $0x1] sm:$0xfe] %vm1102_vm11, %v1007_v58  ;;  %1280 = vrot.lane.b32.xlu1 %v2381_v6, %s2183_s23  ;;  %1278 = vrot.lane.b32.xlu0 %v2383_v7, %s2183_s23 }
 0x116   : > { %v1013_v59 = vpop.permute.xlu1 %1012  ;;  %v1011_v60 = vpop.permute.xlu0 %1010 }
 0x117   : > { %1107 = vst.msk [vmem:[#allocation2 + $0x17] sm:$0xff] %vm1104_vm10, %v1013_v59 }
 0x118   : > { %1106 = vst.msk [vmem:[#allocation2 + $0xf] sm:$0xfe] %vm1102_vm11, %v1011_v60  ;;  %1397 = vrot.lane.b32.xlu1 %v2374_v63, %s2184_s27  ;;  %1395 = vrot.lane.b32.xlu0 %v2379_v5, %s2184_s27 }
 0x11a   : > { %v1139_v28 = vpop.permute.xlu1 %1138  ;;  %v1137_v30 = vpop.permute.xlu0 %1136 }
 0x11b   : > { %1229 = vst.msk [vmem:[#allocation2 + $0x9] sm:$0x7f] %vm1228_vm12, %v1139_v28 }
 0x11c   : > { %1227 = vst.msk [vmem:[#allocation2 + $0x1] sm:$0xff] %vm1226_vm13, %v1137_v30  ;;  %1401 = vrot.lane.b32.xlu1 %v2381_v6, %s2184_s27  ;;  %1399 = vrot.lane.b32.xlu0 %v2383_v7, %s2184_s27 }
 0x11e   : > { %v1143_v1 = vpop.permute.xlu1 %1142  ;;  %v1141_v0 = vpop.permute.xlu0 %1140 }
 0x11f   : > { %1231 = vst.msk [vmem:[#allocation2 + $0x19] sm:$0x7f] %vm1228_vm12, %v1143_v1 }
 0x120   : > { %1230 = vst.msk [vmem:[#allocation2 + $0x11] sm:$0xff] %vm1226_vm13, %v1141_v0  ;;  %773 = vrot.lane.b32.xlu1 %v2381_v6, %s2179_s9  ;;  %771 = vrot.lane.b32.xlu0 %v2383_v7, %s2179_s9 }
 0x122   : > { %v1261_v63 = vpop.permute.xlu1 %1260  ;;  %v1259_v5 = vpop.permute.xlu0 %1258 }
 0x123   : > { %1350 = vst.msk [vmem:[#allocation2 + $0x8] sm:$0xff] %vm1348_vm14, %v1261_v63  ;;  %1349 = vst.msk [vmem:[#allocation2] sm:$0xff] %vm1348_vm14, %v1259_v5 }
 0x124   : > { %777 = vrot.lane.b32.xlu1 %v2386_v9, %s2179_s9  ;;  %775 = vrot.lane.b32.xlu0 %v2398_v14, %s2179_s9 }
 0x126   : > { %v1265_v2 = vpop.permute.xlu1 %1264  ;;  %v1263_v13 = vpop.permute.xlu0 %1262 }
 0x127   : > { %1352 = vst.msk [vmem:[#allocation2 + $0x18] sm:$0xff] %vm1348_vm14, %v1265_v2  ;;  %1351 = vst.msk [vmem:[#allocation2 + $0x10] sm:$0xff] %vm1348_vm14, %v1263_v13 }
 0x128   : > { %903 = vrot.lane.b32.xlu1 %v2381_v6, %s2180_s10  ;;  %901 = vrot.lane.b32.xlu0 %v2383_v7, %s2180_s10 }
 0x12a   : > { %v1382_v15 = vpop.permute.xlu1 %1381  ;;  %v1380_v16 = vpop.permute.xlu0 %1379 }
 0x12b   : > { %1472 = vst.msk [vmem:[#allocation2 + $0x7] sm:$0xff] %vm1471_vm15, %v1382_v15 }
 0x12c   : > { %1470 = vst.msk [vmem:[#allocation2 - $0x1] sm:$0xfe] %vm1469_vm1, %v1380_v16  ;;  %907 = vrot.lane.b32.xlu1 %v2386_v9, %s2180_s10  ;;  %905 = vrot.lane.b32.xlu0 %v2398_v14, %s2180_s10 }
 0x12e   : > { %v1386_v17 = vpop.permute.xlu1 %1385  ;;  %v1384_v18 = vpop.permute.xlu0 %1383 }
 0x12f   : > { %1474 = vst.msk [vmem:[#allocation2 + $0x17] sm:$0xff] %vm1471_vm15, %v1386_v17 }
 0x130   : > { %1473 = vst.msk [vmem:[#allocation2 + $0xf] sm:$0xfe] %vm1469_vm1, %v1384_v18  ;;  %1032 = vrot.lane.b32.xlu1 %v2381_v6, %s2181_s11  ;;  %1030 = vrot.lane.b32.xlu0 %v2383_v7, %s2181_s11 }
 0x132   : > { %v758_v19 = vpop.permute.xlu1 %757  ;;  %v756_v20 = vpop.permute.xlu0 %755  ;;  %v1502_v37 = vld [vmem:[#allocation2 + $0x8] sm:$0xff] }
 0x133   : > { %v1501_v36 = vld [vmem:[#allocation2] sm:$0xff]  ;;  %850 = vst.msk [vmem:[#allocation2 + $0x29] sm:$0x7f] %vm845_vm7, %v758_v19 }
 0x134   : > { %849 = vst.msk [vmem:[#allocation2 + $0x21] sm:$0xff] %vm843_vm8, %v756_v20  ;;  %v1533_v21 = vpack.c.bf16 %v1502_v37, %v1501_v36  ;;  %1036 = vrot.lane.b32.xlu1 %v2386_v9, %s2181_s11  ;;  %1034 = vrot.lane.b32.xlu0 %v2398_v14, %s2181_s11 }
 0x136   : > { %2100 = vmatprep.mubr.msk.bf16.mxu0 %vm406_vm0, %v1533_v21  ;;  %v762_v6 = vpop.permute.xlu1 %761  ;;  %v760_v22 = vpop.permute.xlu0 %759  ;;  %v1504_v23 = vld [vmem:[#allocation2 + $0x18] sm:$0xff] }
 0x137   : > { %v1503_v7 = vld [vmem:[#allocation2 + $0x10] sm:$0xff]  ;;  %852 = vst.msk [vmem:[#allocation2 + $0x39] sm:$0x7f] %vm845_vm7, %v762_v6 }
 0x138   : > { %851 = vst.msk [vmem:[#allocation2 + $0x31] sm:$0xff] %vm843_vm8, %v760_v22  ;;  %v1534_v24 = vpack.c.bf16 %v1504_v23, %v1503_v7  ;;  %1162 = vrot.lane.b32.xlu1 %v2386_v9, %s2182_s16  ;;  %1160 = vrot.lane.b32.xlu0 %v2398_v14, %s2182_s16 }
 0x13a   : > { %2101 = vmatmul.mubr.msk.bf16.vlgmr.msra.gmra.mrb[0].mxu0 %vm406_vm0, %v1534_v24  ;;  %v888_v25 = vpop.permute.xlu1 %887  ;;  %v886_v26 = vpop.permute.xlu0 %885 }
 0x13b   : > { %979 = vst.msk [vmem:[#allocation2 + $0x28] sm:$0xff] %vm973_vm9, %v888_v25  ;;  %978 = vst.msk [vmem:[#allocation2 + $0x20] sm:$0xff] %vm973_vm9, %v886_v26 }
 0x13c   : > { %1166 = vrot.lane.b32.xlu1 %v2427_v31, %s2182_s16  ;;  %1164 = vrot.lane.b32.xlu0 %v2429_v32, %s2182_s16 }
 0x13e   : > { %v892_v27 = vpop.permute.xlu1 %891  ;;  %v890_v35 = vpop.permute.xlu0 %889 }
 0x13f   : > { %981 = vst.msk [vmem:[#allocation2 + $0x38] sm:$0xff] %vm973_vm9, %v892_v27  ;;  %980 = vst.msk [vmem:[#allocation2 + $0x30] sm:$0xff] %vm973_vm9, %v890_v35 }
 0x140   : > { %1284 = vrot.lane.b32.xlu1 %v2386_v9, %s2183_s23  ;;  %1282 = vrot.lane.b32.xlu0 %v2398_v14, %s2183_s23 }
 0x142   : > { %v1017_v29 = vpop.permute.xlu1 %1016  ;;  %v1015_v34 = vpop.permute.xlu0 %1014 }
 0x143   : > { %1109 = vst.msk [vmem:[#allocation2 + $0x27] sm:$0xff] %vm1104_vm10, %v1017_v29 }
 0x144   : > { %1108 = vst.msk [vmem:[#allocation2 + $0x1f] sm:$0xfe] %vm1102_vm11, %v1015_v34  ;;  %1288 = vrot.lane.b32.xlu1 %v2427_v31, %s2183_s23  ;;  %1286 = vrot.lane.b32.xlu0 %v2429_v32, %s2183_s23 }
 0x146   : > { %v1021_v40 = vpop.permute.xlu1 %1020  ;;  %v1019_v45 = vpop.permute.xlu0 %1018 }
 0x147   : > { %1111 = vst.msk [vmem:[#allocation2 + $0x37] sm:$0xff] %vm1104_vm10, %v1021_v40 }
 0x148   : > { %1110 = vst.msk [vmem:[#allocation2 + $0x2f] sm:$0xfe] %vm1102_vm11, %v1019_v45  ;;  %1405 = vrot.lane.b32.xlu1 %v2386_v9, %s2184_s27  ;;  %1403 = vrot.lane.b32.xlu0 %v2398_v14, %s2184_s27 }
 0x14a   : > { %v1147_v38 = vpop.permute.xlu1 %1146  ;;  %v1145_v39 = vpop.permute.xlu0 %1144 }
 0x14b   : > { %1233 = vst.msk [vmem:[#allocation2 + $0x29] sm:$0x7f] %vm1228_vm12, %v1147_v38 }
 0x14c   : > { %1232 = vst.msk [vmem:[#allocation2 + $0x21] sm:$0xff] %vm1226_vm13, %v1145_v39  ;;  %1409 = vrot.lane.b32.xlu1 %v2427_v31, %s2184_s27  ;;  %1407 = vrot.lane.b32.xlu0 %v2429_v32, %s2184_s27 }
 0x14e   : > { %v1151_v41 = vpop.permute.xlu1 %1150  ;;  %v1149_v46 = vpop.permute.xlu0 %1148 }
 0x14f   : > { %1235 = vst.msk [vmem:[#allocation2 + $0x39] sm:$0x7f] %vm1228_vm12, %v1151_v41 }
 0x150   : > { %1234 = vst.msk [vmem:[#allocation2 + $0x31] sm:$0xff] %vm1226_vm13, %v1149_v46  ;;  %781 = vrot.lane.b32.xlu1 %v2427_v31, %s2179_s9  ;;  %779 = vrot.lane.b32.xlu0 %v2429_v32, %s2179_s9 }
 0x152   : > { %v1269_v9 = vpop.permute.xlu1 %1268  ;;  %v1267_v14 = vpop.permute.xlu0 %1266 }
 0x153   : > { %1354 = vst.msk [vmem:[#allocation2 + $0x28] sm:$0xff] %vm1348_vm14, %v1269_v9  ;;  %1353 = vst.msk [vmem:[#allocation2 + $0x20] sm:$0xff] %vm1348_vm14, %v1267_v14 }
 0x154   : > { %785 = vrot.lane.b32.xlu1 %v2431_v33, %s2179_s9  ;;  %783 = vrot.lane.b32.xlu0 %v2437_v42, %s2179_s9 }
 0x156   : > { %v1273_v47 = vpop.permute.xlu1 %1272  ;;  %v1271_v48 = vpop.permute.xlu0 %1270 }
 0x157   : > { %1356 = vst.msk [vmem:[#allocation2 + $0x38] sm:$0xff] %vm1348_vm14, %v1273_v47  ;;  %1355 = vst.msk [vmem:[#allocation2 + $0x30] sm:$0xff] %vm1348_vm14, %v1271_v48 }
 0x158   : > { %911 = vrot.lane.b32.xlu1 %v2427_v31, %s2180_s10  ;;  %909 = vrot.lane.b32.xlu0 %v2429_v32, %s2180_s10 }
 0x15a   : > { %v1390_v49 = vpop.permute.xlu1 %1389  ;;  %v1388_v50 = vpop.permute.xlu0 %1387 }
 0x15b   : > { %1476 = vst.msk [vmem:[#allocation2 + $0x27] sm:$0xff] %vm1471_vm15, %v1390_v49 }
 0x15c   : > { %1475 = vst.msk [vmem:[#allocation2 + $0x1f] sm:$0xfe] %vm1469_vm1, %v1388_v50  ;;  %915 = vrot.lane.b32.xlu1 %v2431_v33, %s2180_s10  ;;  %913 = vrot.lane.b32.xlu0 %v2437_v42, %s2180_s10 }
 0x15e   : > { %v1394_v52 = vpop.permute.xlu1 %1393  ;;  %v1392_v53 = vpop.permute.xlu0 %1391 }
 0x15f   : > { %1478 = vst.msk [vmem:[#allocation2 + $0x37] sm:$0xff] %vm1471_vm15, %v1394_v52 }
 0x160   : > { %1477 = vst.msk [vmem:[#allocation2 + $0x2f] sm:$0xfe] %vm1469_vm1, %v1392_v53  ;;  %1040 = vrot.lane.b32.xlu1 %v2427_v31, %s2181_s11  ;;  %1038 = vrot.lane.b32.xlu0 %v2429_v32, %s2181_s11 }
 0x162   : > { %v766_v61 = vpop.permute.xlu1 %765  ;;  %v764_v62 = vpop.permute.xlu0 %763  ;;  %v1506_v56 = vld [vmem:[#allocation2 + $0x28] sm:$0xff] }
 0x163   : > { %v1505_v54 = vld [vmem:[#allocation2 + $0x20] sm:$0xff]  ;;  %854 = vst.msk [vmem:[#allocation2 + $0x49] sm:$0x7f] %vm845_vm7, %v766_v61 }
 0x164   : > { %853 = vst.msk [vmem:[#allocation2 + $0x41] sm:$0xff] %vm843_vm8, %v764_v62  ;;  %v1535_v57 = vpack.c.bf16 %v1506_v56, %v1505_v54  ;;  %1044 = vrot.lane.b32.xlu1 %v2431_v33, %s2181_s11  ;;  %1042 = vrot.lane.b32.xlu0 %v2437_v42, %s2181_s11 }
 0x166   : > { %2104 = vmatprep.mubr.msk.bf16.mxu0 %vm406_vm0, %v1535_v57  ;;  %v770_v31 = vpop.permute.xlu1 %769  ;;  %v768_v58 = vpop.permute.xlu0 %767  ;;  %v1508_v59 = vld [vmem:[#allocation2 + $0x38] sm:$0xff] }
 0x167   : > { %v1507_v32 = vld [vmem:[#allocation2 + $0x30] sm:$0xff]  ;;  %856 = vst.msk [vmem:[#allocation2 + $0x59] sm:$0x7f] %vm845_vm7, %v770_v31 }
 0x168   : > { %855 = vst.msk [vmem:[#allocation2 + $0x51] sm:$0xff] %vm843_vm8, %v768_v58  ;;  %v1536_v60 = vpack.c.bf16 %v1508_v59, %v1507_v32  ;;  %1170 = vrot.lane.b32.xlu1 %v2431_v33, %s2182_s16  ;;  %1168 = vrot.lane.b32.xlu0 %v2437_v42, %s2182_s16 }
 0x16a   : > { %2105 = vmatmul.mubr.msk.bf16.gmra.mrb[4].mxu0 %vm406_vm0, %v1536_v60  ;;  %v896_v28 = vpop.permute.xlu1 %895  ;;  %v894_v30 = vpop.permute.xlu0 %893 }
 0x16b   : > { %983 = vst.msk [vmem:[#allocation2 + $0x48] sm:$0xff] %vm973_vm9, %v896_v28  ;;  %982 = vst.msk [vmem:[#allocation2 + $0x40] sm:$0xff] %vm973_vm9, %v894_v30 }
 0x16c   : > { %1174 = vrot.lane.b32.xlu1 %v2439_v43, %s2182_s16  ;;  %1172 = vrot.lane.b32.xlu0 %v2441_v44, %s2182_s16 }
 0x16e   : > { %v900_v1 = vpop.permute.xlu1 %899  ;;  %v898_v0 = vpop.permute.xlu0 %897 }
 0x16f   : > { %985 = vst.msk [vmem:[#allocation2 + $0x58] sm:$0xff] %vm973_vm9, %v900_v1  ;;  %984 = vst.msk [vmem:[#allocation2 + $0x50] sm:$0xff] %vm973_vm9, %v898_v0 }
 0x170   : > { %1292 = vrot.lane.b32.xlu1 %v2431_v33, %s2183_s23  ;;  %1290 = vrot.lane.b32.xlu0 %v2437_v42, %s2183_s23 }
 0x172   : > { %v1025_v63 = vpop.permute.xlu1 %1024  ;;  %v1023_v5 = vpop.permute.xlu0 %1022 }
 0x173   : > { %1113 = vst.msk [vmem:[#allocation2 + $0x47] sm:$0xff] %vm1104_vm10, %v1025_v63 }
 0x174   : > { %1112 = vst.msk [vmem:[#allocation2 + $0x3f] sm:$0xfe] %vm1102_vm11, %v1023_v5  ;;  %1296 = vrot.lane.b32.xlu1 %v2439_v43, %s2183_s23  ;;  %1294 = vrot.lane.b32.xlu0 %v2441_v44, %s2183_s23 }
 0x176   : > { %v1029_v2 = vpop.permute.xlu1 %1028  ;;  %v1027_v13 = vpop.permute.xlu0 %1026 }
 0x177   : > { %1115 = vst.msk [vmem:[#allocation2 + $0x57] sm:$0xff] %vm1104_vm10, %v1029_v2 }
 0x178   : > { %1114 = vst.msk [vmem:[#allocation2 + $0x4f] sm:$0xfe] %vm1102_vm11, %v1027_v13  ;;  %1413 = vrot.lane.b32.xlu1 %v2431_v33, %s2184_s27  ;;  %1411 = vrot.lane.b32.xlu0 %v2437_v42, %s2184_s27 }
 0x17a   : > { %v1155_v15 = vpop.permute.xlu1 %1154  ;;  %v1153_v16 = vpop.permute.xlu0 %1152 }
 0x17b   : > { %1237 = vst.msk [vmem:[#allocation2 + $0x49] sm:$0x7f] %vm1228_vm12, %v1155_v15 }
 0x17c   : > { %1236 = vst.msk [vmem:[#allocation2 + $0x41] sm:$0xff] %vm1226_vm13, %v1153_v16  ;;  %1417 = vrot.lane.b32.xlu1 %v2439_v43, %s2184_s27  ;;  %1415 = vrot.lane.b32.xlu0 %v2441_v44, %s2184_s27 }
 0x17e   : > { %v1159_v17 = vpop.permute.xlu1 %1158  ;;  %v1157_v18 = vpop.permute.xlu0 %1156 }
 0x17f   : > { %1239 = vst.msk [vmem:[#allocation2 + $0x59] sm:$0x7f] %vm1228_vm12, %v1159_v17  ;;  %v295_v17 = vld [vmem:[%s2273_s28 + $0xf8] sm:$0xff] }
 0x180   : > { %1238 = vst.msk [vmem:[#allocation2 + $0x51] sm:$0xff] %vm1226_vm13, %v1157_v18  ;;  %789 = vrot.lane.b32.xlu1 %v2439_v43, %s2179_s9  ;;  %787 = vrot.lane.b32.xlu0 %v2441_v44, %s2179_s9  ;;  %v294_v18 = vld [vmem:[%s2273_s28 + $0xf0] sm:$0xff] }
 0x182   : > { %v1277_v33 = vpop.permute.xlu1 %1276  ;;  %v1275_v42 = vpop.permute.xlu0 %1274 }
 0x183   : > { %1358 = vst.msk [vmem:[#allocation2 + $0x48] sm:$0xff] %vm1348_vm14, %v1277_v33  ;;  %1357 = vst.msk [vmem:[#allocation2 + $0x40] sm:$0xff] %vm1348_vm14, %v1275_v42 }
 0x184   : > { %793 = vrot.lane.b32.xlu1 %v2458_v51, %s2179_s9  ;;  %791 = vrot.lane.b32.xlu0 %v2469_v55, %s2179_s9 }
 0x186   : > { %v1281_v19 = vpop.permute.xlu1 %1280  ;;  %v1279_v20 = vpop.permute.xlu0 %1278 }
 0x187   : > { %1360 = vst.msk [vmem:[#allocation2 + $0x58] sm:$0xff] %vm1348_vm14, %v1281_v19  ;;  %1359 = vst.msk [vmem:[#allocation2 + $0x50] sm:$0xff] %vm1348_vm14, %v1279_v20 }
 0x188   : > { %919 = vrot.lane.b32.xlu1 %v2439_v43, %s2180_s10  ;;  %917 = vrot.lane.b32.xlu0 %v2441_v44, %s2180_s10 }
 0x18a   : > { %v1398_v36 = vpop.permute.xlu1 %1397  ;;  %v1396_v37 = vpop.permute.xlu0 %1395 }
 0x18b   : > { %1480 = vst.msk [vmem:[#allocation2 + $0x47] sm:$0xff] %vm1471_vm15, %v1398_v36 }
 0x18c   : > { %1479 = vst.msk [vmem:[#allocation2 + $0x3f] sm:$0xfe] %vm1469_vm1, %v1396_v37  ;;  %923 = vrot.lane.b32.xlu1 %v2458_v51, %s2180_s10  ;;  %921 = vrot.lane.b32.xlu0 %v2469_v55, %s2180_s10  ;;  %v2167_v37 = vld [vmem:[%s3340_s2] ss:$0 sm:$0xff] }
 0x18e   : > { %v1402_v21 = vpop.permute.xlu1 %1401  ;;  %v1400_v6 = vpop.permute.xlu0 %1399 }
 0x18f   : > { %1482 = vst.msk [vmem:[#allocation2 + $0x57] sm:$0xff] %vm1471_vm15, %v1402_v21 }
 0x190   : > { %1481 = vst.msk [vmem:[#allocation2 + $0x4f] sm:$0xfe] %vm1469_vm1, %v1400_v6  ;;  %1048 = vrot.lane.b32.xlu1 %v2439_v43, %s2181_s11  ;;  %1046 = vrot.lane.b32.xlu0 %v2441_v44, %s2181_s11 }
 0x192   : > { %v774_v22 = vpop.permute.xlu1 %773  ;;  %v772_v7 = vpop.permute.xlu0 %771  ;;  %v1510_v24 = vld [vmem:[#allocation2 + $0x48] sm:$0xff] }
 0x193   : > { %v1509_v23 = vld [vmem:[#allocation2 + $0x40] sm:$0xff]  ;;  %858 = vst.msk [vmem:[#allocation2 + $0x69] sm:$0x7f] %vm845_vm7, %v774_v22 }
 0x194   : > { %857 = vst.msk [vmem:[#allocation2 + $0x61] sm:$0xff] %vm843_vm8, %v772_v7  ;;  %v1537_v25 = vpack.c.bf16 %v1510_v24, %v1509_v23  ;;  %1052 = vrot.lane.b32.xlu1 %v2458_v51, %s2181_s11  ;;  %1050 = vrot.lane.b32.xlu0 %v2469_v55, %s2181_s11 }
 0x196   : > { %2108 = vmatprep.mubr.msk.bf16.mxu0 %vm406_vm0, %v1537_v25  ;;  %v778_v43 = vpop.permute.xlu1 %777  ;;  %v776_v26 = vpop.permute.xlu0 %775  ;;  %v1512_v27 = vld [vmem:[#allocation2 + $0x58] sm:$0xff] }
 0x197   : > { %v1511_v44 = vld [vmem:[#allocation2 + $0x50] sm:$0xff]  ;;  %860 = vst.msk [vmem:[#allocation2 + $0x79] sm:$0x7f] %vm845_vm7, %v778_v43 }
 0x198   : > { %859 = vst.msk [vmem:[#allocation2 + $0x71] sm:$0xff] %vm843_vm8, %v776_v26  ;;  %v1538_v35 = vpack.c.bf16 %v1512_v27, %v1511_v44  ;;  %1178 = vrot.lane.b32.xlu1 %v2458_v51, %s2182_s16  ;;  %1176 = vrot.lane.b32.xlu0 %v2469_v55, %s2182_s16 }
 0x19a   : > { %2109 = vmatmul.mubr.msk.bf16.gmra.mrb[8].mxu0 %vm406_vm0, %v1538_v35  ;;  %v904_v29 = vpop.permute.xlu1 %903  ;;  %v902_v34 = vpop.permute.xlu0 %901 }
 0x19b   : > { %987 = vst.msk [vmem:[#allocation2 + $0x68] sm:$0xff] %vm973_vm9, %v904_v29  ;;  %986 = vst.msk [vmem:[#allocation2 + $0x60] sm:$0xff] %vm973_vm9, %v902_v34 }
 0x19c   : > { %1182 = vrot.lane.b32.xlu1 %v2483_v3, %s2182_s16  ;;  %1180 = vrot.lane.b32.xlu0 %v2485_v4, %s2182_s16 }
 0x19e   : > { %v908_v40 = vpop.permute.xlu1 %907  ;;  %v906_v45 = vpop.permute.xlu0 %905 }
 0x19f   : > { %989 = vst.msk [vmem:[#allocation2 + $0x78] sm:$0xff] %vm973_vm9, %v908_v40  ;;  %988 = vst.msk [vmem:[#allocation2 + $0x70] sm:$0xff] %vm973_vm9, %v906_v45 }
 0x1a0   : > { %1300 = vrot.lane.b32.xlu1 %v2458_v51, %s2183_s23  ;;  %1298 = vrot.lane.b32.xlu0 %v2469_v55, %s2183_s23 }
 0x1a2   : > { %v1033_v38 = vpop.permute.xlu1 %1032  ;;  %v1031_v39 = vpop.permute.xlu0 %1030 }
 0x1a3   : > { %1117 = vst.msk [vmem:[#allocation2 + $0x67] sm:$0xff] %vm1104_vm10, %v1033_v38 }
 0x1a4   : > { %1116 = vst.msk [vmem:[#allocation2 + $0x5f] sm:$0xfe] %vm1102_vm11, %v1031_v39  ;;  %1304 = vrot.lane.b32.xlu1 %v2483_v3, %s2183_s23  ;;  %1302 = vrot.lane.b32.xlu0 %v2485_v4, %s2183_s23 }
 0x1a6   : > { %v1037_v41 = vpop.permute.xlu1 %1036  ;;  %v1035_v46 = vpop.permute.xlu0 %1034 }
 0x1a7   : > { %1119 = vst.msk [vmem:[#allocation2 + $0x77] sm:$0xff] %vm1104_vm10, %v1037_v41 }
 0x1a8   : > { %1118 = vst.msk [vmem:[#allocation2 + $0x6f] sm:$0xfe] %vm1102_vm11, %v1035_v46  ;;  %1421 = vrot.lane.b32.xlu1 %v2458_v51, %s2184_s27  ;;  %1419 = vrot.lane.b32.xlu0 %v2469_v55, %s2184_s27 }
 0x1aa   : > { %v1163_v9 = vpop.permute.xlu1 %1162  ;;  %v1161_v14 = vpop.permute.xlu0 %1160 }
 0x1ab   : > { %1241 = vst.msk [vmem:[#allocation2 + $0x69] sm:$0x7f] %vm1228_vm12, %v1163_v9 }
 0x1ac   : > { %1240 = vst.msk [vmem:[#allocation2 + $0x61] sm:$0xff] %vm1226_vm13, %v1161_v14  ;;  %1425 = vrot.lane.b32.xlu1 %v2483_v3, %s2184_s27  ;;  %1423 = vrot.lane.b32.xlu0 %v2485_v4, %s2184_s27 }
 0x1ae   : > { %v1167_v47 = vpop.permute.xlu1 %1166  ;;  %v1165_v48 = vpop.permute.xlu0 %1164 }
 0x1af   : > { %1243 = vst.msk [vmem:[#allocation2 + $0x79] sm:$0x7f] %vm1228_vm12, %v1167_v47 }
 0x1b0   : > { %1242 = vst.msk [vmem:[#allocation2 + $0x71] sm:$0xff] %vm1226_vm13, %v1165_v48  ;;  %797 = vrot.lane.b32.xlu1 %v2483_v3, %s2179_s9  ;;  %795 = vrot.lane.b32.xlu0 %v2485_v4, %s2179_s9 }
 0x1b2   : > { %v1285_v51 = vpop.permute.xlu1 %1284  ;;  %v1283_v55 = vpop.permute.xlu0 %1282 }
 0x1b3   : > { %1362 = vst.msk [vmem:[#allocation2 + $0x68] sm:$0xff] %vm1348_vm14, %v1285_v51  ;;  %1361 = vst.msk [vmem:[#allocation2 + $0x60] sm:$0xff] %vm1348_vm14, %v1283_v55 }
 0x1b4   : > { %801 = vrot.lane.b32.xlu1 %v2490_v8, %s2179_s9  ;;  %799 = vrot.lane.b32.xlu0 %v2492_v10, %s2179_s9 }
 0x1b6   : > { %v1289_v49 = vpop.permute.xlu1 %1288  ;;  %v1287_v50 = vpop.permute.xlu0 %1286 }
 0x1b7   : > { %1364 = vst.msk [vmem:[#allocation2 + $0x78] sm:$0xff] %vm1348_vm14, %v1289_v49  ;;  %1363 = vst.msk [vmem:[#allocation2 + $0x70] sm:$0xff] %vm1348_vm14, %v1287_v50 }
 0x1b8   : > { %927 = vrot.lane.b32.xlu1 %v2483_v3, %s2180_s10  ;;  %925 = vrot.lane.b32.xlu0 %v2485_v4, %s2180_s10 }
 0x1ba   : > { %v1406_v52 = vpop.permute.xlu1 %1405  ;;  %v1404_v53 = vpop.permute.xlu0 %1403 }
 0x1bb   : > { %1484 = vst.msk [vmem:[#allocation2 + $0x67] sm:$0xff] %vm1471_vm15, %v1406_v52  ;;  %v3198_v52 = vld [vmem:[%s3342_s4] ss:$0 sm:$0xff] }
 0x1bc   : > { %1483 = vst.msk [vmem:[#allocation2 + $0x5f] sm:$0xfe] %vm1469_vm1, %v1404_v53  ;;  %931 = vrot.lane.b32.xlu1 %v2490_v8, %s2180_s10  ;;  %929 = vrot.lane.b32.xlu0 %v2492_v10, %s2180_s10 }
 0x1be   : > { %v1410_v61 = vpop.permute.xlu1 %1409  ;;  %v1408_v62 = vpop.permute.xlu0 %1407 }
 0x1bf   : > { %1486 = vst.msk [vmem:[#allocation2 + $0x77] sm:$0xff] %vm1471_vm15, %v1410_v61 }
 0x1c0   : > { %1485 = vst.msk [vmem:[#allocation2 + $0x6f] sm:$0xfe] %vm1469_vm1, %v1408_v62  ;;  %1056 = vrot.lane.b32.xlu1 %v2483_v3, %s2181_s11  ;;  %1054 = vrot.lane.b32.xlu0 %v2485_v4, %s2181_s11 }
 0x1c2   : > { %v782_v54 = vpop.permute.xlu1 %781  ;;  %v780_v56 = vpop.permute.xlu0 %779  ;;  %v1514_v31 = vld [vmem:[#allocation2 + $0x68] sm:$0xff] }
 0x1c3   : > { %v1513_v57 = vld [vmem:[#allocation2 + $0x60] sm:$0xff]  ;;  %862 = vst.msk [vmem:[#allocation2 + $0x89] sm:$0x7f] %vm845_vm7, %v782_v54 }
 0x1c4   : > { %861 = vst.msk [vmem:[#allocation2 + $0x81] sm:$0xff] %vm843_vm8, %v780_v56  ;;  %v1539_v58 = vpack.c.bf16 %v1514_v31, %v1513_v57  ;;  %1060 = vrot.lane.b32.xlu1 %v2490_v8, %s2181_s11  ;;  %1058 = vrot.lane.b32.xlu0 %v2492_v10, %s2181_s11 }
 0x1c6   : > { %2112 = vmatprep.mubr.msk.bf16.mxu0 %vm406_vm0, %v1539_v58  ;;  %v786_v3 = vpop.permute.xlu1 %785  ;;  %v784_v32 = vpop.permute.xlu0 %783  ;;  %v1516_v59 = vld [vmem:[#allocation2 + $0x78] sm:$0xff] }
 0x1c7   : > { %v1515_v4 = vld [vmem:[#allocation2 + $0x70] sm:$0xff]  ;;  %864 = vst.msk [vmem:[#allocation2 + $0x99] sm:$0x7f] %vm845_vm7, %v786_v3 }
 0x1c8   : > { %863 = vst.msk [vmem:[#allocation2 + $0x91] sm:$0xff] %vm843_vm8, %v784_v32  ;;  %v1540_v60 = vpack.c.bf16 %v1516_v59, %v1515_v4  ;;  %1186 = vrot.lane.b32.xlu1 %v2490_v8, %s2182_s16  ;;  %1184 = vrot.lane.b32.xlu0 %v2492_v10, %s2182_s16 }
 0x1ca   : > { %2113 = vmatmul.mubr.msk.bf16.gmra.mrb[12].mxu0 %vm406_vm0, %v1540_v60  ;;  %v912_v28 = vpop.permute.xlu1 %911  ;;  %v910_v30 = vpop.permute.xlu0 %909 }
 0x1cb   : > { %991 = vst.msk [vmem:[#allocation2 + $0x88] sm:$0xff] %vm973_vm9, %v912_v28  ;;  %990 = vst.msk [vmem:[#allocation2 + $0x80] sm:$0xff] %vm973_vm9, %v910_v30 }
 0x1cc   : > { %1190 = vrot.lane.b32.xlu1 %v2494_v11, %s2182_s16  ;;  %1188 = vrot.lane.b32.xlu0 %v2496_v12, %s2182_s16 }
 0x1ce   : > { %v916_v1 = vpop.permute.xlu1 %915  ;;  %v914_v0 = vpop.permute.xlu0 %913 }
 0x1cf   : > { %993 = vst.msk [vmem:[#allocation2 + $0x98] sm:$0xff] %vm973_vm9, %v916_v1  ;;  %992 = vst.msk [vmem:[#allocation2 + $0x90] sm:$0xff] %vm973_vm9, %v914_v0 }
 0x1d0   : > { %1308 = vrot.lane.b32.xlu1 %v2490_v8, %s2183_s23  ;;  %1306 = vrot.lane.b32.xlu0 %v2492_v10, %s2183_s23 }
 0x1d2   : > { %v1041_v63 = vpop.permute.xlu1 %1040  ;;  %v1039_v5 = vpop.permute.xlu0 %1038 }
 0x1d3   : > { %1121 = vst.msk [vmem:[#allocation2 + $0x87] sm:$0xff] %vm1104_vm10, %v1041_v63 }
 0x1d4   : > { %1120 = vst.msk [vmem:[#allocation2 + $0x7f] sm:$0xfe] %vm1102_vm11, %v1039_v5  ;;  %1312 = vrot.lane.b32.xlu1 %v2494_v11, %s2183_s23  ;;  %1310 = vrot.lane.b32.xlu0 %v2496_v12, %s2183_s23 }
 0x1d6   : > { %v1045_v2 = vpop.permute.xlu1 %1044  ;;  %v1043_v13 = vpop.permute.xlu0 %1042 }
 0x1d7   : > { %1123 = vst.msk [vmem:[#allocation2 + $0x97] sm:$0xff] %vm1104_vm10, %v1045_v2 }
 0x1d8   : > { %1122 = vst.msk [vmem:[#allocation2 + $0x8f] sm:$0xfe] %vm1102_vm11, %v1043_v13  ;;  %1429 = vrot.lane.b32.xlu1 %v2490_v8, %s2184_s27  ;;  %1427 = vrot.lane.b32.xlu0 %v2492_v10, %s2184_s27  ;;  %v2166_v8 = vld [vmem:[%s3339_s1] ss:$0 sm:$0xff] }
 0x1d9   : > { %v335_v10 = vmul.f32 %v2166_v8, %v295_v17  ;;  %v334_v19 = vmul.f32 %v2166_v8, %v294_v18 }
 0x1da   : > { %v1171_v15 = vpop.permute.xlu1 %1170  ;;  %v1169_v16 = vpop.permute.xlu0 %1168 }
 0x1db   : > { %1245 = vst.msk [vmem:[#allocation2 + $0x89] sm:$0x7f] %vm1228_vm12, %v1171_v15  ;;  %v373_v21 = vadd.f32 %v2167_v37, %v335_v10  ;;  %v372_v6 = vadd.f32 %v2167_v37, %v334_v19 }
 0x1dc   : > { %1244 = vst.msk [vmem:[#allocation2 + $0x81] sm:$0xff] %vm1226_vm13, %v1169_v16  ;;  %1433 = vrot.lane.b32.xlu1 %v2494_v11, %s2184_s27  ;;  %1431 = vrot.lane.b32.xlu0 %v2496_v12, %s2184_s27 }
 0x1dd   : > { %v405_v23 = vmax.f32 %v373_v21, 0.0  ;;  %v404_v24 = vmax.f32 %v372_v6, 0.0 }
 0x1de   : > { %v1175_v33 = vpop.permute.xlu1 %1174  ;;  %v1173_v42 = vpop.permute.xlu0 %1172 }
 0x1df   : > { %1247 = vst.msk [vmem:[#allocation2 + $0x99] sm:$0x7f] %vm1228_vm12, %v1175_v33 }
 0x1e0   : > { %1246 = vst.msk [vmem:[#allocation2 + $0x91] sm:$0xff] %vm1226_vm13, %v1173_v42  ;;  %805 = vrot.lane.b32.xlu1 %v2494_v11, %s2179_s9  ;;  %803 = vrot.lane.b32.xlu0 %v2496_v12, %s2179_s9 }
 0x1e2   : > { %v1293_v20 = vpop.permute.xlu1 %1292  ;;  %v1291_v36 = vpop.permute.xlu0 %1290 }
 0x1e3   : > { %1366 = vst.msk [vmem:[#allocation2 + $0x88] sm:$0xff] %vm1348_vm14, %v1293_v20  ;;  %1365 = vst.msk [vmem:[#allocation2 + $0x80] sm:$0xff] %vm1348_vm14, %v1291_v36 }
 0x1e4   : > { %935 = vrot.lane.b32.xlu1 %v2494_v11, %s2180_s10  ;;  %933 = vrot.lane.b32.xlu0 %v2496_v12, %s2180_s10 }
 0x1e6   : > { %v1297_v22 = vpop.permute.xlu1 %1296  ;;  %v1295_v7 = vpop.permute.xlu0 %1294 }
 0x1e7   : > { %1368 = vst.msk [vmem:[#allocation2 + $0x98] sm:$0xff] %vm1348_vm14, %v1297_v22  ;;  %1367 = vst.msk [vmem:[#allocation2 + $0x90] sm:$0xff] %vm1348_vm14, %v1295_v7 }
 0x1e8   : > { %1064 = vrot.lane.b32.xlu1 %v2494_v11, %s2181_s11  ;;  %1062 = vrot.lane.b32.xlu0 %v2496_v12, %s2181_s11 }
 0x1ea   : > { %v1414_v25 = vpop.permute.xlu1 %1413  ;;  %v1412_v43 = vpop.permute.xlu0 %1411 }
 0x1eb   : > { %1488 = vst.msk [vmem:[#allocation2 + $0x87] sm:$0xff] %vm1471_vm15, %v1414_v25 }
 0x1ec   : > { %1487 = vst.msk [vmem:[#allocation2 + $0x7f] sm:$0xfe] %vm1469_vm1, %v1412_v43  ;;  %1194 = vrot.lane.b32.xlu1 %v405_v23, %s2182_s16  ;;  %1192 = vrot.lane.b32.xlu0 %v404_v24, %s2182_s16 }
 0x1ee   : > { %v1418_v26 = vpop.permute.xlu1 %1417  ;;  %v1416_v44 = vpop.permute.xlu0 %1415 }
 0x1ef   : > { %1490 = vst.msk [vmem:[#allocation2 + $0x97] sm:$0xff] %vm1471_vm15, %v1418_v26 }
 0x1f0   : > { %1489 = vst.msk [vmem:[#allocation2 + $0x8f] sm:$0xfe] %vm1469_vm1, %v1416_v44  ;;  %809 = vrot.lane.b32.xlu1 %v405_v23, %s2179_s9  ;;  %807 = vrot.lane.b32.xlu0 %v404_v24, %s2179_s9 }
 0x1f2   : > { %v790_v11 = vpop.permute.xlu1 %789  ;;  %v788_v12 = vpop.permute.xlu0 %787  ;;  %v1518_v35 = vld [vmem:[#allocation2 + $0x88] sm:$0xff] }
 0x1f3   : > { %v1517_v27 = vld [vmem:[#allocation2 + $0x80] sm:$0xff]  ;;  %866 = vst.msk [vmem:[#allocation2 + $0xa9] sm:$0x7f] %vm845_vm7, %v790_v11 }
 0x1f4   : > { %865 = vst.msk [vmem:[#allocation2 + $0xa1] sm:$0xff] %vm843_vm8, %v788_v12  ;;  %v1541_v29 = vpack.c.bf16 %v1518_v35, %v1517_v27  ;;  %1316 = vrot.lane.b32.xlu1 %v405_v23, %s2183_s23  ;;  %1314 = vrot.lane.b32.xlu0 %v404_v24, %s2183_s23 }
 0x1f6   : > { %2116 = vmatprep.mubr.msk.bf16.mxu1 %vm406_vm0, %v1541_v29  ;;  %v794_v34 = vpop.permute.xlu1 %793  ;;  %v792_v40 = vpop.permute.xlu0 %791  ;;  %v1520_v38 = vld [vmem:[#allocation2 + $0x98] sm:$0xff] }
 0x1f7   : > { %v1519_v45 = vld [vmem:[#allocation2 + $0x90] sm:$0xff]  ;;  %868 = vst.msk [vmem:[#allocation2 + $0xb9] sm:$0x7f] %vm845_vm7, %v794_v34 }
 0x1f8   : > { %867 = vst.msk [vmem:[#allocation2 + $0xb1] sm:$0xff] %vm843_vm8, %v792_v40  ;;  %v1542_v39 = vpack.c.bf16 %v1520_v38, %v1519_v45  ;;  %939 = vrot.lane.b32.xlu1 %v405_v23, %s2180_s10  ;;  %937 = vrot.lane.b32.xlu0 %v404_v24, %s2180_s10 }
 0x1fa   : > { %2117 = vmatmul.mubr.msk.bf16.vlgmr.msra.gmra.mrb[0].mxu1 %vm406_vm0, %v1542_v39  ;;  %v920_v41 = vpop.permute.xlu1 %919  ;;  %v918_v46 = vpop.permute.xlu0 %917 }
 0x1fb   : > { %995 = vst.msk [vmem:[#allocation2 + $0xa8] sm:$0xff] %vm973_vm9, %v920_v41  ;;  %994 = vst.msk [vmem:[#allocation2 + $0xa0] sm:$0xff] %vm973_vm9, %v918_v46 }
 0x1fc   : > { %1437 = vrot.lane.b32.xlu1 %v405_v23, %s2184_s27  ;;  %1435 = vrot.lane.b32.xlu0 %v404_v24, %s2184_s27 }
 0x1fe   : > { %v924_v9 = vpop.permute.xlu1 %923  ;;  %v922_v14 = vpop.permute.xlu0 %921 }
 0x1ff   : > { %997 = vst.msk [vmem:[#allocation2 + $0xb8] sm:$0xff] %vm973_vm9, %v924_v9  ;;  %996 = vst.msk [vmem:[#allocation2 + $0xb0] sm:$0xff] %vm973_vm9, %v922_v14 }
 0x200   : > { %1068 = vrot.lane.b32.xlu1 %v405_v23, %s2181_s11  ;;  %1066 = vrot.lane.b32.xlu0 %v404_v24, %s2181_s11 }
 0x202   : > { %v1049_v47 = vpop.permute.xlu1 %1048  ;;  %v1047_v48 = vpop.permute.xlu0 %1046 }
 0x203   : > { %1125 = vst.msk [vmem:[#allocation2 + $0xa7] sm:$0xff] %vm1104_vm10, %v1049_v47 }
 0x204   : > { %1124 = vst.msk [vmem:[#allocation2 + $0x9f] sm:$0xfe] %vm1102_vm11, %v1047_v48 }
 0x206   : > { %v1053_v51 = vpop.permute.xlu1 %1052  ;;  %v1051_v55 = vpop.permute.xlu0 %1050 }
 0x207   : > { %1127 = vst.msk [vmem:[#allocation2 + $0xb7] sm:$0xff] %vm1104_vm10, %v1053_v51 }
 0x208   : > { %1126 = vst.msk [vmem:[#allocation2 + $0xaf] sm:$0xfe] %vm1102_vm11, %v1051_v55 }
 0x20a   : > { %v1179_v49 = vpop.permute.xlu1 %1178  ;;  %v1177_v50 = vpop.permute.xlu0 %1176 }
 0x20b   : > { %1249 = vst.msk [vmem:[#allocation2 + $0xa9] sm:$0x7f] %vm1228_vm12, %v1179_v49 }
 0x20c   : > { %1248 = vst.msk [vmem:[#allocation2 + $0xa1] sm:$0xff] %vm1226_vm13, %v1177_v50 }
 0x20d   : > { %v2102_v53 = vpop.f32.mrb[0].mxu0 }
 0x20e   : > { %v1687_v61 = vadd.f32 %v2102_v53, %v3198_v52  ;;  %v1678_v62 = vpop.f32.mrb[1].mxu0  ;;  %v1183_v56 = vpop.permute.xlu1 %1182 }
 0x20f   : > { %v1679_v54 = vadd.f32 %v3198_v52, %v1678_v62  ;;  %v1181_v57 = vpop.permute.xlu0 %1180  ;;  %1251 = vst.msk [vmem:[#allocation2 + $0xb9] sm:$0x7f] %vm1228_vm12, %v1183_v56  ;;  %v2103_v31 = vpop.f32.mrb[2].mxu0 }
 0x210   : > { %1915 = vst [vmem:[%s3207_s12 + $0x10] sm:$0xff] %v1687_v61  ;;  %1250 = vst.msk [vmem:[#allocation2 + $0xb1] sm:$0xff] %vm1226_vm13, %v1181_v57  ;;  %v1690_v58 = vadd.f32 %v2103_v31, %v3198_v52  ;;  %v1681_v3 = vpop.f32.mrb[3].mxu0  ;;  %v1845_v1 = vmul.f32 %v1687_v61, %v1687_v61 }
 0x211   : > { %1913 = vst [vmem:[%s3207_s12] sm:$0xff] %v1679_v54  ;;  %v1682_v32 = vadd.f32 %v3198_v52, %v1681_v3  ;;  %v1843_v60 = vmul.f32 %v1679_v54, %v1679_v54 }
 0x212   : > { %1916 = vst [vmem:[%s3207_s12 + $0x18] sm:$0xff] %v1690_v58  ;;  %v1301_v4 = vpop.permute.xlu1 %1300  ;;  %v1846_v13 = vmul.f32 %v1690_v58, %v1690_v58 }
 0x213   : > { %v1299_v59 = vpop.permute.xlu0 %1298  ;;  %v1805_v28 = vadd.f32 %v1682_v32, %v1679_v54  ;;  %v1844_v30 = vmul.f32 %v1682_v32, %v1682_v32  ;;  %1914 = vst [vmem:[%s3207_s12 + $0x8] sm:$0xff] %v1682_v32  ;;  %1370 = vst.msk [vmem:[#allocation2 + $0xa8] sm:$0xff] %vm1348_vm14, %v1301_v4 }
 0x214   : > { %1369 = vst.msk [vmem:[#allocation2 + $0xa0] sm:$0xff] %vm1348_vm14, %v1299_v59 }
 0x215   : > { %v1806_v0 = vadd.f32 %v1805_v28, %v1687_v61  ;;  %v1875_v63 = vadd.f32 %v1844_v30, %v1843_v60 }
 0x216   : > { %v1305_v5 = vpop.permute.xlu1 %1304 }
 0x217   : > { %v1303_v2 = vpop.permute.xlu0 %1302  ;;  %v1876_v15 = vadd.f32 %v1875_v63, %v1845_v1  ;;  %1372 = vst.msk [vmem:[#allocation2 + $0xb8] sm:$0xff] %vm1348_vm14, %v1305_v5  ;;  %v1807_v16 = vadd.f32 %v1806_v0, %v1690_v58 }
 0x218   : > { %1371 = vst.msk [vmem:[#allocation2 + $0xb0] sm:$0xff] %vm1348_vm14, %v1303_v2 }
 0x219   : > { %v1877_v17 = vadd.f32 %v1876_v15, %v1846_v13 }
 0x21a   : > { %v1422_v18 = vpop.permute.xlu1 %1421 }
 0x21b   : > { %v1420_v33 = vpop.permute.xlu0 %1419  ;;  %1492 = vst.msk [vmem:[#allocation2 + $0xa7] sm:$0xff] %vm1471_vm15, %v1422_v18 }
 0x21c   : > { %1491 = vst.msk [vmem:[#allocation2 + $0x9f] sm:$0xfe] %vm1469_vm1, %v1420_v33 }
 0x21e   : > { %v1426_v42 = vpop.permute.xlu1 %1425 }
 0x21f   : > { %v1424_v8 = vpop.permute.xlu0 %1423  ;;  %1494 = vst.msk [vmem:[#allocation2 + $0xb7] sm:$0xff] %vm1471_vm15, %v1426_v42 }
 0x220   : > { %1493 = vst.msk [vmem:[#allocation2 + $0xaf] sm:$0xfe] %vm1469_vm1, %v1424_v8 }
 0x222   : > { %v798_v10 = vpop.permute.xlu1 %797  ;;  %v1522_v36 = vld [vmem:[#allocation2 + $0xa8] sm:$0xff] }
 0x223   : > { %v796_v19 = vpop.permute.xlu0 %795  ;;  %v1521_v20 = vld [vmem:[#allocation2 + $0xa0] sm:$0xff]  ;;  %870 = vst.msk [vmem:[#allocation2 + $0xc9] sm:$0x7f] %vm845_vm7, %v798_v10 }
 0x224   : > { %869 = vst.msk [vmem:[#allocation2 + $0xc1] sm:$0xff] %vm843_vm8, %v796_v19  ;;  %v1543_v37 = vpack.c.bf16 %v1522_v36, %v1521_v20 }
 0x226   : > { %2120 = vmatprep.mubr.msk.bf16.mxu1 %vm406_vm0, %v1543_v37  ;;  %v802_v21 = vpop.permute.xlu1 %801  ;;  %v1524_v7 = vld [vmem:[#allocation2 + $0xb8] sm:$0xff] }
 0x227   : > { %v800_v6 = vpop.permute.xlu0 %799  ;;  %v1523_v22 = vld [vmem:[#allocation2 + $0xb0] sm:$0xff]  ;;  %872 = vst.msk [vmem:[#allocation2 + $0xd9] sm:$0x7f] %vm845_vm7, %v802_v21 }
 0x228   : > { %871 = vst.msk [vmem:[#allocation2 + $0xd1] sm:$0xff] %vm843_vm8, %v800_v6  ;;  %v1544_v23 = vpack.c.bf16 %v1524_v7, %v1523_v22 }
 0x22a   : > { %2121 = vmatmul.mubr.msk.bf16.gmra.mrb[4].mxu1 %vm406_vm0, %v1544_v23  ;;  %v928_v24 = vpop.permute.xlu1 %927 }
 0x22b   : > { %v926_v25 = vpop.permute.xlu0 %925  ;;  %999 = vst.msk [vmem:[#allocation2 + $0xc8] sm:$0xff] %vm973_vm9, %v928_v24 }
 0x22c   : > { %998 = vst.msk [vmem:[#allocation2 + $0xc0] sm:$0xff] %vm973_vm9, %v926_v25 }
 0x22e   : > { %v932_v43 = vpop.permute.xlu1 %931 }
 0x22f   : > { %v930_v26 = vpop.permute.xlu0 %929  ;;  %1001 = vst.msk [vmem:[#allocation2 + $0xd8] sm:$0xff] %vm973_vm9, %v932_v43 }
 0x230   : > { %1000 = vst.msk [vmem:[#allocation2 + $0xd0] sm:$0xff] %vm973_vm9, %v930_v26 }
 0x232   : > { %v1057_v44 = vpop.permute.xlu1 %1056 }
 0x233   : > { %v1055_v11 = vpop.permute.xlu0 %1054  ;;  %1129 = vst.msk [vmem:[#allocation2 + $0xc7] sm:$0xff] %vm1104_vm10, %v1057_v44 }
 0x234   : > { %1128 = vst.msk [vmem:[#allocation2 + $0xbf] sm:$0xfe] %vm1102_vm11, %v1055_v11 }
 0x236   : > { %v1061_v12 = vpop.permute.xlu1 %1060 }
 0x237   : > { %v1059_v27 = vpop.permute.xlu0 %1058  ;;  %1131 = vst.msk [vmem:[#allocation2 + $0xd7] sm:$0xff] %vm1104_vm10, %v1061_v12 }
 0x238   : > { %1130 = vst.msk [vmem:[#allocation2 + $0xcf] sm:$0xfe] %vm1102_vm11, %v1059_v27 }
 0x23a   : > { %v1187_v35 = vpop.permute.xlu1 %1186 }
 0x23b   : > { %v1185_v29 = vpop.permute.xlu0 %1184  ;;  %1253 = vst.msk [vmem:[#allocation2 + $0xc9] sm:$0x7f] %vm1228_vm12, %v1187_v35 }
 0x23c   : > { %1252 = vst.msk [vmem:[#allocation2 + $0xc1] sm:$0xff] %vm1226_vm13, %v1185_v29 }
 0x23d   : > { %v2106_v34 = vpop.f32.mrb[4].mxu0 }
 0x23e   : > { %v1703_v40 = vadd.f32 %v2106_v34, %v3198_v52  ;;  %v1694_v45 = vpop.f32.mrb[5].mxu0  ;;  %v1191_v39 = vpop.permute.xlu1 %1190 }
 0x23f   : > { %v1695_v38 = vadd.f32 %v3198_v52, %v1694_v45  ;;  %v1189_v41 = vpop.permute.xlu0 %1188  ;;  %1255 = vst.msk [vmem:[#allocation2 + $0xd9] sm:$0x7f] %vm1228_vm12, %v1191_v39  ;;  %v2107_v46 = vpop.f32.mrb[6].mxu0 }
 0x240   : > { %1919 = vst [vmem:[%s3207_s12 + $0x30] sm:$0xff] %v1703_v40  ;;  %1254 = vst.msk [vmem:[#allocation2 + $0xd1] sm:$0xff] %vm1226_vm13, %v1189_v41  ;;  %v1706_v47 = vadd.f32 %v2107_v46, %v3198_v52  ;;  %v1697_v48 = vpop.f32.mrb[7].mxu0  ;;  %v1849_v62 = vmul.f32 %v1703_v40, %v1703_v40 }
 0x241   : > { %v1808_v9 = vadd.f32 %v1807_v16, %v1695_v38  ;;  %v1847_v14 = vmul.f32 %v1695_v38, %v1695_v38  ;;  %1917 = vst [vmem:[%s3207_s12 + $0x20] sm:$0xff] %v1695_v38  ;;  %v1698_v51 = vadd.f32 %v3198_v52, %v1697_v48 }
 0x242   : > { %1920 = vst [vmem:[%s3207_s12 + $0x38] sm:$0xff] %v1706_v47  ;;  %v1309_v49 = vpop.permute.xlu1 %1308  ;;  %v1850_v58 = vmul.f32 %v1706_v47, %v1706_v47 }
 0x243   : > { %v1878_v55 = vadd.f32 %v1877_v17, %v1847_v14  ;;  %v1307_v50 = vpop.permute.xlu0 %1306  ;;  %v1809_v53 = vadd.f32 %v1808_v9, %v1698_v51  ;;  %v1848_v61 = vmul.f32 %v1698_v51, %v1698_v51  ;;  %1918 = vst [vmem:[%s3207_s12 + $0x28] sm:$0xff] %v1698_v51  ;;  %1374 = vst.msk [vmem:[#allocation2 + $0xc8] sm:$0xff] %vm1348_vm14, %v1309_v49 }
 0x244   : > { %1373 = vst.msk [vmem:[#allocation2 + $0xc0] sm:$0xff] %vm1348_vm14, %v1307_v50 }
 0x245   : > { %v1810_v54 = vadd.f32 %v1809_v53, %v1703_v40  ;;  %v1879_v56 = vadd.f32 %v1878_v55, %v1848_v61 }
 0x246   : > { %v1313_v57 = vpop.permute.xlu1 %1312 }
 0x247   : > { %v1311_v31 = vpop.permute.xlu0 %1310  ;;  %v1880_v3 = vadd.f32 %v1879_v56, %v1849_v62  ;;  %1376 = vst.msk [vmem:[#allocation2 + $0xd8] sm:$0xff] %vm1348_vm14, %v1313_v57  ;;  %v1811_v32 = vadd.f32 %v1810_v54, %v1706_v47 }
 0x248   : > { %1375 = vst.msk [vmem:[#allocation2 + $0xd0] sm:$0xff] %vm1348_vm14, %v1311_v31 }
 0x249   : > { %v1881_v4 = vadd.f32 %v1880_v3, %v1850_v58 }
 0x24a   : > { %v1430_v59 = vpop.permute.xlu1 %1429 }
 0x24b   : > { %v1428_v60 = vpop.permute.xlu0 %1427  ;;  %1496 = vst.msk [vmem:[#allocation2 + $0xc7] sm:$0xff] %vm1471_vm15, %v1430_v59 }
 0x24c   : > { %1495 = vst.msk [vmem:[#allocation2 + $0xbf] sm:$0xfe] %vm1469_vm1, %v1428_v60 }
 0x24e   : > { %v1434_v28 = vpop.permute.xlu1 %1433 }
 0x24f   : > { %v1432_v30 = vpop.permute.xlu0 %1431  ;;  %1498 = vst.msk [vmem:[#allocation2 + $0xd7] sm:$0xff] %vm1471_vm15, %v1434_v28 }
 0x250   : > { %1497 = vst.msk [vmem:[#allocation2 + $0xcf] sm:$0xfe] %vm1469_vm1, %v1432_v30 }
 0x252   : > { %v806_v1 = vpop.permute.xlu1 %805  ;;  %v1526_v5 = vld [vmem:[#allocation2 + $0xc8] sm:$0xff] }
 0x253   : > { %v804_v0 = vpop.permute.xlu0 %803  ;;  %v1525_v63 = vld [vmem:[#allocation2 + $0xc0] sm:$0xff]  ;;  %874 = vst.msk [vmem:[#allocation2 + $0xe9] sm:$0x7f] %vm845_vm7, %v806_v1 }
 0x254   : > { %873 = vst.msk [vmem:[#allocation2 + $0xe1] sm:$0xff] %vm843_vm8, %v804_v0  ;;  %v1545_v2 = vpack.c.bf16 %v1526_v5, %v1525_v63 }
 0x256   : > { %2124 = vmatprep.mubr.msk.bf16.mxu1 %vm406_vm0, %v1545_v2  ;;  %v936_v13 = vpop.permute.xlu1 %935  ;;  %v1528_v17 = vld [vmem:[#allocation2 + $0xd8] sm:$0xff] }
 0x257   : > { %v934_v15 = vpop.permute.xlu0 %933  ;;  %v1527_v16 = vld [vmem:[#allocation2 + $0xd0] sm:$0xff]  ;;  %1003 = vst.msk [vmem:[#allocation2 + $0xe8] sm:$0xff] %vm973_vm9, %v936_v13 }
 0x258   : > { %1002 = vst.msk [vmem:[#allocation2 + $0xe0] sm:$0xff] %vm973_vm9, %v934_v15  ;;  %v1546_v18 = vpack.c.bf16 %v1528_v17, %v1527_v16 }
 0x25a   : > { %2125 = vmatmul.mubr.msk.bf16.gmra.mrb[8].mxu1 %vm406_vm0, %v1546_v18  ;;  %v1065_v33 = vpop.permute.xlu1 %1064 }
 0x25b   : > { %v1063_v42 = vpop.permute.xlu0 %1062  ;;  %1133 = vst.msk [vmem:[#allocation2 + $0xe7] sm:$0xff] %vm1104_vm10, %v1065_v33 }
 0x25c   : > { %1132 = vst.msk [vmem:[#allocation2 + $0xdf] sm:$0xfe] %vm1102_vm11, %v1063_v42 }
 0x25e   : > { %v1195_v8 = vpop.permute.xlu1 %1194 }
 0x25f   : > { %v1193_v10 = vpop.permute.xlu0 %1192  ;;  %1257 = vst.msk [vmem:[#allocation2 + $0xe9] sm:$0x7f] %vm1228_vm12, %v1195_v8 }
 0x260   : > { %1256 = vst.msk [vmem:[#allocation2 + $0xe1] sm:$0xff] %vm1226_vm13, %v1193_v10 }
 0x262   : > { %v810_v19 = vpop.permute.xlu1 %809 }
 0x263   : > { %v808_v20 = vpop.permute.xlu0 %807  ;;  %876 = vst.msk [vmem:[#allocation2 + $0xf9] sm:$0x7f] %vm845_vm7, %v810_v19 }
 0x264   : > { %875 = vst.msk [vmem:[#allocation2 + $0xf1] sm:$0xff] %vm843_vm8, %v808_v20 }
 0x266   : > { %v1317_v36 = vpop.permute.xlu1 %1316 }
 0x267   : > { %v1315_v37 = vpop.permute.xlu0 %1314  ;;  %1378 = vst.msk [vmem:[#allocation2 + $0xe8] sm:$0xff] %vm1348_vm14, %v1317_v36 }
 0x268   : > { %1377 = vst.msk [vmem:[#allocation2 + $0xe0] sm:$0xff] %vm1348_vm14, %v1315_v37 }
 0x26a   : > { %v940_v21 = vpop.permute.xlu1 %939 }
 0x26b   : > { %v938_v6 = vpop.permute.xlu0 %937  ;;  %1005 = vst.msk [vmem:[#allocation2 + $0xf8] sm:$0xff] %vm973_vm9, %v940_v21 }
 0x26c   : > { %1004 = vst.msk [vmem:[#allocation2 + $0xf0] sm:$0xff] %vm973_vm9, %v938_v6 }
 0x26d   : > { %v2110_v22 = vpop.f32.mrb[8].mxu0 }
 0x26e   : > { %v1719_v7 = vadd.f32 %v2110_v22, %v3198_v52  ;;  %v1710_v23 = vpop.f32.mrb[9].mxu0  ;;  %v1438_v25 = vpop.permute.xlu1 %1437 }
 0x26f   : > { %v1711_v24 = vadd.f32 %v3198_v52, %v1710_v23  ;;  %v1436_v43 = vpop.permute.xlu0 %1435  ;;  %1500 = vst.msk [vmem:[#allocation2 + $0xe7] sm:$0xff] %vm1471_vm15, %v1438_v25  ;;  %v2111_v26 = vpop.f32.mrb[10].mxu0 }
 0x270   : > { %1923 = vst [vmem:[%s3207_s12 + $0x50] sm:$0xff] %v1719_v7  ;;  %1499 = vst.msk [vmem:[#allocation2 + $0xdf] sm:$0xfe] %vm1469_vm1, %v1436_v43  ;;  %v1722_v12 = vadd.f32 %v2111_v26, %v3198_v52  ;;  %v1713_v27 = vpop.f32.mrb[11].mxu0  ;;  %v1853_v39 = vmul.f32 %v1719_v7, %v1719_v7 }
 0x271   : > { %v1812_v44 = vadd.f32 %v1811_v32, %v1711_v24  ;;  %v1851_v11 = vmul.f32 %v1711_v24, %v1711_v24  ;;  %1921 = vst [vmem:[%s3207_s12 + $0x40] sm:$0xff] %v1711_v24  ;;  %v1714_v35 = vadd.f32 %v3198_v52, %v1713_v27 }
 0x272   : > { %1924 = vst [vmem:[%s3207_s12 + $0x58] sm:$0xff] %v1722_v12  ;;  %v1069_v34 = vpop.permute.xlu1 %1068  ;;  %v1854_v47 = vmul.f32 %v1722_v12, %v1722_v12 }
 0x273   : > { %v1882_v29 = vadd.f32 %v1881_v4, %v1851_v11  ;;  %v1067_v40 = vpop.permute.xlu0 %1066  ;;  %v1813_v45 = vadd.f32 %v1812_v44, %v1714_v35  ;;  %v1852_v38 = vmul.f32 %v1714_v35, %v1714_v35  ;;  %1922 = vst [vmem:[%s3207_s12 + $0x48] sm:$0xff] %v1714_v35  ;;  %1135 = vst.msk [vmem:[#allocation2 + $0xf7] sm:$0xff] %vm1104_vm10, %v1069_v34 }
 0x274   : > { %1134 = vst.msk [vmem:[#allocation2 + $0xef] sm:$0xfe] %vm1102_vm11, %v1067_v40 }
 0x275   : > { %v1814_v41 = vadd.f32 %v1813_v45, %v1719_v7  ;;  %v1883_v46 = vadd.f32 %v1882_v29, %v1852_v38 }
 0x276   : > { %v1530_v14 = vld [vmem:[#allocation2 + $0xe8] sm:$0xff] }
 0x277   : > { %v1529_v9 = vld [vmem:[#allocation2 + $0xe0] sm:$0xff]  ;;  %v1884_v48 = vadd.f32 %v1883_v46, %v1853_v39  ;;  %v1815_v55 = vadd.f32 %v1814_v41, %v1722_v12 }
 0x278   : > { %v1547_v51 = vpack.c.bf16 %v1530_v14, %v1529_v9 }
 0x279   : > { %v1885_v49 = vadd.f32 %v1884_v48, %v1854_v47 }
 0x27a   : > { %2128 = vmatprep.mubr.msk.bf16.mxu1 %vm406_vm0, %v1547_v51  ;;  %v1532_v53 = vld [vmem:[#allocation2 + $0xf8] sm:$0xff] }
 0x27b   : > { %v1531_v50 = vld [vmem:[#allocation2 + $0xf0] sm:$0xff] }
 0x27c   : > { %v1548_v61 = vpack.c.bf16 %v1532_v53, %v1531_v50 }
 0x27e   : > { %2129 = vmatmul.mubr.msk.bf16.gmra.mrb[12].mxu1 %vm406_vm0, %v1548_v61 }
 0x29d   : > { %v2114_v62 = vpop.f32.mrb[12].mxu0 }
 0x29e   : > { %v1735_v54 = vadd.f32 %v2114_v62, %v3198_v52  ;;  %v1726_v56 = vpop.f32.mrb[13].mxu0 }
 0x29f   : > { %v1727_v57 = vadd.f32 %v3198_v52, %v1726_v56  ;;  %v2115_v31 = vpop.f32.mrb[14].mxu0 }
 0x2a0   : > { %1927 = vst [vmem:[%s3207_s12 + $0x70] sm:$0xff] %v1735_v54  ;;  %v1738_v58 = vadd.f32 %v2115_v31, %v3198_v52  ;;  %v1729_v3 = vpop.f32.mrb[15].mxu0  ;;  %v1857_v1 = vmul.f32 %v1735_v54, %v1735_v54 }
 0x2a1   : > { %v1816_v32 = vadd.f32 %v1815_v55, %v1727_v57  ;;  %v1855_v4 = vmul.f32 %v1727_v57, %v1727_v57  ;;  %1925 = vst [vmem:[%s3207_s12 + $0x60] sm:$0xff] %v1727_v57  ;;  %v1730_v59 = vadd.f32 %v3198_v52, %v1729_v3 }
 0x2a2   : > { %1928 = vst [vmem:[%s3207_s12 + $0x78] sm:$0xff] %v1738_v58  ;;  %v1858_v5 = vmul.f32 %v1738_v58, %v1738_v58 }
 0x2a3   : > { %v1886_v60 = vadd.f32 %v1885_v49, %v1855_v4  ;;  %v1817_v28 = vadd.f32 %v1816_v32, %v1730_v59  ;;  %v1856_v30 = vmul.f32 %v1730_v59, %v1730_v59  ;;  %1926 = vst [vmem:[%s3207_s12 + $0x68] sm:$0xff] %v1730_v59 }
 0x2a5   : > { %v1818_v0 = vadd.f32 %v1817_v28, %v1735_v54  ;;  %v1887_v63 = vadd.f32 %v1886_v60, %v1856_v30 }
 0x2a7   : > { %v1888_v2 = vadd.f32 %v1887_v63, %v1857_v1  ;;  %v1819_v13 = vadd.f32 %v1818_v0, %v1738_v58 }
 0x2a9   : > { %v1889_v15 = vadd.f32 %v1888_v2, %v1858_v5 }
 0x2cd   : > { %v2118_v16 = vpop.f32.mrb[0].mxu1 }
 0x2ce   : > { %v1751_v17 = vadd.f32 %v2118_v16, %v3198_v52  ;;  %v1742_v18 = vpop.f32.mrb[1].mxu1 }
 0x2cf   : > { %v1743_v33 = vadd.f32 %v3198_v52, %v1742_v18  ;;  %v2119_v42 = vpop.f32.mrb[2].mxu1 }
 0x2d0   : > { %1931 = vst [vmem:[%s3207_s12 + $0x90] sm:$0xff] %v1751_v17  ;;  %v1754_v8 = vadd.f32 %v2119_v42, %v3198_v52  ;;  %v1745_v10 = vpop.f32.mrb[3].mxu1  ;;  %v1861_v22 = vmul.f32 %v1751_v17, %v1751_v17 }
 0x2d1   : > { %v1820_v19 = vadd.f32 %v1819_v13, %v1743_v33  ;;  %v1859_v20 = vmul.f32 %v1743_v33, %v1743_v33  ;;  %1929 = vst [vmem:[%s3207_s12 + $0x80] sm:$0xff] %v1743_v33  ;;  %v1746_v36 = vadd.f32 %v3198_v52, %v1745_v10 }
 0x2d2   : > { %1932 = vst [vmem:[%s3207_s12 + $0x98] sm:$0xff] %v1754_v8  ;;  %v1862_v24 = vmul.f32 %v1754_v8, %v1754_v8 }
 0x2d3   : > { %v1890_v37 = vadd.f32 %v1889_v15, %v1859_v20  ;;  %v1821_v21 = vadd.f32 %v1820_v19, %v1746_v36  ;;  %v1860_v6 = vmul.f32 %v1746_v36, %v1746_v36  ;;  %1930 = vst [vmem:[%s3207_s12 + $0x88] sm:$0xff] %v1746_v36 }
 0x2d5   : > { %v1822_v7 = vadd.f32 %v1821_v21, %v1751_v17  ;;  %v1891_v23 = vadd.f32 %v1890_v37, %v1860_v6 }
 0x2d7   : > { %v1892_v25 = vadd.f32 %v1891_v23, %v1861_v22  ;;  %v1823_v43 = vadd.f32 %v1822_v7, %v1754_v8 }
 0x2d9   : > { %v1893_v26 = vadd.f32 %v1892_v25, %v1862_v24 }
 0x2fd   : > { %v2122_v44 = vpop.f32.mrb[4].mxu1 }
 0x2fe   : > { %v1767_v11 = vadd.f32 %v2122_v44, %v3198_v52  ;;  %v1758_v12 = vpop.f32.mrb[5].mxu1 }
 0x2ff   : > { %v1759_v27 = vadd.f32 %v3198_v52, %v1758_v12  ;;  %v2123_v35 = vpop.f32.mrb[6].mxu1 }
 0x300   : > { %1935 = vst [vmem:[%s3207_s12 + $0xb0] sm:$0xff] %v1767_v11  ;;  %v1770_v29 = vadd.f32 %v2123_v35, %v3198_v52  ;;  %v1761_v34 = vpop.f32.mrb[7].mxu1  ;;  %v1865_v9 = vmul.f32 %v1767_v11, %v1767_v11 }
 0x301   : > { %v1824_v40 = vadd.f32 %v1823_v43, %v1759_v27  ;;  %v1863_v45 = vmul.f32 %v1759_v27, %v1759_v27  ;;  %1933 = vst [vmem:[%s3207_s12 + $0xa0] sm:$0xff] %v1759_v27  ;;  %v1762_v38 = vadd.f32 %v3198_v52, %v1761_v34 }
 0x302   : > { %1936 = vst [vmem:[%s3207_s12 + $0xb8] sm:$0xff] %v1770_v29  ;;  %v1866_v48 = vmul.f32 %v1770_v29, %v1770_v29 }
 0x303   : > { %v1894_v39 = vadd.f32 %v1893_v26, %v1863_v45  ;;  %v1825_v41 = vadd.f32 %v1824_v40, %v1762_v38  ;;  %v1864_v46 = vmul.f32 %v1762_v38, %v1762_v38  ;;  %1934 = vst [vmem:[%s3207_s12 + $0xa8] sm:$0xff] %v1762_v38 }
 0x305   : > { %v1826_v14 = vadd.f32 %v1825_v41, %v1767_v11  ;;  %v1895_v47 = vadd.f32 %v1894_v39, %v1864_v46 }
 0x307   : > { %v1896_v51 = vadd.f32 %v1895_v47, %v1865_v9  ;;  %v1827_v55 = vadd.f32 %v1826_v14, %v1770_v29 }
 0x309   : > { %v1897_v49 = vadd.f32 %v1896_v51, %v1866_v48 }
 0x32d   : > { %v2126_v50 = vpop.f32.mrb[8].mxu1 }
 0x32e   : > { %v1783_v53 = vadd.f32 %v2126_v50, %v3198_v52  ;;  %v1774_v61 = vpop.f32.mrb[9].mxu1 }
 0x32f   : > { %v1775_v62 = vadd.f32 %v3198_v52, %v1774_v61  ;;  %v2127_v54 = vpop.f32.mrb[10].mxu1 }
 0x330   : > { %1939 = vst [vmem:[%s3207_s12 + $0xd0] sm:$0xff] %v1783_v53  ;;  %v1786_v56 = vadd.f32 %v2127_v54, %v3198_v52  ;;  %v1777_v57 = vpop.f32.mrb[11].mxu1  ;;  %v1869_v60 = vmul.f32 %v1783_v53, %v1783_v53 }
 0x331   : > { %v1828_v31 = vadd.f32 %v1827_v55, %v1775_v62  ;;  %v1867_v58 = vmul.f32 %v1775_v62, %v1775_v62  ;;  %1937 = vst [vmem:[%s3207_s12 + $0xc0] sm:$0xff] %v1775_v62  ;;  %v1778_v3 = vadd.f32 %v3198_v52, %v1777_v57 }
 0x332   : > { %1940 = vst [vmem:[%s3207_s12 + $0xd8] sm:$0xff] %v1786_v56  ;;  %v1870_v1 = vmul.f32 %v1786_v56, %v1786_v56 }
 0x333   : > { %v1898_v32 = vadd.f32 %v1897_v49, %v1867_v58  ;;  %v1829_v4 = vadd.f32 %v1828_v31, %v1778_v3  ;;  %v1868_v59 = vmul.f32 %v1778_v3, %v1778_v3  ;;  %1938 = vst [vmem:[%s3207_s12 + $0xc8] sm:$0xff] %v1778_v3 }
 0x335   : > { %v1830_v28 = vadd.f32 %v1829_v4, %v1783_v53  ;;  %v1899_v30 = vadd.f32 %v1898_v32, %v1868_v59 }
 0x337   : > { %v1900_v0 = vadd.f32 %v1899_v30, %v1869_v60  ;;  %v1831_v63 = vadd.f32 %v1830_v28, %v1786_v56 }
 0x339   : > { %v1901_v5 = vadd.f32 %v1900_v0, %v1870_v1 }
 0x351   : > { %v2130_v2 = vpop.f32.mrb[12].mxu1 }
 0x352   : > { %v1799_v13 = vadd.f32 %v2130_v2, %v3198_v52  ;;  %v1790_v15 = vpop.f32.mrb[13].mxu1 }
 0x353   : > { %v1791_v16 = vadd.f32 %v3198_v52, %v1790_v15  ;;  %v2131_v17 = vpop.f32.mrb[14].mxu1 }
 0x354   : > { %1943 = vst [vmem:[%s3207_s12 + $0xf0] sm:$0xff] %v1799_v13  ;;  %v1802_v18 = vadd.f32 %v2131_v17, %v3198_v52  ;;  %v1793_v33 = vpop.f32.mrb[15].mxu1  ;;  %v1873_v37 = vmul.f32 %v1799_v13, %v1799_v13 }
 0x355   : > { %v1832_v42 = vadd.f32 %v1831_v63, %v1791_v16  ;;  %v1871_v8 = vmul.f32 %v1791_v16, %v1791_v16  ;;  %1941 = vst [vmem:[%s3207_s12 + $0xe0] sm:$0xff] %v1791_v16  ;;  %v1794_v10 = vadd.f32 %v3198_v52, %v1793_v33 }
 0x356   : > { %1944 = vst [vmem:[%s3207_s12 + $0xf8] sm:$0xff] %v1802_v18  ;;  %v1874_v22 = vmul.f32 %v1802_v18, %v1802_v18 }
 0x357   : > { %v1902_v19 = vadd.f32 %v1901_v5, %v1871_v8  ;;  %v1833_v20 = vadd.f32 %v1832_v42, %v1794_v10  ;;  %v1872_v36 = vmul.f32 %v1794_v10, %v1794_v10  ;;  %1942 = vst [vmem:[%s3207_s12 + $0xe8] sm:$0xff] %v1794_v10 }
 0x359   : > { %v1834_v21 = vadd.f32 %v1833_v20, %v1799_v13  ;;  %v1903_v6 = vadd.f32 %v1902_v19, %v1872_v36 }
 0x35b   : > { %v1835_v7 = vadd.f32 %v1834_v21, %v1802_v18  ;;  %v1904_v23 = vadd.f32 %v1903_v6, %v1873_v37 }
 0x35d   : > { %v1836_v24 = vrot.slane %v1835_v7, 4  ;;  %v1905_v25 = vadd.f32 %v1904_v23, %v1874_v22 }
 0x35f   : > { %v1837_v43 = vadd.f32 %v1836_v24, %v1835_v7  ;;  %v1906_v26 = vrot.slane %v1905_v25, 4 }
 0x361   : > { %v1838_v44 = vrot.slane %v1837_v43, 2  ;;  %v1907_v11 = vadd.f32 %v1906_v26, %v1905_v25 }
 0x363   : > { %v1839_v52 = vadd.f32 %v1838_v44, %v1837_v43  ;;  %v1908_v12 = vrot.slane %v1907_v11, 2 }
 0x365   : > { %v1840_v27 = vrot.slane %v1839_v52, 1  ;;  %v1909_v35 = vadd.f32 %v1908_v12, %v1907_v11 }
 0x367   : > { %v1841_v29 = vadd.f32 %v1840_v27, %v1839_v52  ;;  %v1910_v34 = vrot.slane %v1909_v35, 1 }
 0x369   : > { %1842 = vst [vmem:[%s262_s15] sm:$0x1] %v1841_v29  ;;  %v1911_v40 = vadd.f32 %v1910_v34, %v1909_v35 }
 0x36b   : > { %1912 = vst [vmem:[%s262_s15 + $0x1] sm:$0x1] %v1911_v40 }
 0x36c PF: > { %s17_s21 = sadd.s32 1, %s2174_s21  }
 0x36d   : > { %p14_p4 = scmp.ge.s32.totalorder %s17_s21, 4  }
 0x36f   :  { %16 = sbr.rel (!%p14_p4) target bundleno = 1 (0x1), region = 83 }

</bundles_post_ra>
